<compile_context>
chip_gen: v7x
topology: tpu7x:2x2x1
jax: 0.10.0
libtpu: 0.0.40
codegen_flags: <defaults>
</compile_context>

<pallas_src>
from functools import partial

import jax
import jax.numpy as jnp
from jax.experimental import pallas as pl
from jax.experimental.pallas import tpu as pltpu


def _pick_vmem_limit_bytes():
    """Scoped-VMEM limit: ~3/4 of physical; only clamp on 64 MiB (v7x-class) parts."""
    try:
        cap = int(pltpu.get_tpu_info().vmem_capacity_bytes)
    except Exception:
        cap = 64 * 1024 * 1024                      # conservative fallback
    if cap <= 64 * 1024 * 1024:
        return int(min(cap * 3 // 4, 48 * 1024 * 1024))
    return int(cap * 3 // 4)                        # v5e / v6e: ~96 MiB scoped


_VMEM_LIMIT_BYTES = _pick_vmem_limit_bytes()


def _pick_rows_per_program(B, S):
    """NB batch rows per grid step, targeting ~256 matmul rows (M = NB*S)."""
    target = max(1, 256 // max(S, 1))
    if B <= target:
        return B
    nb = 1
    for cand in range(1, min(B, target) + 1):
        if B % cand == 0:
            nb = cand
    return nb


def encoder_head_kernel(
    ids_ref,                                             # scalar prefetch: [B,S] int32 in SMEM
    table_ref,                                            # [V,1,H] f32 embedding table (resident)
    bias_ref, rate_ref,                                   # per-block: [NB,S] f32, [NB,1] f32
    wqkv_ref, bqkv_ref, wo_ref, w1_ref, b1_ref, w2_ref,   # weights (resident, bf16/f32)
    vecs_ref,                                             # packed small params [8,H] f32
    out_ref,                                              # [NB,1] f32
    xbuf_ref,                                             # scratch VMEM [(NB*S), H] f32
):
    g = pl.program_id(0)
    NB, S = bias_ref.shape
    M, H = xbuf_ref.shape
    f32, bf16 = jnp.float32, jnp.bfloat16

    # ---- in-kernel embedding gather (ids from SMEM, table resident in VMEM) ----
    # TODO(synk): real-vocab tables need an HBM DMA gather instead of VMEM residency.
    for r in range(M):
        nb, s = divmod(r, S)
        tok = ids_ref[g * NB + nb, s]
        xbuf_ref[pl.ds(r, 1), :] = table_ref[tok]         # leading-dim dynamic row load

    x = xbuf_ref[...]                                      # [M,H] f32 residual stream
    x_bf = x.astype(bf16)

    def layernorm(t, gamma, beta):                         # t [M,H] f32; gamma/beta [1,H]
        mu = jnp.mean(t, axis=-1, keepdims=True)
        var = jnp.mean((t - mu) ** 2, axis=-1, keepdims=True)
        return (t - mu) * jax.lax.rsqrt(var + 1e-5) * gamma + beta

    # ---- fused QKV projection over the whole [M,H] slab (one MXU pass) ----
    qkv = jnp.dot(x_bf, wqkv_ref[...], preferred_element_type=f32) + bqkv_ref[...]
    q = qkv[:, :H]
    k = qkv[:, H:2 * H]        # NOTE: 1/sqrt(H) already folded into the K weights/bias
    v = qkv[:, 2 * H:]

    # ---- single-head self-attention, per batch row (no cross-row attention) ----
    # TODO(synk): key-block (flash-style online softmax) at real codeT5 sequence lengths.
    ctx_rows = []
    for nb in range(NB):
        lo = nb * S
        qn = q[lo:lo + S, :].astype(bf16)
        kn = k[lo:lo + S, :].astype(bf16)
        vn = v[lo:lo + S, :].astype(bf16)
        s_nb = jnp.einsum('qh,kh->qk', qn, kn, preferred_element_type=f32)
        s_nb = s_nb + bias_ref[nb:nb + 1, :]               # additive padding mask
        s_nb = s_nb - jnp.max(s_nb, axis=-1, keepdims=True)
        p_nb = jnp.exp(s_nb)
        denom = jnp.sum(p_nb, axis=-1, keepdims=True)
        attn = p_nb * pl.reciprocal(denom, approx=True)    # divide -> EUP slot
        ctx_rows.append(jnp.dot(attn.astype(bf16), vn, preferred_element_type=f32))
    ctx = jnp.concatenate(ctx_rows, axis=0)                # [M,H] f32

    attn_out = jnp.dot(ctx.astype(bf16), wo_ref[...],
                       preferred_element_type=f32) + vecs_ref[0:1, :]          # + bo
    h = layernorm(x + attn_out, vecs_ref[1:2, :], vecs_ref[2:3, :])

    # ---- GELU feed-forward on the whole slab ----
    ff = jnp.dot(h.astype(bf16), w1_ref[...], preferred_element_type=f32) + b1_ref[...]
    ff = jax.nn.gelu(ff, approximate=True)
    ff = jnp.dot(ff.astype(bf16), w2_ref[...], preferred_element_type=f32) + vecs_ref[3:4, :]
    h2 = layernorm(h + ff, vecs_ref[4:5, :], vecs_ref[5:6, :])

    # ---- head: cat((cls, rate), 1) @ W.T + b == sum(cls*W[:,:H]) + rate*W[:,H] + b ----
    cls = jnp.concatenate([h2[nb * S:nb * S + 1, :] for nb in range(NB)], axis=0)  # [NB,H]
    logit = jnp.sum(cls * vecs_ref[6:7, :], axis=-1, keepdims=True)               # [NB,1]
    wr = vecs_ref[7:8, 0:1]
    tb = vecs_ref[7:8, 1:2]
    out_ref[...] = logit + rate_ref[...] * wr + tb


@partial(jax.jit, static_argnums=(4,))
def _forward_impl(ids, mask, markdown_rate, params, single_buffer_weights):
    B, S = ids.shape
    H = params['wqkv'].shape[0]
    F = params['w1'].shape[1]
    table = params['emb_table']
    VOCAB = table.shape[0]

    NB = _pick_rows_per_program(B, S)
    grid = (B // NB,)

    attn_bias = (1.0 - mask.astype(jnp.float32)) * (-1e9)          # [B,S]
    rate = markdown_rate.astype(jnp.float32)                       # [B,1]
    table3 = table.astype(jnp.float32)[:, None, :]                 # [V,1,H] for leading-dim indexing

    def _const(shape):
        ndim = len(shape)
        imap = lambda g, *_: (0,) * ndim
        if single_buffer_weights:
            # Constant-index blocks are fetched once; one buffer halves their residency.
            return pl.BlockSpec(shape, imap, pipeline_mode=pl.Buffered(buffer_count=1))
        return pl.BlockSpec(shape, imap)

    grid_spec = pltpu.PrefetchScalarGridSpec(
        num_scalar_prefetch=1,                         # token ids -> SMEM
        grid=grid,                                     # one program per NB batch rows
        in_specs=[
            _const((VOCAB, 1, H)),                                   # embedding table (f32)
            pl.BlockSpec((NB, S), lambda g, *_: (g, 0)),             # additive attention mask
            pl.BlockSpec((NB, 1), lambda g, *_: (g, 0)),             # markdown_rate
            _const((H, 3 * H)),                                      # fused QKV weight (bf16)
            _const((1, 3 * H)),                                      # fused QKV bias (f32)
            _const((H, H)),                                          # attn output weight (bf16)
            _const((H, F)),                                          # FFN weight 1 (bf16)
            _const((1, F)),                                          # FFN bias 1 (f32)
            _const((F, H)),                                          # FFN weight 2 (bf16)
            _const((8, H)),                                          # packed small params (f32)
        ],
        out_specs=pl.BlockSpec((NB, 1), lambda g, *_: (g, 0)),
        scratch_shapes=[pltpu.VMEM((NB * S, H), jnp.float32)],       # gathered embedding slab
    )

    flops = 2 * B * S * H * (4 * H + 2 * F) + 4 * B * S * S * H + 2 * B * (H + 1)
    transcendentals = B * S * (S + F + 2)
    bytes_accessed = int(
        ids.size * 4 + mask.size * 4 + markdown_rate.size * 4 + B * 4
        + sum(int(v.size) * v.dtype.itemsize for v in params.values()))

    return pl.pallas_call(
        encoder_head_kernel,
        out_shape=jax.ShapeDtypeStruct((B, 1), jnp.float32),
        grid_spec=grid_spec,
        compiler_params=pltpu.CompilerParams(
            dimension_semantics=("parallel",),
            vmem_limit_bytes=_VMEM_LIMIT_BYTES,
        ),
        cost_estimate=pl.CostEstimate(
            flops=int(flops),
            transcendentals=int(transcendentals),
            bytes_accessed=bytes_accessed,
        ),
    )(ids.astype(jnp.int32), table3, attn_bias, rate,
      params['wqkv'], params['bqkv'], params['wo'],
      params['w1'], params['b1'], params['w2'], params['vecs'])


def markdown_model_forward(ids, mask, markdown_rate, params):
    try:
        return _forward_impl(ids, mask, markdown_rate, params, True)
    except Exception:
        # pipeline_mode=pl.Buffered(1) not supported on this jax build -> default buffering.
        return _forward_impl(ids, mask, markdown_rate, params, False)


def init_params(key, vocab, hidden, ffn, std=0.02):
    f32, bf16 = jnp.float32, jnp.bfloat16
    ks = jax.random.split(key, 20)

    def nrm(k, shape, s=std):
        return jax.random.normal(k, shape, f32) * s

    emb_table = nrm(ks[0], (vocab, hidden))
    wq = nrm(ks[1], (hidden, hidden))
    wk = nrm(ks[2], (hidden, hidden))
    wv = nrm(ks[3], (hidden, hidden))
    wo = nrm(ks[4], (hidden, hidden))
    bq = nrm(ks[5], (hidden,))
    bk = nrm(ks[6], (hidden,))
    bv = nrm(ks[7], (hidden,))
    bo = nrm(ks[8], (hidden,))
    ln1_g = 1.0 + nrm(ks[9], (hidden,), 0.1)
    ln1_b = nrm(ks[10], (hidden,), 0.1)
    w1 = nrm(ks[11], (hidden, ffn))
    b1 = nrm(ks[12], (ffn,))
    w2 = nrm(ks[13], (ffn, hidden))
    b2 = nrm(ks[14], (hidden,))
    ln2_g = 1.0 + nrm(ks[15], (hidden,), 0.1)
    ln2_b = nrm(ks[16], (hidden,), 0.1)
    # top = nn.Linear(H + 1, 1): weight [1, H+1], bias [1]
    top_w = nrm(ks[17], (hidden + 1,))
    top_b = nrm(ks[18], ())

    # Fold the attention scale 1/sqrt(H) into the K projection (weights + bias).
    scale = hidden ** -0.5
    wk = wk * scale
    bk = bk * scale

    vecs = jnp.stack([bo, ln1_g, ln1_b, b2, ln2_g, ln2_b, top_w[:hidden],
                      jnp.zeros((hidden,), f32)], axis=0)          # [8, H]
    vecs = vecs.at[7, 0].set(top_w[hidden]).at[7, 1].set(top_b)

    return dict(
        emb_table=emb_table,                                       # [V, H] f32
        wqkv=jnp.concatenate([wq, wk, wv], axis=1).astype(bf16),   # [H, 3H] (K pre-scaled)
        bqkv=jnp.concatenate([bq, bk, bv])[None, :],               # [1, 3H] f32
        wo=wo.astype(bf16),
        w1=w1.astype(bf16),
        b1=b1[None, :],                                            # [1, F] f32
        w2=w2.astype(bf16),
        vecs=vecs,                                                 # [8, H] f32 packed
    )


def reference_forward(ids, mask, markdown_rate, params):
    """Pure-JAX reference matching the kernel's mixed-precision recipe."""
    f32, bf16 = jnp.float32, jnp.bfloat16
    H = params['wqkv'].shape[0]
    vecs = params['vecs']
    bo, ln1_g, ln1_b = vecs[0], vecs[1], vecs[2]
    b2, ln2_g, ln2_b = vecs[3], vecs[4], vecs[5]
    top_wh, top_wr, top_b = vecs[6], vecs[7, 0], vecs[7, 1]

    def mm(a, w):                      # bf16 matmul, f32 accumulation
        return jnp.einsum('bsk,kn->bsn', a.astype(bf16), w, preferred_element_type=f32)

    def layernorm(t, g, beta):
        mu = jnp.mean(t, axis=-1, keepdims=True)
        var = jnp.mean((t - mu) ** 2, axis=-1, keepdims=True)
        return (t - mu) * jax.lax.rsqrt(var + 1e-5) * g + beta

    x = jnp.take(params['emb_table'], ids, axis=0)          # f32 [B,S,H]
    m = mask.astype(f32)

    qkv = mm(x, params['wqkv']) + params['bqkv'][None]
    q, k, v = qkv[..., :H], qkv[..., H:2 * H], qkv[..., 2 * H:]
    s = jnp.einsum('bqh,bkh->bqk', q.astype(bf16), k.astype(bf16),
                   preferred_element_type=f32)               # scale folded into K
    s = s + ((1.0 - m) * (-1e9))[:, None, :]
    s = s - jnp.max(s, axis=-1, keepdims=True)
    p = jnp.exp(s)
    attn = p / jnp.sum(p, axis=-1, keepdims=True)
    ctx = jnp.einsum('bqk,bkh->bqh', attn.astype(bf16), v.astype(bf16),
                     preferred_element_type=f32)
    attn_out = mm(ctx, params['wo']) + bo
    h = layernorm(x + attn_out, ln1_g, ln1_b)
    ff = jax.nn.gelu(mm(h, params['w1']) + params['b1'][None], approximate=True)
    h2 = layernorm(h + mm(ff, params['w2']) + b2, ln2_g, ln2_b)
    cls = h2[:, 0, :]
    rate = markdown_rate.astype(f32)
    return jnp.sum(cls * top_wh[None, :], axis=-1, keepdims=True) + rate * top_wr + top_b


if __name__ == "__main__":
    B, S, H, F, VOCAB = 4, 8, 128, 256, 512

    key = jax.random.PRNGKey(0)
    k_ids, k_rate, k_params = jax.random.split(key, 3)

    ids = jax.random.randint(k_ids, (B, S), 0, VOCAB, dtype=jnp.int32)
    mask = jnp.ones((B, S), dtype=jnp.float32).at[:, S - 2:].set(0.0)   # pad last 2 tokens
    markdown_rate = jax.random.uniform(k_rate, (B, 1), dtype=jnp.float32)

    params = init_params(k_params, VOCAB, H, F)

    out = jax.block_until_ready(markdown_model_forward(ids, mask, markdown_rate, params))
    ref = reference_forward(ids, mask, markdown_rate, params)

    assert out.shape == (B, 1), out.shape
    assert jnp.allclose(out, ref, rtol=2e-2, atol=2e-2), (out, ref)
    print("KERNEL_OK")
</pallas_src>

<mosaic_0001>
module attributes {stable_mosaic.version = 11 : i64} {
  func.func @encoder_head_kernel(%arg0: i32, %arg1: memref<4x8xi32, #tpu.memory_space<smem>>, %arg2: memref<512x1x128xf32, #tpu.memory_space<vmem>>, %arg3: memref<4x8xf32, #tpu.memory_space<vmem>>, %arg4: memref<4x1xf32, #tpu.memory_space<vmem>>, %arg5: memref<128x384xbf16, #tpu.memory_space<vmem>>, %arg6: memref<1x384xf32, #tpu.memory_space<vmem>>, %arg7: memref<128x128xbf16, #tpu.memory_space<vmem>>, %arg8: memref<128x256xbf16, #tpu.memory_space<vmem>>, %arg9: memref<1x256xf32, #tpu.memory_space<vmem>>, %arg10: memref<256x128xbf16, #tpu.memory_space<vmem>>, %arg11: memref<8x128xf32, #tpu.memory_space<vmem>>, %arg12: memref<4x1xf32, #tpu.memory_space<vmem>>, %arg13: memref<32x128xf32, #tpu.memory_space<vmem>>) attributes {dimension_semantics = [#tpu.dimension_semantics<parallel>], iteration_bounds = array<i64: 1>, scalar_prefetch = 1 : i64, scratch_operands = 1 : i64, tpu.core_type = #tpu.core_type<tc>, window_params = [{pipeline_mode = #tpu.pipeline_mode<synchronous>, transform_indices = @transform_0, window_bounds = array<i64: 512, 1, 128>}, {transform_indices = @transform_1, window_bounds = array<i64: 4, 8>}, {transform_indices = @transform_2, window_bounds = array<i64: 4, 1>}, {pipeline_mode = #tpu.pipeline_mode<synchronous>, transform_indices = @transform_3, window_bounds = array<i64: 128, 384>}, {pipeline_mode = #tpu.pipeline_mode<synchronous>, transform_indices = @transform_4, window_bounds = array<i64: 1, 384>}, {pipeline_mode = #tpu.pipeline_mode<synchronous>, transform_indices = @transform_5, window_bounds = array<i64: 128, 128>}, {pipeline_mode = #tpu.pipeline_mode<synchronous>, transform_indices = @transform_6, window_bounds = array<i64: 128, 256>}, {pipeline_mode = #tpu.pipeline_mode<synchronous>, transform_indices = @transform_7, window_bounds = array<i64: 1, 256>}, {pipeline_mode = #tpu.pipeline_mode<synchronous>, transform_indices = @transform_8, window_bounds = array<i64: 256, 128>}, {pipeline_mode = #tpu.pipeline_mode<synchronous>, transform_indices = @transform_9, window_bounds = array<i64: 8, 128>}, {transform_indices = @transform_10, window_bounds = array<i64: 4, 1>}]} {
    %c4_i32 = arith.constant 4 : i32
    %0 = arith.muli %arg0, %c4_i32 : i32
    %c0_i32 = arith.constant 0 : i32
    %1 = arith.addi %0, %c0_i32 : i32
    %2 = arith.index_cast %1 : i32 to index
    %c0 = arith.constant 0 : index
    %3 = memref.load %arg1[%2, %c0] : memref<4x8xi32, #tpu.memory_space<smem>>
    %4 = arith.index_cast %3 : i32 to index
    %c0_0 = arith.constant 0 : index
    %c0_1 = arith.constant 0 : index
    %5 = vector.load %arg2[%4, %c0_0, %c0_1] : memref<512x1x128xf32, #tpu.memory_space<vmem>>, vector<1x1x128xf32>
    %6 = vector.shape_cast %5 : vector<1x1x128xf32> to vector<1x128xf32>
    %c0_2 = arith.constant 0 : index
    %c0_3 = arith.constant 0 : index
    %7 = vector.load %arg13[%c0_2, %c0_3] : memref<32x128xf32, #tpu.memory_space<vmem>>, vector<1x128xf32>
    tpu.vector_store %arg13[%c0_2, %c0_3], %6 {strides = array<i32>} : memref<32x128xf32, #tpu.memory_space<vmem>>, vector<1x128xf32>,
    %c4_i32_4 = arith.constant 4 : i32
    %8 = arith.muli %arg0, %c4_i32_4 : i32
    %c0_i32_5 = arith.constant 0 : i32
    %9 = arith.addi %8, %c0_i32_5 : i32
    %10 = arith.index_cast %9 : i32 to index
    %c1 = arith.constant 1 : index
    %11 = memref.load %arg1[%10, %c1] : memref<4x8xi32, #tpu.memory_space<smem>>
    %12 = arith.index_cast %11 : i32 to index
    %c0_6 = arith.constant 0 : index
    %c0_7 = arith.constant 0 : index
    %13 = vector.load %arg2[%12, %c0_6, %c0_7] : memref<512x1x128xf32, #tpu.memory_space<vmem>>, vector<1x1x128xf32>
    %14 = vector.shape_cast %13 : vector<1x1x128xf32> to vector<1x128xf32>
    %c1_8 = arith.constant 1 : index
    %c0_9 = arith.constant 0 : index
    %15 = vector.load %arg13[%c1_8, %c0_9] : memref<32x128xf32, #tpu.memory_space<vmem>>, vector<1x128xf32>
    tpu.vector_store %arg13[%c1_8, %c0_9], %14 {strides = array<i32>} : memref<32x128xf32, #tpu.memory_space<vmem>>, vector<1x128xf32>,
    %c4_i32_10 = arith.constant 4 : i32
    %16 = arith.muli %arg0, %c4_i32_10 : i32
    %c0_i32_11 = arith.constant 0 : i32
    %17 = arith.addi %16, %c0_i32_11 : i32
    %18 = arith.index_cast %17 : i32 to index
    %c2 = arith.constant 2 : index
    %19 = memref.load %arg1[%18, %c2] : memref<4x8xi32, #tpu.memory_space<smem>>
    %20 = arith.index_cast %19 : i32 to index
    %c0_12 = arith.constant 0 : index
    %c0_13 = arith.constant 0 : index
    %21 = vector.load %arg2[%20, %c0_12, %c0_13] : memref<512x1x128xf32, #tpu.memory_space<vmem>>, vector<1x1x128xf32>
    %22 = vector.shape_cast %21 : vector<1x1x128xf32> to vector<1x128xf32>
    %c2_14 = arith.constant 2 : index
    %c0_15 = arith.constant 0 : index
    %23 = vector.load %arg13[%c2_14, %c0_15] : memref<32x128xf32, #tpu.memory_space<vmem>>, vector<1x128xf32>
    tpu.vector_store %arg13[%c2_14, %c0_15], %22 {strides = array<i32>} : memref<32x128xf32, #tpu.memory_space<vmem>>, vector<1x128xf32>,
    %c4_i32_16 = arith.constant 4 : i32
    %24 = arith.muli %arg0, %c4_i32_16 : i32
    %c0_i32_17 = arith.constant 0 : i32
    %25 = arith.addi %24, %c0_i32_17 : i32
    %26 = arith.index_cast %25 : i32 to index
    %c3 = arith.constant 3 : index
    %27 = memref.load %arg1[%26, %c3] : memref<4x8xi32, #tpu.memory_space<smem>>
    %28 = arith.index_cast %27 : i32 to index
    %c0_18 = arith.constant 0 : index
    %c0_19 = arith.constant 0 : index
    %29 = vector.load %arg2[%28, %c0_18, %c0_19] : memref<512x1x128xf32, #tpu.memory_space<vmem>>, vector<1x1x128xf32>
    %30 = vector.shape_cast %29 : vector<1x1x128xf32> to vector<1x128xf32>
    %c3_20 = arith.constant 3 : index
    %c0_21 = arith.constant 0 : index
    %31 = vector.load %arg13[%c3_20, %c0_21] : memref<32x128xf32, #tpu.memory_space<vmem>>, vector<1x128xf32>
    tpu.vector_store %arg13[%c3_20, %c0_21], %30 {strides = array<i32>} : memref<32x128xf32, #tpu.memory_space<vmem>>, vector<1x128xf32>,
    %c4_i32_22 = arith.constant 4 : i32
    %32 = arith.muli %arg0, %c4_i32_22 : i32
    %c0_i32_23 = arith.constant 0 : i32
    %33 = arith.addi %32, %c0_i32_23 : i32
    %34 = arith.index_cast %33 : i32 to index
    %c4 = arith.constant 4 : index
    %35 = memref.load %arg1[%34, %c4] : memref<4x8xi32, #tpu.memory_space<smem>>
    %36 = arith.index_cast %35 : i32 to index
    %c0_24 = arith.constant 0 : index
    %c0_25 = arith.constant 0 : index
    %37 = vector.load %arg2[%36, %c0_24, %c0_25] : memref<512x1x128xf32, #tpu.memory_space<vmem>>, vector<1x1x128xf32>
    %38 = vector.shape_cast %37 : vector<1x1x128xf32> to vector<1x128xf32>
    %c4_26 = arith.constant 4 : index
    %c0_27 = arith.constant 0 : index
    %39 = vector.load %arg13[%c4_26, %c0_27] : memref<32x128xf32, #tpu.memory_space<vmem>>, vector<1x128xf32>
    tpu.vector_store %arg13[%c4_26, %c0_27], %38 {strides = array<i32>} : memref<32x128xf32, #tpu.memory_space<vmem>>, vector<1x128xf32>,
    %c4_i32_28 = arith.constant 4 : i32
    %40 = arith.muli %arg0, %c4_i32_28 : i32
    %c0_i32_29 = arith.constant 0 : i32
    %41 = arith.addi %40, %c0_i32_29 : i32
    %42 = arith.index_cast %41 : i32 to index
    %c5 = arith.constant 5 : index
    %43 = memref.load %arg1[%42, %c5] : memref<4x8xi32, #tpu.memory_space<smem>>
    %44 = arith.index_cast %43 : i32 to index
    %c0_30 = arith.constant 0 : index
    %c0_31 = arith.constant 0 : index
    %45 = vector.load %arg2[%44, %c0_30, %c0_31] : memref<512x1x128xf32, #tpu.memory_space<vmem>>, vector<1x1x128xf32>
    %46 = vector.shape_cast %45 : vector<1x1x128xf32> to vector<1x128xf32>
    %c5_32 = arith.constant 5 : index
    %c0_33 = arith.constant 0 : index
    %47 = vector.load %arg13[%c5_32, %c0_33] : memref<32x128xf32, #tpu.memory_space<vmem>>, vector<1x128xf32>
    tpu.vector_store %arg13[%c5_32, %c0_33], %46 {strides = array<i32>} : memref<32x128xf32, #tpu.memory_space<vmem>>, vector<1x128xf32>,
    %c4_i32_34 = arith.constant 4 : i32
    %48 = arith.muli %arg0, %c4_i32_34 : i32
    %c0_i32_35 = arith.constant 0 : i32
    %49 = arith.addi %48, %c0_i32_35 : i32
    %50 = arith.index_cast %49 : i32 to index
    %c6 = arith.constant 6 : index
    %51 = memref.load %arg1[%50, %c6] : memref<4x8xi32, #tpu.memory_space<smem>>
    %52 = arith.index_cast %51 : i32 to index
    %c0_36 = arith.constant 0 : index
    %c0_37 = arith.constant 0 : index
    %53 = vector.load %arg2[%52, %c0_36, %c0_37] : memref<512x1x128xf32, #tpu.memory_space<vmem>>, vector<1x1x128xf32>
    %54 = vector.shape_cast %53 : vector<1x1x128xf32> to vector<1x128xf32>
    %c6_38 = arith.constant 6 : index
    %c0_39 = arith.constant 0 : index
    %55 = vector.load %arg13[%c6_38, %c0_39] : memref<32x128xf32, #tpu.memory_space<vmem>>, vector<1x128xf32>
    tpu.vector_store %arg13[%c6_38, %c0_39], %54 {strides = array<i32>} : memref<32x128xf32, #tpu.memory_space<vmem>>, vector<1x128xf32>,
    %c4_i32_40 = arith.constant 4 : i32
    %56 = arith.muli %arg0, %c4_i32_40 : i32
    %c0_i32_41 = arith.constant 0 : i32
    %57 = arith.addi %56, %c0_i32_41 : i32
    %58 = arith.index_cast %57 : i32 to index
    %c7 = arith.constant 7 : index
    %59 = memref.load %arg1[%58, %c7] : memref<4x8xi32, #tpu.memory_space<smem>>
    %60 = arith.index_cast %59 : i32 to index
    %c0_42 = arith.constant 0 : index
    %c0_43 = arith.constant 0 : index
    %61 = vector.load %arg2[%60, %c0_42, %c0_43] : memref<512x1x128xf32, #tpu.memory_space<vmem>>, vector<1x1x128xf32>
    %62 = vector.shape_cast %61 : vector<1x1x128xf32> to vector<1x128xf32>
    %c7_44 = arith.constant 7 : index
    %c0_45 = arith.constant 0 : index
    %63 = vector.load %arg13[%c7_44, %c0_45] : memref<32x128xf32, #tpu.memory_space<vmem>>, vector<1x128xf32>
    tpu.vector_store %arg13[%c7_44, %c0_45], %62 {strides = array<i32>} : memref<32x128xf32, #tpu.memory_space<vmem>>, vector<1x128xf32>,
    %c4_i32_46 = arith.constant 4 : i32
    %64 = arith.muli %arg0, %c4_i32_46 : i32
    %c1_i32 = arith.constant 1 : i32
    %65 = arith.addi %64, %c1_i32 : i32
    %66 = arith.index_cast %65 : i32 to index
    %c0_47 = arith.constant 0 : index
    %67 = memref.load %arg1[%66, %c0_47] : memref<4x8xi32, #tpu.memory_space<smem>>
    %68 = arith.index_cast %67 : i32 to index
    %c0_48 = arith.constant 0 : index
    %c0_49 = arith.constant 0 : index
    %69 = vector.load %arg2[%68, %c0_48, %c0_49] : memref<512x1x128xf32, #tpu.memory_space<vmem>>, vector<1x1x128xf32>
    %70 = vector.shape_cast %69 : vector<1x1x128xf32> to vector<1x128xf32>
    %c8 = arith.constant 8 : index
    %c0_50 = arith.constant 0 : index
    %71 = vector.load %arg13[%c8, %c0_50] : memref<32x128xf32, #tpu.memory_space<vmem>>, vector<1x128xf32>
    tpu.vector_store %arg13[%c8, %c0_50], %70 {strides = array<i32>} : memref<32x128xf32, #tpu.memory_space<vmem>>, vector<1x128xf32>,
    %c4_i32_51 = arith.constant 4 : i32
    %72 = arith.muli %arg0, %c4_i32_51 : i32
    %c1_i32_52 = arith.constant 1 : i32
    %73 = arith.addi %72, %c1_i32_52 : i32
    %74 = arith.index_cast %73 : i32 to index
    %c1_53 = arith.constant 1 : index
    %75 = memref.load %arg1[%74, %c1_53] : memref<4x8xi32, #tpu.memory_space<smem>>
    %76 = arith.index_cast %75 : i32 to index
    %c0_54 = arith.constant 0 : index
    %c0_55 = arith.constant 0 : index
    %77 = vector.load %arg2[%76, %c0_54, %c0_55] : memref<512x1x128xf32, #tpu.memory_space<vmem>>, vector<1x1x128xf32>
    %78 = vector.shape_cast %77 : vector<1x1x128xf32> to vector<1x128xf32>
    %c9 = arith.constant 9 : index
    %c0_56 = arith.constant 0 : index
    %79 = vector.load %arg13[%c9, %c0_56] : memref<32x128xf32, #tpu.memory_space<vmem>>, vector<1x128xf32>
    tpu.vector_store %arg13[%c9, %c0_56], %78 {strides = array<i32>} : memref<32x128xf32, #tpu.memory_space<vmem>>, vector<1x128xf32>,
    %c4_i32_57 = arith.constant 4 : i32
    %80 = arith.muli %arg0, %c4_i32_57 : i32
    %c1_i32_58 = arith.constant 1 : i32
    %81 = arith.addi %80, %c1_i32_58 : i32
    %82 = arith.index_cast %81 : i32 to index
    %c2_59 = arith.constant 2 : index
    %83 = memref.load %arg1[%82, %c2_59] : memref<4x8xi32, #tpu.memory_space<smem>>
    %84 = arith.index_cast %83 : i32 to index
    %c0_60 = arith.constant 0 : index
    %c0_61 = arith.constant 0 : index
    %85 = vector.load %arg2[%84, %c0_60, %c0_61] : memref<512x1x128xf32, #tpu.memory_space<vmem>>, vector<1x1x128xf32>
    %86 = vector.shape_cast %85 : vector<1x1x128xf32> to vector<1x128xf32>
    %c10 = arith.constant 10 : index
    %c0_62 = arith.constant 0 : index
    %87 = vector.load %arg13[%c10, %c0_62] : memref<32x128xf32, #tpu.memory_space<vmem>>, vector<1x128xf32>
    tpu.vector_store %arg13[%c10, %c0_62], %86 {strides = array<i32>} : memref<32x128xf32, #tpu.memory_space<vmem>>, vector<1x128xf32>,
    %c4_i32_63 = arith.constant 4 : i32
    %88 = arith.muli %arg0, %c4_i32_63 : i32
    %c1_i32_64 = arith.constant 1 : i32
    %89 = arith.addi %88, %c1_i32_64 : i32
    %90 = arith.index_cast %89 : i32 to index
    %c3_65 = arith.constant 3 : index
    %91 = memref.load %arg1[%90, %c3_65] : memref<4x8xi32, #tpu.memory_space<smem>>
    %92 = arith.index_cast %91 : i32 to index
    %c0_66 = arith.constant 0 : index
    %c0_67 = arith.constant 0 : index
    %93 = vector.load %arg2[%92, %c0_66, %c0_67] : memref<512x1x128xf32, #tpu.memory_space<vmem>>, vector<1x1x128xf32>
    %94 = vector.shape_cast %93 : vector<1x1x128xf32> to vector<1x128xf32>
    %c11 = arith.constant 11 : index
    %c0_68 = arith.constant 0 : index
    %95 = vector.load %arg13[%c11, %c0_68] : memref<32x128xf32, #tpu.memory_space<vmem>>, vector<1x128xf32>
    tpu.vector_store %arg13[%c11, %c0_68], %94 {strides = array<i32>} : memref<32x128xf32, #tpu.memory_space<vmem>>, vector<1x128xf32>,
    %c4_i32_69 = arith.constant 4 : i32
    %96 = arith.muli %arg0, %c4_i32_69 : i32
    %c1_i32_70 = arith.constant 1 : i32
    %97 = arith.addi %96, %c1_i32_70 : i32
    %98 = arith.index_cast %97 : i32 to index
    %c4_71 = arith.constant 4 : index
    %99 = memref.load %arg1[%98, %c4_71] : memref<4x8xi32, #tpu.memory_space<smem>>
    %100 = arith.index_cast %99 : i32 to index
    %c0_72 = arith.constant 0 : index
    %c0_73 = arith.constant 0 : index
    %101 = vector.load %arg2[%100, %c0_72, %c0_73] : memref<512x1x128xf32, #tpu.memory_space<vmem>>, vector<1x1x128xf32>
    %102 = vector.shape_cast %101 : vector<1x1x128xf32> to vector<1x128xf32>
    %c12 = arith.constant 12 : index
    %c0_74 = arith.constant 0 : index
    %103 = vector.load %arg13[%c12, %c0_74] : memref<32x128xf32, #tpu.memory_space<vmem>>, vector<1x128xf32>
    tpu.vector_store %arg13[%c12, %c0_74], %102 {strides = array<i32>} : memref<32x128xf32, #tpu.memory_space<vmem>>, vector<1x128xf32>,
    %c4_i32_75 = arith.constant 4 : i32
    %104 = arith.muli %arg0, %c4_i32_75 : i32
    %c1_i32_76 = arith.constant 1 : i32
    %105 = arith.addi %104, %c1_i32_76 : i32
    %106 = arith.index_cast %105 : i32 to index
    %c5_77 = arith.constant 5 : index
    %107 = memref.load %arg1[%106, %c5_77] : memref<4x8xi32, #tpu.memory_space<smem>>
    %108 = arith.index_cast %107 : i32 to index
    %c0_78 = arith.constant 0 : index
    %c0_79 = arith.constant 0 : index
    %109 = vector.load %arg2[%108, %c0_78, %c0_79] : memref<512x1x128xf32, #tpu.memory_space<vmem>>, vector<1x1x128xf32>
    %110 = vector.shape_cast %109 : vector<1x1x128xf32> to vector<1x128xf32>
    %c13 = arith.constant 13 : index
    %c0_80 = arith.constant 0 : index
    %111 = vector.load %arg13[%c13, %c0_80] : memref<32x128xf32, #tpu.memory_space<vmem>>, vector<1x128xf32>
    tpu.vector_store %arg13[%c13, %c0_80], %110 {strides = array<i32>} : memref<32x128xf32, #tpu.memory_space<vmem>>, vector<1x128xf32>,
    %c4_i32_81 = arith.constant 4 : i32
    %112 = arith.muli %arg0, %c4_i32_81 : i32
    %c1_i32_82 = arith.constant 1 : i32
    %113 = arith.addi %112, %c1_i32_82 : i32
    %114 = arith.index_cast %113 : i32 to index
    %c6_83 = arith.constant 6 : index
    %115 = memref.load %arg1[%114, %c6_83] : memref<4x8xi32, #tpu.memory_space<smem>>
    %116 = arith.index_cast %115 : i32 to index
    %c0_84 = arith.constant 0 : index
    %c0_85 = arith.constant 0 : index
    %117 = vector.load %arg2[%116, %c0_84, %c0_85] : memref<512x1x128xf32, #tpu.memory_space<vmem>>, vector<1x1x128xf32>
    %118 = vector.shape_cast %117 : vector<1x1x128xf32> to vector<1x128xf32>
    %c14 = arith.constant 14 : index
    %c0_86 = arith.constant 0 : index
    %119 = vector.load %arg13[%c14, %c0_86] : memref<32x128xf32, #tpu.memory_space<vmem>>, vector<1x128xf32>
    tpu.vector_store %arg13[%c14, %c0_86], %118 {strides = array<i32>} : memref<32x128xf32, #tpu.memory_space<vmem>>, vector<1x128xf32>,
    %c4_i32_87 = arith.constant 4 : i32
    %120 = arith.muli %arg0, %c4_i32_87 : i32
    %c1_i32_88 = arith.constant 1 : i32
    %121 = arith.addi %120, %c1_i32_88 : i32
    %122 = arith.index_cast %121 : i32 to index
    %c7_89 = arith.constant 7 : index
    %123 = memref.load %arg1[%122, %c7_89] : memref<4x8xi32, #tpu.memory_space<smem>>
    %124 = arith.index_cast %123 : i32 to index
    %c0_90 = arith.constant 0 : index
    %c0_91 = arith.constant 0 : index
    %125 = vector.load %arg2[%124, %c0_90, %c0_91] : memref<512x1x128xf32, #tpu.memory_space<vmem>>, vector<1x1x128xf32>
    %126 = vector.shape_cast %125 : vector<1x1x128xf32> to vector<1x128xf32>
    %c15 = arith.constant 15 : index
    %c0_92 = arith.constant 0 : index
    %127 = vector.load %arg13[%c15, %c0_92] : memref<32x128xf32, #tpu.memory_space<vmem>>, vector<1x128xf32>
    tpu.vector_store %arg13[%c15, %c0_92], %126 {strides = array<i32>} : memref<32x128xf32, #tpu.memory_space<vmem>>, vector<1x128xf32>,
    %c4_i32_93 = arith.constant 4 : i32
    %128 = arith.muli %arg0, %c4_i32_93 : i32
    %c2_i32 = arith.constant 2 : i32
    %129 = arith.addi %128, %c2_i32 : i32
    %130 = arith.index_cast %129 : i32 to index
    %c0_94 = arith.constant 0 : index
    %131 = memref.load %arg1[%130, %c0_94] : memref<4x8xi32, #tpu.memory_space<smem>>
    %132 = arith.index_cast %131 : i32 to index
    %c0_95 = arith.constant 0 : index
    %c0_96 = arith.constant 0 : index
    %133 = vector.load %arg2[%132, %c0_95, %c0_96] : memref<512x1x128xf32, #tpu.memory_space<vmem>>, vector<1x1x128xf32>
    %134 = vector.shape_cast %133 : vector<1x1x128xf32> to vector<1x128xf32>
    %c16 = arith.constant 16 : index
    %c0_97 = arith.constant 0 : index
    %135 = vector.load %arg13[%c16, %c0_97] : memref<32x128xf32, #tpu.memory_space<vmem>>, vector<1x128xf32>
    tpu.vector_store %arg13[%c16, %c0_97], %134 {strides = array<i32>} : memref<32x128xf32, #tpu.memory_space<vmem>>, vector<1x128xf32>,
    %c4_i32_98 = arith.constant 4 : i32
    %136 = arith.muli %arg0, %c4_i32_98 : i32
    %c2_i32_99 = arith.constant 2 : i32
    %137 = arith.addi %136, %c2_i32_99 : i32
    %138 = arith.index_cast %137 : i32 to index
    %c1_100 = arith.constant 1 : index
    %139 = memref.load %arg1[%138, %c1_100] : memref<4x8xi32, #tpu.memory_space<smem>>
    %140 = arith.index_cast %139 : i32 to index
    %c0_101 = arith.constant 0 : index
    %c0_102 = arith.constant 0 : index
    %141 = vector.load %arg2[%140, %c0_101, %c0_102] : memref<512x1x128xf32, #tpu.memory_space<vmem>>, vector<1x1x128xf32>
    %142 = vector.shape_cast %141 : vector<1x1x128xf32> to vector<1x128xf32>
    %c17 = arith.constant 17 : index
    %c0_103 = arith.constant 0 : index
    %143 = vector.load %arg13[%c17, %c0_103] : memref<32x128xf32, #tpu.memory_space<vmem>>, vector<1x128xf32>
    tpu.vector_store %arg13[%c17, %c0_103], %142 {strides = array<i32>} : memref<32x128xf32, #tpu.memory_space<vmem>>, vector<1x128xf32>,
    %c4_i32_104 = arith.constant 4 : i32
    %144 = arith.muli %arg0, %c4_i32_104 : i32
    %c2_i32_105 = arith.constant 2 : i32
    %145 = arith.addi %144, %c2_i32_105 : i32
    %146 = arith.index_cast %145 : i32 to index
    %c2_106 = arith.constant 2 : index
    %147 = memref.load %arg1[%146, %c2_106] : memref<4x8xi32, #tpu.memory_space<smem>>
    %148 = arith.index_cast %147 : i32 to index
    %c0_107 = arith.constant 0 : index
    %c0_108 = arith.constant 0 : index
    %149 = vector.load %arg2[%148, %c0_107, %c0_108] : memref<512x1x128xf32, #tpu.memory_space<vmem>>, vector<1x1x128xf32>
    %150 = vector.shape_cast %149 : vector<1x1x128xf32> to vector<1x128xf32>
    %c18 = arith.constant 18 : index
    %c0_109 = arith.constant 0 : index
    %151 = vector.load %arg13[%c18, %c0_109] : memref<32x128xf32, #tpu.memory_space<vmem>>, vector<1x128xf32>
    tpu.vector_store %arg13[%c18, %c0_109], %150 {strides = array<i32>} : memref<32x128xf32, #tpu.memory_space<vmem>>, vector<1x128xf32>,
    %c4_i32_110 = arith.constant 4 : i32
    %152 = arith.muli %arg0, %c4_i32_110 : i32
    %c2_i32_111 = arith.constant 2 : i32
    %153 = arith.addi %152, %c2_i32_111 : i32
    %154 = arith.index_cast %153 : i32 to index
    %c3_112 = arith.constant 3 : index
    %155 = memref.load %arg1[%154, %c3_112] : memref<4x8xi32, #tpu.memory_space<smem>>
    %156 = arith.index_cast %155 : i32 to index
    %c0_113 = arith.constant 0 : index
    %c0_114 = arith.constant 0 : index
    %157 = vector.load %arg2[%156, %c0_113, %c0_114] : memref<512x1x128xf32, #tpu.memory_space<vmem>>, vector<1x1x128xf32>
    %158 = vector.shape_cast %157 : vector<1x1x128xf32> to vector<1x128xf32>
    %c19 = arith.constant 19 : index
    %c0_115 = arith.constant 0 : index
    %159 = vector.load %arg13[%c19, %c0_115] : memref<32x128xf32, #tpu.memory_space<vmem>>, vector<1x128xf32>
    tpu.vector_store %arg13[%c19, %c0_115], %158 {strides = array<i32>} : memref<32x128xf32, #tpu.memory_space<vmem>>, vector<1x128xf32>,
    %c4_i32_116 = arith.constant 4 : i32
    %160 = arith.muli %arg0, %c4_i32_116 : i32
    %c2_i32_117 = arith.constant 2 : i32
    %161 = arith.addi %160, %c2_i32_117 : i32
    %162 = arith.index_cast %161 : i32 to index
    %c4_118 = arith.constant 4 : index
    %163 = memref.load %arg1[%162, %c4_118] : memref<4x8xi32, #tpu.memory_space<smem>>
    %164 = arith.index_cast %163 : i32 to index
    %c0_119 = arith.constant 0 : index
    %c0_120 = arith.constant 0 : index
    %165 = vector.load %arg2[%164, %c0_119, %c0_120] : memref<512x1x128xf32, #tpu.memory_space<vmem>>, vector<1x1x128xf32>
    %166 = vector.shape_cast %165 : vector<1x1x128xf32> to vector<1x128xf32>
    %c20 = arith.constant 20 : index
    %c0_121 = arith.constant 0 : index
    %167 = vector.load %arg13[%c20, %c0_121] : memref<32x128xf32, #tpu.memory_space<vmem>>, vector<1x128xf32>
    tpu.vector_store %arg13[%c20, %c0_121], %166 {strides = array<i32>} : memref<32x128xf32, #tpu.memory_space<vmem>>, vector<1x128xf32>,
    %c4_i32_122 = arith.constant 4 : i32
    %168 = arith.muli %arg0, %c4_i32_122 : i32
    %c2_i32_123 = arith.constant 2 : i32
    %169 = arith.addi %168, %c2_i32_123 : i32
    %170 = arith.index_cast %169 : i32 to index
    %c5_124 = arith.constant 5 : index
    %171 = memref.load %arg1[%170, %c5_124] : memref<4x8xi32, #tpu.memory_space<smem>>
    %172 = arith.index_cast %171 : i32 to index
    %c0_125 = arith.constant 0 : index
    %c0_126 = arith.constant 0 : index
    %173 = vector.load %arg2[%172, %c0_125, %c0_126] : memref<512x1x128xf32, #tpu.memory_space<vmem>>, vector<1x1x128xf32>
    %174 = vector.shape_cast %173 : vector<1x1x128xf32> to vector<1x128xf32>
    %c21 = arith.constant 21 : index
    %c0_127 = arith.constant 0 : index
    %175 = vector.load %arg13[%c21, %c0_127] : memref<32x128xf32, #tpu.memory_space<vmem>>, vector<1x128xf32>
    tpu.vector_store %arg13[%c21, %c0_127], %174 {strides = array<i32>} : memref<32x128xf32, #tpu.memory_space<vmem>>, vector<1x128xf32>,
    %c4_i32_128 = arith.constant 4 : i32
    %176 = arith.muli %arg0, %c4_i32_128 : i32
    %c2_i32_129 = arith.constant 2 : i32
    %177 = arith.addi %176, %c2_i32_129 : i32
    %178 = arith.index_cast %177 : i32 to index
    %c6_130 = arith.constant 6 : index
    %179 = memref.load %arg1[%178, %c6_130] : memref<4x8xi32, #tpu.memory_space<smem>>
    %180 = arith.index_cast %179 : i32 to index
    %c0_131 = arith.constant 0 : index
    %c0_132 = arith.constant 0 : index
    %181 = vector.load %arg2[%180, %c0_131, %c0_132] : memref<512x1x128xf32, #tpu.memory_space<vmem>>, vector<1x1x128xf32>
    %182 = vector.shape_cast %181 : vector<1x1x128xf32> to vector<1x128xf32>
    %c22 = arith.constant 22 : index
    %c0_133 = arith.constant 0 : index
    %183 = vector.load %arg13[%c22, %c0_133] : memref<32x128xf32, #tpu.memory_space<vmem>>, vector<1x128xf32>
    tpu.vector_store %arg13[%c22, %c0_133], %182 {strides = array<i32>} : memref<32x128xf32, #tpu.memory_space<vmem>>, vector<1x128xf32>,
    %c4_i32_134 = arith.constant 4 : i32
    %184 = arith.muli %arg0, %c4_i32_134 : i32
    %c2_i32_135 = arith.constant 2 : i32
    %185 = arith.addi %184, %c2_i32_135 : i32
    %186 = arith.index_cast %185 : i32 to index
    %c7_136 = arith.constant 7 : index
    %187 = memref.load %arg1[%186, %c7_136] : memref<4x8xi32, #tpu.memory_space<smem>>
    %188 = arith.index_cast %187 : i32 to index
    %c0_137 = arith.constant 0 : index
    %c0_138 = arith.constant 0 : index
    %189 = vector.load %arg2[%188, %c0_137, %c0_138] : memref<512x1x128xf32, #tpu.memory_space<vmem>>, vector<1x1x128xf32>
    %190 = vector.shape_cast %189 : vector<1x1x128xf32> to vector<1x128xf32>
    %c23 = arith.constant 23 : index
    %c0_139 = arith.constant 0 : index
    %191 = vector.load %arg13[%c23, %c0_139] : memref<32x128xf32, #tpu.memory_space<vmem>>, vector<1x128xf32>
    tpu.vector_store %arg13[%c23, %c0_139], %190 {strides = array<i32>} : memref<32x128xf32, #tpu.memory_space<vmem>>, vector<1x128xf32>,
    %c4_i32_140 = arith.constant 4 : i32
    %192 = arith.muli %arg0, %c4_i32_140 : i32
    %c3_i32 = arith.constant 3 : i32
    %193 = arith.addi %192, %c3_i32 : i32
    %194 = arith.index_cast %193 : i32 to index
    %c0_141 = arith.constant 0 : index
    %195 = memref.load %arg1[%194, %c0_141] : memref<4x8xi32, #tpu.memory_space<smem>>
    %196 = arith.index_cast %195 : i32 to index
    %c0_142 = arith.constant 0 : index
    %c0_143 = arith.constant 0 : index
    %197 = vector.load %arg2[%196, %c0_142, %c0_143] : memref<512x1x128xf32, #tpu.memory_space<vmem>>, vector<1x1x128xf32>
    %198 = vector.shape_cast %197 : vector<1x1x128xf32> to vector<1x128xf32>
    %c24 = arith.constant 24 : index
    %c0_144 = arith.constant 0 : index
    %199 = vector.load %arg13[%c24, %c0_144] : memref<32x128xf32, #tpu.memory_space<vmem>>, vector<1x128xf32>
    tpu.vector_store %arg13[%c24, %c0_144], %198 {strides = array<i32>} : memref<32x128xf32, #tpu.memory_space<vmem>>, vector<1x128xf32>,
    %c4_i32_145 = arith.constant 4 : i32
    %200 = arith.muli %arg0, %c4_i32_145 : i32
    %c3_i32_146 = arith.constant 3 : i32
    %201 = arith.addi %200, %c3_i32_146 : i32
    %202 = arith.index_cast %201 : i32 to index
    %c1_147 = arith.constant 1 : index
    %203 = memref.load %arg1[%202, %c1_147] : memref<4x8xi32, #tpu.memory_space<smem>>
    %204 = arith.index_cast %203 : i32 to index
    %c0_148 = arith.constant 0 : index
    %c0_149 = arith.constant 0 : index
    %205 = vector.load %arg2[%204, %c0_148, %c0_149] : memref<512x1x128xf32, #tpu.memory_space<vmem>>, vector<1x1x128xf32>
    %206 = vector.shape_cast %205 : vector<1x1x128xf32> to vector<1x128xf32>
    %c25 = arith.constant 25 : index
    %c0_150 = arith.constant 0 : index
    %207 = vector.load %arg13[%c25, %c0_150] : memref<32x128xf32, #tpu.memory_space<vmem>>, vector<1x128xf32>
    tpu.vector_store %arg13[%c25, %c0_150], %206 {strides = array<i32>} : memref<32x128xf32, #tpu.memory_space<vmem>>, vector<1x128xf32>,
    %c4_i32_151 = arith.constant 4 : i32
    %208 = arith.muli %arg0, %c4_i32_151 : i32
    %c3_i32_152 = arith.constant 3 : i32
    %209 = arith.addi %208, %c3_i32_152 : i32
    %210 = arith.index_cast %209 : i32 to index
    %c2_153 = arith.constant 2 : index
    %211 = memref.load %arg1[%210, %c2_153] : memref<4x8xi32, #tpu.memory_space<smem>>
    %212 = arith.index_cast %211 : i32 to index
    %c0_154 = arith.constant 0 : index
    %c0_155 = arith.constant 0 : index
    %213 = vector.load %arg2[%212, %c0_154, %c0_155] : memref<512x1x128xf32, #tpu.memory_space<vmem>>, vector<1x1x128xf32>
    %214 = vector.shape_cast %213 : vector<1x1x128xf32> to vector<1x128xf32>
    %c26 = arith.constant 26 : index
    %c0_156 = arith.constant 0 : index
    %215 = vector.load %arg13[%c26, %c0_156] : memref<32x128xf32, #tpu.memory_space<vmem>>, vector<1x128xf32>
    tpu.vector_store %arg13[%c26, %c0_156], %214 {strides = array<i32>} : memref<32x128xf32, #tpu.memory_space<vmem>>, vector<1x128xf32>,
    %c4_i32_157 = arith.constant 4 : i32
    %216 = arith.muli %arg0, %c4_i32_157 : i32
    %c3_i32_158 = arith.constant 3 : i32
    %217 = arith.addi %216, %c3_i32_158 : i32
    %218 = arith.index_cast %217 : i32 to index
    %c3_159 = arith.constant 3 : index
    %219 = memref.load %arg1[%218, %c3_159] : memref<4x8xi32, #tpu.memory_space<smem>>
    %220 = arith.index_cast %219 : i32 to index
    %c0_160 = arith.constant 0 : index
    %c0_161 = arith.constant 0 : index
    %221 = vector.load %arg2[%220, %c0_160, %c0_161] : memref<512x1x128xf32, #tpu.memory_space<vmem>>, vector<1x1x128xf32>
    %222 = vector.shape_cast %221 : vector<1x1x128xf32> to vector<1x128xf32>
    %c27 = arith.constant 27 : index
    %c0_162 = arith.constant 0 : index
    %223 = vector.load %arg13[%c27, %c0_162] : memref<32x128xf32, #tpu.memory_space<vmem>>, vector<1x128xf32>
    tpu.vector_store %arg13[%c27, %c0_162], %222 {strides = array<i32>} : memref<32x128xf32, #tpu.memory_space<vmem>>, vector<1x128xf32>,
    %c4_i32_163 = arith.constant 4 : i32
    %224 = arith.muli %arg0, %c4_i32_163 : i32
    %c3_i32_164 = arith.constant 3 : i32
    %225 = arith.addi %224, %c3_i32_164 : i32
    %226 = arith.index_cast %225 : i32 to index
    %c4_165 = arith.constant 4 : index
    %227 = memref.load %arg1[%226, %c4_165] : memref<4x8xi32, #tpu.memory_space<smem>>
    %228 = arith.index_cast %227 : i32 to index
    %c0_166 = arith.constant 0 : index
    %c0_167 = arith.constant 0 : index
    %229 = vector.load %arg2[%228, %c0_166, %c0_167] : memref<512x1x128xf32, #tpu.memory_space<vmem>>, vector<1x1x128xf32>
    %230 = vector.shape_cast %229 : vector<1x1x128xf32> to vector<1x128xf32>
    %c28 = arith.constant 28 : index
    %c0_168 = arith.constant 0 : index
    %231 = vector.load %arg13[%c28, %c0_168] : memref<32x128xf32, #tpu.memory_space<vmem>>, vector<1x128xf32>
    tpu.vector_store %arg13[%c28, %c0_168], %230 {strides = array<i32>} : memref<32x128xf32, #tpu.memory_space<vmem>>, vector<1x128xf32>,
    %c4_i32_169 = arith.constant 4 : i32
    %232 = arith.muli %arg0, %c4_i32_169 : i32
    %c3_i32_170 = arith.constant 3 : i32
    %233 = arith.addi %232, %c3_i32_170 : i32
    %234 = arith.index_cast %233 : i32 to index
    %c5_171 = arith.constant 5 : index
    %235 = memref.load %arg1[%234, %c5_171] : memref<4x8xi32, #tpu.memory_space<smem>>
    %236 = arith.index_cast %235 : i32 to index
    %c0_172 = arith.constant 0 : index
    %c0_173 = arith.constant 0 : index
    %237 = vector.load %arg2[%236, %c0_172, %c0_173] : memref<512x1x128xf32, #tpu.memory_space<vmem>>, vector<1x1x128xf32>
    %238 = vector.shape_cast %237 : vector<1x1x128xf32> to vector<1x128xf32>
    %c29 = arith.constant 29 : index
    %c0_174 = arith.constant 0 : index
    %239 = vector.load %arg13[%c29, %c0_174] : memref<32x128xf32, #tpu.memory_space<vmem>>, vector<1x128xf32>
    tpu.vector_store %arg13[%c29, %c0_174], %238 {strides = array<i32>} : memref<32x128xf32, #tpu.memory_space<vmem>>, vector<1x128xf32>,
    %c4_i32_175 = arith.constant 4 : i32
    %240 = arith.muli %arg0, %c4_i32_175 : i32
    %c3_i32_176 = arith.constant 3 : i32
    %241 = arith.addi %240, %c3_i32_176 : i32
    %242 = arith.index_cast %241 : i32 to index
    %c6_177 = arith.constant 6 : index
    %243 = memref.load %arg1[%242, %c6_177] : memref<4x8xi32, #tpu.memory_space<smem>>
    %244 = arith.index_cast %243 : i32 to index
    %c0_178 = arith.constant 0 : index
    %c0_179 = arith.constant 0 : index
    %245 = vector.load %arg2[%244, %c0_178, %c0_179] : memref<512x1x128xf32, #tpu.memory_space<vmem>>, vector<1x1x128xf32>
    %246 = vector.shape_cast %245 : vector<1x1x128xf32> to vector<1x128xf32>
    %c30 = arith.constant 30 : index
    %c0_180 = arith.constant 0 : index
    %247 = vector.load %arg13[%c30, %c0_180] : memref<32x128xf32, #tpu.memory_space<vmem>>, vector<1x128xf32>
    tpu.vector_store %arg13[%c30, %c0_180], %246 {strides = array<i32>} : memref<32x128xf32, #tpu.memory_space<vmem>>, vector<1x128xf32>,
    %c4_i32_181 = arith.constant 4 : i32
    %248 = arith.muli %arg0, %c4_i32_181 : i32
    %c3_i32_182 = arith.constant 3 : i32
    %249 = arith.addi %248, %c3_i32_182 : i32
    %250 = arith.index_cast %249 : i32 to index
    %c7_183 = arith.constant 7 : index
    %251 = memref.load %arg1[%250, %c7_183] : memref<4x8xi32, #tpu.memory_space<smem>>
    %252 = arith.index_cast %251 : i32 to index
    %c0_184 = arith.constant 0 : index
    %c0_185 = arith.constant 0 : index
    %253 = vector.load %arg2[%252, %c0_184, %c0_185] : memref<512x1x128xf32, #tpu.memory_space<vmem>>, vector<1x1x128xf32>
    %254 = vector.shape_cast %253 : vector<1x1x128xf32> to vector<1x128xf32>
    %c31 = arith.constant 31 : index
    %c0_186 = arith.constant 0 : index
    %255 = vector.load %arg13[%c31, %c0_186] : memref<32x128xf32, #tpu.memory_space<vmem>>, vector<1x128xf32>
    tpu.vector_store %arg13[%c31, %c0_186], %254 {strides = array<i32>} : memref<32x128xf32, #tpu.memory_space<vmem>>, vector<1x128xf32>,
    %c0_187 = arith.constant 0 : index
    %c0_188 = arith.constant 0 : index
    %256 = vector.load %arg13[%c0_187, %c0_188] : memref<32x128xf32, #tpu.memory_space<vmem>>, vector<32x128xf32>
    %257 = arith.truncf %256 : vector<32x128xf32> to vector<32x128xbf16>
    %c0_189 = arith.constant 0 : index
    %c0_190 = arith.constant 0 : index
    %258 = vector.load %arg5[%c0_189, %c0_190] : memref<128x384xbf16, #tpu.memory_space<vmem>>, vector<128x384xbf16>
    %cst = arith.constant dense<0.000000e+00> : vector<32x384xf32>
    %259 = tpu.matmul %257, %258, %cst {dimension_numbers = #tpu.dot_dimension_numbers<[1], [0], [0], [1], [0, 0, 1, 1], [], []>} : vector<32x128xbf16>, vector<128x384xbf16>, vector<32x384xf32> -> vector<32x384xf32>
    %c0_191 = arith.constant 0 : index
    %c0_192 = arith.constant 0 : index
    %260 = vector.load %arg6[%c0_191, %c0_192] : memref<1x384xf32, #tpu.memory_space<vmem>>, vector<1x384xf32>
    %261 = vector.broadcast %260 : vector<1x384xf32> to vector<32x384xf32>
    %262 = arith.addf %259, %261 : vector<32x384xf32>
    %263 = vector.extract_strided_slice %262 {offsets = [0, 0], sizes = [32, 128], strides = [1, 1]} : vector<32x384xf32> to vector<32x128xf32>
    %264 = vector.extract_strided_slice %262 {offsets = [0, 128], sizes = [32, 128], strides = [1, 1]} : vector<32x384xf32> to vector<32x128xf32>
    %265 = vector.extract_strided_slice %262 {offsets = [0, 256], sizes = [32, 128], strides = [1, 1]} : vector<32x384xf32> to vector<32x128xf32>
    %266 = vector.extract_strided_slice %263 {offsets = [0, 0], sizes = [8, 128], strides = [1, 1]} : vector<32x128xf32> to vector<8x128xf32>
    %267 = arith.truncf %266 : vector<8x128xf32> to vector<8x128xbf16>
    %268 = vector.extract_strided_slice %264 {offsets = [0, 0], sizes = [8, 128], strides = [1, 1]} : vector<32x128xf32> to vector<8x128xf32>
    %269 = arith.truncf %268 : vector<8x128xf32> to vector<8x128xbf16>
    %270 = vector.extract_strided_slice %265 {offsets = [0, 0], sizes = [8, 128], strides = [1, 1]} : vector<32x128xf32> to vector<8x128xf32>
    %271 = arith.truncf %270 : vector<8x128xf32> to vector<8x128xbf16>
    "tpu.trace_start"() <{level = 10 : i32, message = "qh,kh->qk"}> : () -> ()
    %cst_193 = arith.constant dense<0.000000e+00> : vector<8x8xf32>
    %272 = tpu.matmul %267, %269, %cst_193 {dimension_numbers = #tpu.dot_dimension_numbers<[1], [1], [0], [0], [0, 0, 1, 0], [], []>} : vector<8x128xbf16>, vector<8x128xbf16>, vector<8x8xf32> -> vector<8x8xf32>
    "tpu.trace_stop"() : () -> ()
    %c0_194 = arith.constant 0 : index
    %c0_195 = arith.constant 0 : index
    %273 = vector.load %arg3[%c0_194, %c0_195] : memref<4x8xf32, #tpu.memory_space<vmem>>, vector<1x8xf32>
    %274 = vector.broadcast %273 : vector<1x8xf32> to vector<8x8xf32>
    %275 = arith.addf %272, %274 : vector<8x8xf32>
    %cst_196 = arith.constant dense<0xFF800000> : vector<8xf32>
    %276 = vector.multi_reduction <maximumf>, %275, %cst_196 [1] : vector<8x8xf32> to vector<8xf32>
    %277 = vector.shape_cast %276 : vector<8xf32> to vector<8x1xf32>
    %278 = vector.broadcast %277 : vector<8x1xf32> to vector<8x8xf32>
    %279 = arith.subf %275, %278 : vector<8x8xf32>
    %280 = math.exp %279 : vector<8x8xf32>
    %cst_197 = arith.constant dense<0.000000e+00> : vector<8xf32>
    %281 = vector.multi_reduction <add>, %280, %cst_197 [1] : vector<8x8xf32> to vector<8xf32>
    %282 = vector.shape_cast %281 : vector<8xf32> to vector<8x1xf32>
    %283 = tpu.reciprocal %282 {approx = true} : vector<8x1xf32> -> vector<8x1xf32>
    %284 = vector.broadcast %283 : vector<8x1xf32> to vector<8x8xf32>
    %285 = arith.mulf %280, %284 : vector<8x8xf32>
    %286 = arith.truncf %285 : vector<8x8xf32> to vector<8x8xbf16>
    %cst_198 = arith.constant dense<0.000000e+00> : vector<8x128xf32>
    %287 = tpu.matmul %286, %271, %cst_198 {dimension_numbers = #tpu.dot_dimension_numbers<[1], [0], [0], [1], [0, 0, 1, 1], [], []>} : vector<8x8xbf16>, vector<8x128xbf16>, vector<8x128xf32> -> vector<8x128xf32>
    %288 = vector.extract_strided_slice %263 {offsets = [8, 0], sizes = [8, 128], strides = [1, 1]} : vector<32x128xf32> to vector<8x128xf32>
    %289 = arith.truncf %288 : vector<8x128xf32> to vector<8x128xbf16>
    %290 = vector.extract_strided_slice %264 {offsets = [8, 0], sizes = [8, 128], strides = [1, 1]} : vector<32x128xf32> to vector<8x128xf32>
    %291 = arith.truncf %290 : vector<8x128xf32> to vector<8x128xbf16>
    %292 = vector.extract_strided_slice %265 {offsets = [8, 0], sizes = [8, 128], strides = [1, 1]} : vector<32x128xf32> to vector<8x128xf32>
    %293 = arith.truncf %292 : vector<8x128xf32> to vector<8x128xbf16>
    "tpu.trace_start"() <{level = 10 : i32, message = "qh,kh->qk"}> : () -> ()
    %cst_199 = arith.constant dense<0.000000e+00> : vector<8x8xf32>
    %294 = tpu.matmul %289, %291, %cst_199 {dimension_numbers = #tpu.dot_dimension_numbers<[1], [1], [0], [0], [0, 0, 1, 0], [], []>} : vector<8x128xbf16>, vector<8x128xbf16>, vector<8x8xf32> -> vector<8x8xf32>
    "tpu.trace_stop"() : () -> ()
    %c1_200 = arith.constant 1 : index
    %c0_201 = arith.constant 0 : index
    %295 = vector.load %arg3[%c1_200, %c0_201] : memref<4x8xf32, #tpu.memory_space<vmem>>, vector<1x8xf32>
    %296 = vector.broadcast %295 : vector<1x8xf32> to vector<8x8xf32>
    %297 = arith.addf %294, %296 : vector<8x8xf32>
    %cst_202 = arith.constant dense<0xFF800000> : vector<8xf32>
    %298 = vector.multi_reduction <maximumf>, %297, %cst_202 [1] : vector<8x8xf32> to vector<8xf32>
    %299 = vector.shape_cast %298 : vector<8xf32> to vector<8x1xf32>
    %300 = vector.broadcast %299 : vector<8x1xf32> to vector<8x8xf32>
    %301 = arith.subf %297, %300 : vector<8x8xf32>
    %302 = math.exp %301 : vector<8x8xf32>
    %cst_203 = arith.constant dense<0.000000e+00> : vector<8xf32>
    %303 = vector.multi_reduction <add>, %302, %cst_203 [1] : vector<8x8xf32> to vector<8xf32>
    %304 = vector.shape_cast %303 : vector<8xf32> to vector<8x1xf32>
    %305 = tpu.reciprocal %304 {approx = true} : vector<8x1xf32> -> vector<8x1xf32>
    %306 = vector.broadcast %305 : vector<8x1xf32> to vector<8x8xf32>
    %307 = arith.mulf %302, %306 : vector<8x8xf32>
    %308 = arith.truncf %307 : vector<8x8xf32> to vector<8x8xbf16>
    %cst_204 = arith.constant dense<0.000000e+00> : vector<8x128xf32>
    %309 = tpu.matmul %308, %293, %cst_204 {dimension_numbers = #tpu.dot_dimension_numbers<[1], [0], [0], [1], [0, 0, 1, 1], [], []>} : vector<8x8xbf16>, vector<8x128xbf16>, vector<8x128xf32> -> vector<8x128xf32>
    %310 = vector.extract_strided_slice %263 {offsets = [16, 0], sizes = [8, 128], strides = [1, 1]} : vector<32x128xf32> to vector<8x128xf32>
    %311 = arith.truncf %310 : vector<8x128xf32> to vector<8x128xbf16>
    %312 = vector.extract_strided_slice %264 {offsets = [16, 0], sizes = [8, 128], strides = [1, 1]} : vector<32x128xf32> to vector<8x128xf32>
    %313 = arith.truncf %312 : vector<8x128xf32> to vector<8x128xbf16>
    %314 = vector.extract_strided_slice %265 {offsets = [16, 0], sizes = [8, 128], strides = [1, 1]} : vector<32x128xf32> to vector<8x128xf32>
    %315 = arith.truncf %314 : vector<8x128xf32> to vector<8x128xbf16>
    "tpu.trace_start"() <{level = 10 : i32, message = "qh,kh->qk"}> : () -> ()
    %cst_205 = arith.constant dense<0.000000e+00> : vector<8x8xf32>
    %316 = tpu.matmul %311, %313, %cst_205 {dimension_numbers = #tpu.dot_dimension_numbers<[1], [1], [0], [0], [0, 0, 1, 0], [], []>} : vector<8x128xbf16>, vector<8x128xbf16>, vector<8x8xf32> -> vector<8x8xf32>
    "tpu.trace_stop"() : () -> ()
    %c2_206 = arith.constant 2 : index
    %c0_207 = arith.constant 0 : index
    %317 = vector.load %arg3[%c2_206, %c0_207] : memref<4x8xf32, #tpu.memory_space<vmem>>, vector<1x8xf32>
    %318 = vector.broadcast %317 : vector<1x8xf32> to vector<8x8xf32>
    %319 = arith.addf %316, %318 : vector<8x8xf32>
    %cst_208 = arith.constant dense<0xFF800000> : vector<8xf32>
    %320 = vector.multi_reduction <maximumf>, %319, %cst_208 [1] : vector<8x8xf32> to vector<8xf32>
    %321 = vector.shape_cast %320 : vector<8xf32> to vector<8x1xf32>
    %322 = vector.broadcast %321 : vector<8x1xf32> to vector<8x8xf32>
    %323 = arith.subf %319, %322 : vector<8x8xf32>
    %324 = math.exp %323 : vector<8x8xf32>
    %cst_209 = arith.constant dense<0.000000e+00> : vector<8xf32>
    %325 = vector.multi_reduction <add>, %324, %cst_209 [1] : vector<8x8xf32> to vector<8xf32>
    %326 = vector.shape_cast %325 : vector<8xf32> to vector<8x1xf32>
    %327 = tpu.reciprocal %326 {approx = true} : vector<8x1xf32> -> vector<8x1xf32>
    %328 = vector.broadcast %327 : vector<8x1xf32> to vector<8x8xf32>
    %329 = arith.mulf %324, %328 : vector<8x8xf32>
    %330 = arith.truncf %329 : vector<8x8xf32> to vector<8x8xbf16>
    %cst_210 = arith.constant dense<0.000000e+00> : vector<8x128xf32>
    %331 = tpu.matmul %330, %315, %cst_210 {dimension_numbers = #tpu.dot_dimension_numbers<[1], [0], [0], [1], [0, 0, 1, 1], [], []>} : vector<8x8xbf16>, vector<8x128xbf16>, vector<8x128xf32> -> vector<8x128xf32>
    %332 = vector.extract_strided_slice %263 {offsets = [24, 0], sizes = [8, 128], strides = [1, 1]} : vector<32x128xf32> to vector<8x128xf32>
    %333 = arith.truncf %332 : vector<8x128xf32> to vector<8x128xbf16>
    %334 = vector.extract_strided_slice %264 {offsets = [24, 0], sizes = [8, 128], strides = [1, 1]} : vector<32x128xf32> to vector<8x128xf32>
    %335 = arith.truncf %334 : vector<8x128xf32> to vector<8x128xbf16>
    %336 = vector.extract_strided_slice %265 {offsets = [24, 0], sizes = [8, 128], strides = [1, 1]} : vector<32x128xf32> to vector<8x128xf32>
    %337 = arith.truncf %336 : vector<8x128xf32> to vector<8x128xbf16>
    "tpu.trace_start"() <{level = 10 : i32, message = "qh,kh->qk"}> : () -> ()
    %cst_211 = arith.constant dense<0.000000e+00> : vector<8x8xf32>
    %338 = tpu.matmul %333, %335, %cst_211 {dimension_numbers = #tpu.dot_dimension_numbers<[1], [1], [0], [0], [0, 0, 1, 0], [], []>} : vector<8x128xbf16>, vector<8x128xbf16>, vector<8x8xf32> -> vector<8x8xf32>
    "tpu.trace_stop"() : () -> ()
    %c3_212 = arith.constant 3 : index
    %c0_213 = arith.constant 0 : index
    %339 = vector.load %arg3[%c3_212, %c0_213] : memref<4x8xf32, #tpu.memory_space<vmem>>, vector<1x8xf32>
    %340 = vector.broadcast %339 : vector<1x8xf32> to vector<8x8xf32>
    %341 = arith.addf %338, %340 : vector<8x8xf32>
    %cst_214 = arith.constant dense<0xFF800000> : vector<8xf32>
    %342 = vector.multi_reduction <maximumf>, %341, %cst_214 [1] : vector<8x8xf32> to vector<8xf32>
    %343 = vector.shape_cast %342 : vector<8xf32> to vector<8x1xf32>
    %344 = vector.broadcast %343 : vector<8x1xf32> to vector<8x8xf32>
    %345 = arith.subf %341, %344 : vector<8x8xf32>
    %346 = math.exp %345 : vector<8x8xf32>
    %cst_215 = arith.constant dense<0.000000e+00> : vector<8xf32>
    %347 = vector.multi_reduction <add>, %346, %cst_215 [1] : vector<8x8xf32> to vector<8xf32>
    %348 = vector.shape_cast %347 : vector<8xf32> to vector<8x1xf32>
    %349 = tpu.reciprocal %348 {approx = true} : vector<8x1xf32> -> vector<8x1xf32>
    %350 = vector.broadcast %349 : vector<8x1xf32> to vector<8x8xf32>
    %351 = arith.mulf %346, %350 : vector<8x8xf32>
    %352 = arith.truncf %351 : vector<8x8xf32> to vector<8x8xbf16>
    %cst_216 = arith.constant dense<0.000000e+00> : vector<8x128xf32>
    %353 = tpu.matmul %352, %337, %cst_216 {dimension_numbers = #tpu.dot_dimension_numbers<[1], [0], [0], [1], [0, 0, 1, 1], [], []>} : vector<8x8xbf16>, vector<8x128xbf16>, vector<8x128xf32> -> vector<8x128xf32>
    %354 = tpu.concatenate %287, %309, %331, %353 in 0 : vector<8x128xf32>, vector<8x128xf32>, vector<8x128xf32>, vector<8x128xf32> -> vector<32x128xf32>
    %355 = arith.truncf %354 : vector<32x128xf32> to vector<32x128xbf16>
    %c0_217 = arith.constant 0 : index
    %c0_218 = arith.constant 0 : index
    %356 = vector.load %arg7[%c0_217, %c0_218] : memref<128x128xbf16, #tpu.memory_space<vmem>>, vector<128x128xbf16>
    %cst_219 = arith.constant dense<0.000000e+00> : vector<32x128xf32>
    %357 = tpu.matmul %355, %356, %cst_219 {dimension_numbers = #tpu.dot_dimension_numbers<[1], [0], [0], [1], [0, 0, 1, 1], [], []>} : vector<32x128xbf16>, vector<128x128xbf16>, vector<32x128xf32> -> vector<32x128xf32>
    %c0_220 = arith.constant 0 : index
    %c0_221 = arith.constant 0 : index
    %358 = vector.load %arg11[%c0_220, %c0_221] : memref<8x128xf32, #tpu.memory_space<vmem>>, vector<1x128xf32>
    %359 = vector.broadcast %358 : vector<1x128xf32> to vector<32x128xf32>
    %360 = arith.addf %357, %359 : vector<32x128xf32>
    %361 = arith.addf %256, %360 : vector<32x128xf32>
    %c1_222 = arith.constant 1 : index
    %c0_223 = arith.constant 0 : index
    %362 = vector.load %arg11[%c1_222, %c0_223] : memref<8x128xf32, #tpu.memory_space<vmem>>, vector<1x128xf32>
    %c2_224 = arith.constant 2 : index
    %c0_225 = arith.constant 0 : index
    %363 = vector.load %arg11[%c2_224, %c0_225] : memref<8x128xf32, #tpu.memory_space<vmem>>, vector<1x128xf32>
    %cst_226 = arith.constant dense<0.000000e+00> : vector<32xf32>
    %364 = vector.multi_reduction <add>, %361, %cst_226 [1] : vector<32x128xf32> to vector<32xf32>
    %365 = vector.shape_cast %364 : vector<32xf32> to vector<32x1xf32>
    %cst_227 = arith.constant 1.280000e+02 : f32
    %366 = vector.broadcast %cst_227 : f32 to vector<32x1xf32>
    %367 = arith.divf %365, %366 : vector<32x1xf32>
    %368 = vector.broadcast %367 : vector<32x1xf32> to vector<32x128xf32>
    %369 = arith.subf %361, %368 : vector<32x128xf32>
    %370 = arith.mulf %369, %369 : vector<32x128xf32>
    %cst_228 = arith.constant dense<0.000000e+00> : vector<32xf32>
    %371 = vector.multi_reduction <add>, %370, %cst_228 [1] : vector<32x128xf32> to vector<32xf32>
    %372 = vector.shape_cast %371 : vector<32xf32> to vector<32x1xf32>
    %cst_229 = arith.constant 1.280000e+02 : f32
    %373 = vector.broadcast %cst_229 : f32 to vector<32x1xf32>
    %374 = arith.divf %372, %373 : vector<32x1xf32>
    %375 = vector.broadcast %367 : vector<32x1xf32> to vector<32x128xf32>
    %376 = arith.subf %361, %375 : vector<32x128xf32>
    %cst_230 = arith.constant 9.99999974E-6 : f32
    %377 = vector.broadcast %cst_230 : f32 to vector<32x1xf32>
    %378 = arith.addf %374, %377 : vector<32x1xf32>
    %379 = math.rsqrt %378 : vector<32x1xf32>
    %380 = vector.broadcast %379 : vector<32x1xf32> to vector<32x128xf32>
    %381 = arith.mulf %376, %380 : vector<32x128xf32>
    %382 = vector.broadcast %362 : vector<1x128xf32> to vector<32x128xf32>
    %383 = arith.mulf %381, %382 : vector<32x128xf32>
    %384 = vector.broadcast %363 : vector<1x128xf32> to vector<32x128xf32>
    %385 = arith.addf %383, %384 : vector<32x128xf32>
    %386 = arith.truncf %385 : vector<32x128xf32> to vector<32x128xbf16>
    %c0_231 = arith.constant 0 : index
    %c0_232 = arith.constant 0 : index
    %387 = vector.load %arg8[%c0_231, %c0_232] : memref<128x256xbf16, #tpu.memory_space<vmem>>, vector<128x256xbf16>
    %cst_233 = arith.constant dense<0.000000e+00> : vector<32x256xf32>
    %388 = tpu.matmul %386, %387, %cst_233 {dimension_numbers = #tpu.dot_dimension_numbers<[1], [0], [0], [1], [0, 0, 1, 1], [], []>} : vector<32x128xbf16>, vector<128x256xbf16>, vector<32x256xf32> -> vector<32x256xf32>
    %c0_234 = arith.constant 0 : index
    %c0_235 = arith.constant 0 : index
    %389 = vector.load %arg9[%c0_234, %c0_235] : memref<1x256xf32, #tpu.memory_space<vmem>>, vector<1x256xf32>
    %390 = vector.broadcast %389 : vector<1x256xf32> to vector<32x256xf32>
    %391 = arith.addf %388, %390 : vector<32x256xf32>
    %392 = arith.mulf %391, %391 : vector<32x256xf32>
    %393 = arith.mulf %391, %392 : vector<32x256xf32>
    %cst_236 = arith.constant 4.471500e-02 : f32
    %394 = vector.broadcast %cst_236 : f32 to vector<32x256xf32>
    %395 = arith.mulf %394, %393 : vector<32x256xf32>
    %396 = arith.addf %391, %395 : vector<32x256xf32>
    %cst_237 = arith.constant 0.797884583 : f32
    %397 = vector.broadcast %cst_237 : f32 to vector<32x256xf32>
    %398 = arith.mulf %397, %396 : vector<32x256xf32>
    %399 = math.tanh %398 : vector<32x256xf32>
    %cst_238 = arith.constant 1.000000e+00 : f32
    %400 = vector.broadcast %cst_238 : f32 to vector<32x256xf32>
    %401 = arith.addf %400, %399 : vector<32x256xf32>
    %cst_239 = arith.constant 5.000000e-01 : f32
    %402 = vector.broadcast %cst_239 : f32 to vector<32x256xf32>
    %403 = arith.mulf %402, %401 : vector<32x256xf32>
    %404 = arith.mulf %391, %403 : vector<32x256xf32>
    %405 = arith.truncf %404 : vector<32x256xf32> to vector<32x256xbf16>
    %c0_240 = arith.constant 0 : index
    %c0_241 = arith.constant 0 : index
    %406 = vector.load %arg10[%c0_240, %c0_241] : memref<256x128xbf16, #tpu.memory_space<vmem>>, vector<256x128xbf16>
    %cst_242 = arith.constant dense<0.000000e+00> : vector<32x128xf32>
    %407 = tpu.matmul %405, %406, %cst_242 {dimension_numbers = #tpu.dot_dimension_numbers<[1], [0], [0], [1], [0, 0, 1, 1], [], []>} : vector<32x256xbf16>, vector<256x128xbf16>, vector<32x128xf32> -> vector<32x128xf32>
    %c3_243 = arith.constant 3 : index
    %c0_244 = arith.constant 0 : index
    %408 = vector.load %arg11[%c3_243, %c0_244] : memref<8x128xf32, #tpu.memory_space<vmem>>, vector<1x128xf32>
    %409 = vector.broadcast %408 : vector<1x128xf32> to vector<32x128xf32>
    %410 = arith.addf %407, %409 : vector<32x128xf32>
    %411 = arith.addf %385, %410 : vector<32x128xf32>
    %c4_245 = arith.constant 4 : index
    %c0_246 = arith.constant 0 : index
    %412 = vector.load %arg11[%c4_245, %c0_246] : memref<8x128xf32, #tpu.memory_space<vmem>>, vector<1x128xf32>
    %c5_247 = arith.constant 5 : index
    %c0_248 = arith.constant 0 : index
    %413 = vector.load %arg11[%c5_247, %c0_248] : memref<8x128xf32, #tpu.memory_space<vmem>>, vector<1x128xf32>
    %cst_249 = arith.constant dense<0.000000e+00> : vector<32xf32>
    %414 = vector.multi_reduction <add>, %411, %cst_249 [1] : vector<32x128xf32> to vector<32xf32>
    %415 = vector.shape_cast %414 : vector<32xf32> to vector<32x1xf32>
    %cst_250 = arith.constant 1.280000e+02 : f32
    %416 = vector.broadcast %cst_250 : f32 to vector<32x1xf32>
    %417 = arith.divf %415, %416 : vector<32x1xf32>
    %418 = vector.broadcast %417 : vector<32x1xf32> to vector<32x128xf32>
    %419 = arith.subf %411, %418 : vector<32x128xf32>
    %420 = arith.mulf %419, %419 : vector<32x128xf32>
    %cst_251 = arith.constant dense<0.000000e+00> : vector<32xf32>
    %421 = vector.multi_reduction <add>, %420, %cst_251 [1] : vector<32x128xf32> to vector<32xf32>
    %422 = vector.shape_cast %421 : vector<32xf32> to vector<32x1xf32>
    %cst_252 = arith.constant 1.280000e+02 : f32
    %423 = vector.broadcast %cst_252 : f32 to vector<32x1xf32>
    %424 = arith.divf %422, %423 : vector<32x1xf32>
    %425 = vector.broadcast %417 : vector<32x1xf32> to vector<32x128xf32>
    %426 = arith.subf %411, %425 : vector<32x128xf32>
    %cst_253 = arith.constant 9.99999974E-6 : f32
    %427 = vector.broadcast %cst_253 : f32 to vector<32x1xf32>
    %428 = arith.addf %424, %427 : vector<32x1xf32>
    %429 = math.rsqrt %428 : vector<32x1xf32>
    %430 = vector.broadcast %429 : vector<32x1xf32> to vector<32x128xf32>
    %431 = arith.mulf %426, %430 : vector<32x128xf32>
    %432 = vector.broadcast %412 : vector<1x128xf32> to vector<32x128xf32>
    %433 = arith.mulf %431, %432 : vector<32x128xf32>
    %434 = vector.broadcast %413 : vector<1x128xf32> to vector<32x128xf32>
    %435 = arith.addf %433, %434 : vector<32x128xf32>
    %436 = vector.extract_strided_slice %435 {offsets = [0, 0], sizes = [1, 128], strides = [1, 1]} : vector<32x128xf32> to vector<1x128xf32>
    %437 = vector.extract_strided_slice %435 {offsets = [8, 0], sizes = [1, 128], strides = [1, 1]} : vector<32x128xf32> to vector<1x128xf32>
    %438 = vector.extract_strided_slice %435 {offsets = [16, 0], sizes = [1, 128], strides = [1, 1]} : vector<32x128xf32> to vector<1x128xf32>
    %439 = vector.extract_strided_slice %435 {offsets = [24, 0], sizes = [1, 128], strides = [1, 1]} : vector<32x128xf32> to vector<1x128xf32>
    %440 = tpu.concatenate %436, %437, %438, %439 in 0 : vector<1x128xf32>, vector<1x128xf32>, vector<1x128xf32>, vector<1x128xf32> -> vector<4x128xf32>
    %c6_254 = arith.constant 6 : index
    %c0_255 = arith.constant 0 : index
    %441 = vector.load %arg11[%c6_254, %c0_255] : memref<8x128xf32, #tpu.memory_space<vmem>>, vector<1x128xf32>
    %442 = vector.broadcast %441 : vector<1x128xf32> to vector<4x128xf32>
    %443 = arith.mulf %440, %442 : vector<4x128xf32>
    %cst_256 = arith.constant dense<0.000000e+00> : vector<4xf32>
    %444 = vector.multi_reduction <add>, %443, %cst_256 [1] : vector<4x128xf32> to vector<4xf32>
    %445 = vector.shape_cast %444 : vector<4xf32> to vector<4x1xf32>
    %c7_257 = arith.constant 7 : index
    %c0_258 = arith.constant 0 : index
    %446 = vector.load %arg11[%c7_257, %c0_258] : memref<8x128xf32, #tpu.memory_space<vmem>>, vector<1x1xf32>
    %c7_259 = arith.constant 7 : index
    %c1_260 = arith.constant 1 : index
    %447 = vector.load %arg11[%c7_259, %c1_260] : memref<8x128xf32, #tpu.memory_space<vmem>>, vector<1x1xf32>
    %c0_261 = arith.constant 0 : index
    %c0_262 = arith.constant 0 : index
    %448 = vector.load %arg4[%c0_261, %c0_262] : memref<4x1xf32, #tpu.memory_space<vmem>>, vector<4x1xf32>
    %449 = vector.broadcast %446 : vector<1x1xf32> to vector<4x1xf32>
    %450 = arith.mulf %448, %449 : vector<4x1xf32>
    %451 = arith.addf %445, %450 : vector<4x1xf32>
    %452 = vector.broadcast %447 : vector<1x1xf32> to vector<4x1xf32>
    %453 = arith.addf %451, %452 : vector<4x1xf32>
    %c0_263 = arith.constant 0 : index
    %c0_264 = arith.constant 0 : index
    %454 = vector.load %arg12[%c0_263, %c0_264] : memref<4x1xf32, #tpu.memory_space<vmem>>, vector<4x1xf32>
    tpu.vector_store %arg12[%c0_263, %c0_264], %453 {strides = array<i32>} : memref<4x1xf32, #tpu.memory_space<vmem>>, vector<4x1xf32>,
    return
  }
  func.func @transform_0(%arg0: i32, %arg1: memref<4x8xi32, #tpu.memory_space<smem>>) -> (i32, i32, i32) {
    %c0_i32 = arith.constant 0 : i32
    %c0_i32_0 = arith.constant 0 : i32
    %c0_i32_1 = arith.constant 0 : i32
    %c0_i32_2 = arith.constant 0 : i32
    return %c0_i32, %c0_i32_0, %c0_i32_1 : i32, i32, i32
  }
  func.func @transform_1(%arg0: i32, %arg1: memref<4x8xi32, #tpu.memory_space<smem>>) -> (i32, i32) {
    %c0_i32 = arith.constant 0 : i32
    %c0_i32_0 = arith.constant 0 : i32
    return %arg0, %c0_i32 : i32, i32
  }
  func.func @transform_2(%arg0: i32, %arg1: memref<4x8xi32, #tpu.memory_space<smem>>) -> (i32, i32) {
    %c0_i32 = arith.constant 0 : i32
    %c0_i32_0 = arith.constant 0 : i32
    return %arg0, %c0_i32 : i32, i32
  }
  func.func @transform_3(%arg0: i32, %arg1: memref<4x8xi32, #tpu.memory_space<smem>>) -> (i32, i32) {
    %c0_i32 = arith.constant 0 : i32
    %c0_i32_0 = arith.constant 0 : i32
    %c0_i32_1 = arith.constant 0 : i32
    return %c0_i32, %c0_i32_0 : i32, i32
  }
  func.func @transform_4(%arg0: i32, %arg1: memref<4x8xi32, #tpu.memory_space<smem>>) -> (i32, i32) {
    %c0_i32 = arith.constant 0 : i32
    %c0_i32_0 = arith.constant 0 : i32
    %c0_i32_1 = arith.constant 0 : i32
    return %c0_i32, %c0_i32_0 : i32, i32
  }
  func.func @transform_5(%arg0: i32, %arg1: memref<4x8xi32, #tpu.memory_space<smem>>) -> (i32, i32) {
    %c0_i32 = arith.constant 0 : i32
    %c0_i32_0 = arith.constant 0 : i32
    %c0_i32_1 = arith.constant 0 : i32
    return %c0_i32, %c0_i32_0 : i32, i32
  }
  func.func @transform_6(%arg0: i32, %arg1: memref<4x8xi32, #tpu.memory_space<smem>>) -> (i32, i32) {
    %c0_i32 = arith.constant 0 : i32
    %c0_i32_0 = arith.constant 0 : i32
    %c0_i32_1 = arith.constant 0 : i32
    return %c0_i32, %c0_i32_0 : i32, i32
  }
  func.func @transform_7(%arg0: i32, %arg1: memref<4x8xi32, #tpu.memory_space<smem>>) -> (i32, i32) {
    %c0_i32 = arith.constant 0 : i32
    %c0_i32_0 = arith.constant 0 : i32
    %c0_i32_1 = arith.constant 0 : i32
    return %c0_i32, %c0_i32_0 : i32, i32
  }
  func.func @transform_8(%arg0: i32, %arg1: memref<4x8xi32, #tpu.memory_space<smem>>) -> (i32, i32) {
    %c0_i32 = arith.constant 0 : i32
    %c0_i32_0 = arith.constant 0 : i32
    %c0_i32_1 = arith.constant 0 : i32
    return %c0_i32, %c0_i32_0 : i32, i32
  }
  func.func @transform_9(%arg0: i32, %arg1: memref<4x8xi32, #tpu.memory_space<smem>>) -> (i32, i32) {
    %c0_i32 = arith.constant 0 : i32
    %c0_i32_0 = arith.constant 0 : i32
    %c0_i32_1 = arith.constant 0 : i32
    return %c0_i32, %c0_i32_0 : i32, i32
  }
  func.func @transform_10(%arg0: i32, %arg1: memref<4x8xi32, #tpu.memory_space<smem>>) -> (i32, i32) {
    %c0_i32 = arith.constant 0 : i32
    %c0_i32_0 = arith.constant 0 : i32
    return %arg0, %c0_i32 : i32, i32
  }
}

module attributes {stable_mosaic.version = 11 : i64} {
  func.func @encoder_head_kernel(%arg0: i32, %arg1: memref<4x8xi32, #tpu.memory_space<smem>>, %arg2: memref<512x1x128xf32, #tpu.memory_space<vmem>>, %arg3: memref<4x8xf32, #tpu.memory_space<vmem>>, %arg4: memref<4x1xf32, #tpu.memory_space<vmem>>, %arg5: memref<128x384xbf16, #tpu.memory_space<vmem>>, %arg6: memref<1x384xf32, #tpu.memory_space<vmem>>, %arg7: memref<128x128xbf16, #tpu.memory_space<vmem>>, %arg8: memref<128x256xbf16, #tpu.memory_space<vmem>>, %arg9: memref<1x256xf32, #tpu.memory_space<vmem>>, %arg10: memref<256x128xbf16, #tpu.memory_space<vmem>>, %arg11: memref<8x128xf32, #tpu.memory_space<vmem>>, %arg12: memref<4x1xf32, #tpu.memory_space<vmem>>, %arg13: memref<32x128xf32, #tpu.memory_space<vmem>>) attributes {dimension_semantics = [#tpu.dimension_semantics<parallel>], iteration_bounds = array<i64: 1>, scalar_prefetch = 1 : i64, scratch_operands = 1 : i64, tpu.core_type = #tpu.core_type<tc>, window_params = [{pipeline_mode = #tpu.pipeline_mode<synchronous>, transform_indices = @transform_0, window_bounds = array<i64: 512, 1, 128>}, {transform_indices = @transform_1, window_bounds = array<i64: 4, 8>}, {transform_indices = @transform_2, window_bounds = array<i64: 4, 1>}, {pipeline_mode = #tpu.pipeline_mode<synchronous>, transform_indices = @transform_3, window_bounds = array<i64: 128, 384>}, {pipeline_mode = #tpu.pipeline_mode<synchronous>, transform_indices = @transform_4, window_bounds = array<i64: 1, 384>}, {pipeline_mode = #tpu.pipeline_mode<synchronous>, transform_indices = @transform_5, window_bounds = array<i64: 128, 128>}, {pipeline_mode = #tpu.pipeline_mode<synchronous>, transform_indices = @transform_6, window_bounds = array<i64: 128, 256>}, {pipeline_mode = #tpu.pipeline_mode<synchronous>, transform_indices = @transform_7, window_bounds = array<i64: 1, 256>}, {pipeline_mode = #tpu.pipeline_mode<synchronous>, transform_indices = @transform_8, window_bounds = array<i64: 256, 128>}, {pipeline_mode = #tpu.pipeline_mode<synchronous>, transform_indices = @transform_9, window_bounds = array<i64: 8, 128>}, {transform_indices = @transform_10, window_bounds = array<i64: 4, 1>}]} {
    %c4_i32 = arith.constant 4 : i32
    %0 = arith.muli %arg0, %c4_i32 : i32
    %c0_i32 = arith.constant 0 : i32
    %1 = arith.addi %0, %c0_i32 : i32
    %2 = arith.index_cast %1 : i32 to index
    %c0 = arith.constant 0 : index
    %3 = memref.load %arg1[%2, %c0] : memref<4x8xi32, #tpu.memory_space<smem>>
    %4 = arith.index_cast %3 : i32 to index
    %c0_0 = arith.constant 0 : index
    %c0_1 = arith.constant 0 : index
    %5 = vector.load %arg2[%4, %c0_0, %c0_1] : memref<512x1x128xf32, #tpu.memory_space<vmem>>, vector<1x1x128xf32>
    %6 = vector.shape_cast %5 : vector<1x1x128xf32> to vector<1x128xf32>
    %c0_2 = arith.constant 0 : index
    %c0_3 = arith.constant 0 : index
    %7 = vector.load %arg13[%c0_2, %c0_3] : memref<32x128xf32, #tpu.memory_space<vmem>>, vector<1x128xf32>
    tpu.vector_store %arg13[%c0_2, %c0_3], %6 {strides = array<i32>} : memref<32x128xf32, #tpu.memory_space<vmem>>, vector<1x128xf32>,
    %c4_i32_4 = arith.constant 4 : i32
    %8 = arith.muli %arg0, %c4_i32_4 : i32
    %c0_i32_5 = arith.constant 0 : i32
    %9 = arith.addi %8, %c0_i32_5 : i32
    %10 = arith.index_cast %9 : i32 to index
    %c1 = arith.constant 1 : index
    %11 = memref.load %arg1[%10, %c1] : memref<4x8xi32, #tpu.memory_space<smem>>
    %12 = arith.index_cast %11 : i32 to index
    %c0_6 = arith.constant 0 : index
    %c0_7 = arith.constant 0 : index
    %13 = vector.load %arg2[%12, %c0_6, %c0_7] : memref<512x1x128xf32, #tpu.memory_space<vmem>>, vector<1x1x128xf32>
    %14 = vector.shape_cast %13 : vector<1x1x128xf32> to vector<1x128xf32>
    %c1_8 = arith.constant 1 : index
    %c0_9 = arith.constant 0 : index
    %15 = vector.load %arg13[%c1_8, %c0_9] : memref<32x128xf32, #tpu.memory_space<vmem>>, vector<1x128xf32>
    tpu.vector_store %arg13[%c1_8, %c0_9], %14 {strides = array<i32>} : memref<32x128xf32, #tpu.memory_space<vmem>>, vector<1x128xf32>,
    %c4_i32_10 = arith.constant 4 : i32
    %16 = arith.muli %arg0, %c4_i32_10 : i32
    %c0_i32_11 = arith.constant 0 : i32
    %17 = arith.addi %16, %c0_i32_11 : i32
    %18 = arith.index_cast %17 : i32 to index
    %c2 = arith.constant 2 : index
    %19 = memref.load %arg1[%18, %c2] : memref<4x8xi32, #tpu.memory_space<smem>>
    %20 = arith.index_cast %19 : i32 to index
    %c0_12 = arith.constant 0 : index
    %c0_13 = arith.constant 0 : index
    %21 = vector.load %arg2[%20, %c0_12, %c0_13] : memref<512x1x128xf32, #tpu.memory_space<vmem>>, vector<1x1x128xf32>
    %22 = vector.shape_cast %21 : vector<1x1x128xf32> to vector<1x128xf32>
    %c2_14 = arith.constant 2 : index
    %c0_15 = arith.constant 0 : index
    %23 = vector.load %arg13[%c2_14, %c0_15] : memref<32x128xf32, #tpu.memory_space<vmem>>, vector<1x128xf32>
    tpu.vector_store %arg13[%c2_14, %c0_15], %22 {strides = array<i32>} : memref<32x128xf32, #tpu.memory_space<vmem>>, vector<1x128xf32>,
    %c4_i32_16 = arith.constant 4 : i32
    %24 = arith.muli %arg0, %c4_i32_16 : i32
    %c0_i32_17 = arith.constant 0 : i32
    %25 = arith.addi %24, %c0_i32_17 : i32
    %26 = arith.index_cast %25 : i32 to index
    %c3 = arith.constant 3 : index
    %27 = memref.load %arg1[%26, %c3] : memref<4x8xi32, #tpu.memory_space<smem>>
    %28 = arith.index_cast %27 : i32 to index
    %c0_18 = arith.constant 0 : index
    %c0_19 = arith.constant 0 : index
    %29 = vector.load %arg2[%28, %c0_18, %c0_19] : memref<512x1x128xf32, #tpu.memory_space<vmem>>, vector<1x1x128xf32>
    %30 = vector.shape_cast %29 : vector<1x1x128xf32> to vector<1x128xf32>
    %c3_20 = arith.constant 3 : index
    %c0_21 = arith.constant 0 : index
    %31 = vector.load %arg13[%c3_20, %c0_21] : memref<32x128xf32, #tpu.memory_space<vmem>>, vector<1x128xf32>
    tpu.vector_store %arg13[%c3_20, %c0_21], %30 {strides = array<i32>} : memref<32x128xf32, #tpu.memory_space<vmem>>, vector<1x128xf32>,
    %c4_i32_22 = arith.constant 4 : i32
    %32 = arith.muli %arg0, %c4_i32_22 : i32
    %c0_i32_23 = arith.constant 0 : i32
    %33 = arith.addi %32, %c0_i32_23 : i32
    %34 = arith.index_cast %33 : i32 to index
    %c4 = arith.constant 4 : index
    %35 = memref.load %arg1[%34, %c4] : memref<4x8xi32, #tpu.memory_space<smem>>
    %36 = arith.index_cast %35 : i32 to index
    %c0_24 = arith.constant 0 : index
    %c0_25 = arith.constant 0 : index
    %37 = vector.load %arg2[%36, %c0_24, %c0_25] : memref<512x1x128xf32, #tpu.memory_space<vmem>>, vector<1x1x128xf32>
    %38 = vector.shape_cast %37 : vector<1x1x128xf32> to vector<1x128xf32>
    %c4_26 = arith.constant 4 : index
    %c0_27 = arith.constant 0 : index
    %39 = vector.load %arg13[%c4_26, %c0_27] : memref<32x128xf32, #tpu.memory_space<vmem>>, vector<1x128xf32>
    tpu.vector_store %arg13[%c4_26, %c0_27], %38 {strides = array<i32>} : memref<32x128xf32, #tpu.memory_space<vmem>>, vector<1x128xf32>,
    %c4_i32_28 = arith.constant 4 : i32
    %40 = arith.muli %arg0, %c4_i32_28 : i32
    %c0_i32_29 = arith.constant 0 : i32
    %41 = arith.addi %40, %c0_i32_29 : i32
    %42 = arith.index_cast %41 : i32 to index
    %c5 = arith.constant 5 : index
    %43 = memref.load %arg1[%42, %c5] : memref<4x8xi32, #tpu.memory_space<smem>>
    %44 = arith.index_cast %43 : i32 to index
    %c0_30 = arith.constant 0 : index
    %c0_31 = arith.constant 0 : index
    %45 = vector.load %arg2[%44, %c0_30, %c0_31] : memref<512x1x128xf32, #tpu.memory_space<vmem>>, vector<1x1x128xf32>
    %46 = vector.shape_cast %45 : vector<1x1x128xf32> to vector<1x128xf32>
    %c5_32 = arith.constant 5 : index
    %c0_33 = arith.constant 0 : index
    %47 = vector.load %arg13[%c5_32, %c0_33] : memref<32x128xf32, #tpu.memory_space<vmem>>, vector<1x128xf32>
    tpu.vector_store %arg13[%c5_32, %c0_33], %46 {strides = array<i32>} : memref<32x128xf32, #tpu.memory_space<vmem>>, vector<1x128xf32>,
    %c4_i32_34 = arith.constant 4 : i32
    %48 = arith.muli %arg0, %c4_i32_34 : i32
    %c0_i32_35 = arith.constant 0 : i32
    %49 = arith.addi %48, %c0_i32_35 : i32
    %50 = arith.index_cast %49 : i32 to index
    %c6 = arith.constant 6 : index
    %51 = memref.load %arg1[%50, %c6] : memref<4x8xi32, #tpu.memory_space<smem>>
    %52 = arith.index_cast %51 : i32 to index
    %c0_36 = arith.constant 0 : index
    %c0_37 = arith.constant 0 : index
    %53 = vector.load %arg2[%52, %c0_36, %c0_37] : memref<512x1x128xf32, #tpu.memory_space<vmem>>, vector<1x1x128xf32>
    %54 = vector.shape_cast %53 : vector<1x1x128xf32> to vector<1x128xf32>
    %c6_38 = arith.constant 6 : index
    %c0_39 = arith.constant 0 : index
    %55 = vector.load %arg13[%c6_38, %c0_39] : memref<32x128xf32, #tpu.memory_space<vmem>>, vector<1x128xf32>
    tpu.vector_store %arg13[%c6_38, %c0_39], %54 {strides = array<i32>} : memref<32x128xf32, #tpu.memory_space<vmem>>, vector<1x128xf32>,
    %c4_i32_40 = arith.constant 4 : i32
    %56 = arith.muli %arg0, %c4_i32_40 : i32
    %c0_i32_41 = arith.constant 0 : i32
    %57 = arith.addi %56, %c0_i32_41 : i32
    %58 = arith.index_cast %57 : i32 to index
    %c7 = arith.constant 7 : index
    %59 = memref.load %arg1[%58, %c7] : memref<4x8xi32, #tpu.memory_space<smem>>
    %60 = arith.index_cast %59 : i32 to index
    %c0_42 = arith.constant 0 : index
    %c0_43 = arith.constant 0 : index
    %61 = vector.load %arg2[%60, %c0_42, %c0_43] : memref<512x1x128xf32, #tpu.memory_space<vmem>>, vector<1x1x128xf32>
    %62 = vector.shape_cast %61 : vector<1x1x128xf32> to vector<1x128xf32>
    %c7_44 = arith.constant 7 : index
    %c0_45 = arith.constant 0 : index
    %63 = vector.load %arg13[%c7_44, %c0_45] : memref<32x128xf32, #tpu.memory_space<vmem>>, vector<1x128xf32>
    tpu.vector_store %arg13[%c7_44, %c0_45], %62 {strides = array<i32>} : memref<32x128xf32, #tpu.memory_space<vmem>>, vector<1x128xf32>,
    %c4_i32_46 = arith.constant 4 : i32
    %64 = arith.muli %arg0, %c4_i32_46 : i32
    %c1_i32 = arith.constant 1 : i32
    %65 = arith.addi %64, %c1_i32 : i32
    %66 = arith.index_cast %65 : i32 to index
    %c0_47 = arith.constant 0 : index
    %67 = memref.load %arg1[%66, %c0_47] : memref<4x8xi32, #tpu.memory_space<smem>>
    %68 = arith.index_cast %67 : i32 to index
    %c0_48 = arith.constant 0 : index
    %c0_49 = arith.constant 0 : index
    %69 = vector.load %arg2[%68, %c0_48, %c0_49] : memref<512x1x128xf32, #tpu.memory_space<vmem>>, vector<1x1x128xf32>
    %70 = vector.shape_cast %69 : vector<1x1x128xf32> to vector<1x128xf32>
    %c8 = arith.constant 8 : index
    %c0_50 = arith.constant 0 : index
    %71 = vector.load %arg13[%c8, %c0_50] : memref<32x128xf32, #tpu.memory_space<vmem>>, vector<1x128xf32>
    tpu.vector_store %arg13[%c8, %c0_50], %70 {strides = array<i32>} : memref<32x128xf32, #tpu.memory_space<vmem>>, vector<1x128xf32>,
    %c4_i32_51 = arith.constant 4 : i32
    %72 = arith.muli %arg0, %c4_i32_51 : i32
    %c1_i32_52 = arith.constant 1 : i32
    %73 = arith.addi %72, %c1_i32_52 : i32
    %74 = arith.index_cast %73 : i32 to index
    %c1_53 = arith.constant 1 : index
    %75 = memref.load %arg1[%74, %c1_53] : memref<4x8xi32, #tpu.memory_space<smem>>
    %76 = arith.index_cast %75 : i32 to index
    %c0_54 = arith.constant 0 : index
    %c0_55 = arith.constant 0 : index
    %77 = vector.load %arg2[%76, %c0_54, %c0_55] : memref<512x1x128xf32, #tpu.memory_space<vmem>>, vector<1x1x128xf32>
    %78 = vector.shape_cast %77 : vector<1x1x128xf32> to vector<1x128xf32>
    %c9 = arith.constant 9 : index
    %c0_56 = arith.constant 0 : index
    %79 = vector.load %arg13[%c9, %c0_56] : memref<32x128xf32, #tpu.memory_space<vmem>>, vector<1x128xf32>
    tpu.vector_store %arg13[%c9, %c0_56], %78 {strides = array<i32>} : memref<32x128xf32, #tpu.memory_space<vmem>>, vector<1x128xf32>,
    %c4_i32_57 = arith.constant 4 : i32
    %80 = arith.muli %arg0, %c4_i32_57 : i32
    %c1_i32_58 = arith.constant 1 : i32
    %81 = arith.addi %80, %c1_i32_58 : i32
    %82 = arith.index_cast %81 : i32 to index
    %c2_59 = arith.constant 2 : index
    %83 = memref.load %arg1[%82, %c2_59] : memref<4x8xi32, #tpu.memory_space<smem>>
    %84 = arith.index_cast %83 : i32 to index
    %c0_60 = arith.constant 0 : index
    %c0_61 = arith.constant 0 : index
    %85 = vector.load %arg2[%84, %c0_60, %c0_61] : memref<512x1x128xf32, #tpu.memory_space<vmem>>, vector<1x1x128xf32>
    %86 = vector.shape_cast %85 : vector<1x1x128xf32> to vector<1x128xf32>
    %c10 = arith.constant 10 : index
    %c0_62 = arith.constant 0 : index
    %87 = vector.load %arg13[%c10, %c0_62] : memref<32x128xf32, #tpu.memory_space<vmem>>, vector<1x128xf32>
    tpu.vector_store %arg13[%c10, %c0_62], %86 {strides = array<i32>} : memref<32x128xf32, #tpu.memory_space<vmem>>, vector<1x128xf32>,
    %c4_i32_63 = arith.constant 4 : i32
    %88 = arith.muli %arg0, %c4_i32_63 : i32
    %c1_i32_64 = arith.constant 1 : i32
    %89 = arith.addi %88, %c1_i32_64 : i32
    %90 = arith.index_cast %89 : i32 to index
    %c3_65 = arith.constant 3 : index
    %91 = memref.load %arg1[%90, %c3_65] : memref<4x8xi32, #tpu.memory_space<smem>>
    %92 = arith.index_cast %91 : i32 to index
    %c0_66 = arith.constant 0 : index
    %c0_67 = arith.constant 0 : index
    %93 = vector.load %arg2[%92, %c0_66, %c0_67] : memref<512x1x128xf32, #tpu.memory_space<vmem>>, vector<1x1x128xf32>
    %94 = vector.shape_cast %93 : vector<1x1x128xf32> to vector<1x128xf32>
    %c11 = arith.constant 11 : index
    %c0_68 = arith.constant 0 : index
    %95 = vector.load %arg13[%c11, %c0_68] : memref<32x128xf32, #tpu.memory_space<vmem>>, vector<1x128xf32>
    tpu.vector_store %arg13[%c11, %c0_68], %94 {strides = array<i32>} : memref<32x128xf32, #tpu.memory_space<vmem>>, vector<1x128xf32>,
    %c4_i32_69 = arith.constant 4 : i32
    %96 = arith.muli %arg0, %c4_i32_69 : i32
    %c1_i32_70 = arith.constant 1 : i32
    %97 = arith.addi %96, %c1_i32_70 : i32
    %98 = arith.index_cast %97 : i32 to index
    %c4_71 = arith.constant 4 : index
    %99 = memref.load %arg1[%98, %c4_71] : memref<4x8xi32, #tpu.memory_space<smem>>
    %100 = arith.index_cast %99 : i32 to index
    %c0_72 = arith.constant 0 : index
    %c0_73 = arith.constant 0 : index
    %101 = vector.load %arg2[%100, %c0_72, %c0_73] : memref<512x1x128xf32, #tpu.memory_space<vmem>>, vector<1x1x128xf32>
    %102 = vector.shape_cast %101 : vector<1x1x128xf32> to vector<1x128xf32>
    %c12 = arith.constant 12 : index
    %c0_74 = arith.constant 0 : index
    %103 = vector.load %arg13[%c12, %c0_74] : memref<32x128xf32, #tpu.memory_space<vmem>>, vector<1x128xf32>
    tpu.vector_store %arg13[%c12, %c0_74], %102 {strides = array<i32>} : memref<32x128xf32, #tpu.memory_space<vmem>>, vector<1x128xf32>,
    %c4_i32_75 = arith.constant 4 : i32
    %104 = arith.muli %arg0, %c4_i32_75 : i32
    %c1_i32_76 = arith.constant 1 : i32
    %105 = arith.addi %104, %c1_i32_76 : i32
    %106 = arith.index_cast %105 : i32 to index
    %c5_77 = arith.constant 5 : index
    %107 = memref.load %arg1[%106, %c5_77] : memref<4x8xi32, #tpu.memory_space<smem>>
    %108 = arith.index_cast %107 : i32 to index
    %c0_78 = arith.constant 0 : index
    %c0_79 = arith.constant 0 : index
    %109 = vector.load %arg2[%108, %c0_78, %c0_79] : memref<512x1x128xf32, #tpu.memory_space<vmem>>, vector<1x1x128xf32>
    %110 = vector.shape_cast %109 : vector<1x1x128xf32> to vector<1x128xf32>
    %c13 = arith.constant 13 : index
    %c0_80 = arith.constant 0 : index
    %111 = vector.load %arg13[%c13, %c0_80] : memref<32x128xf32, #tpu.memory_space<vmem>>, vector<1x128xf32>
    tpu.vector_store %arg13[%c13, %c0_80], %110 {strides = array<i32>} : memref<32x128xf32, #tpu.memory_space<vmem>>, vector<1x128xf32>,
    %c4_i32_81 = arith.constant 4 : i32
    %112 = arith.muli %arg0, %c4_i32_81 : i32
    %c1_i32_82 = arith.constant 1 : i32
    %113 = arith.addi %112, %c1_i32_82 : i32
    %114 = arith.index_cast %113 : i32 to index
    %c6_83 = arith.constant 6 : index
    %115 = memref.load %arg1[%114, %c6_83] : memref<4x8xi32, #tpu.memory_space<smem>>
    %116 = arith.index_cast %115 : i32 to index
    %c0_84 = arith.constant 0 : index
    %c0_85 = arith.constant 0 : index
    %117 = vector.load %arg2[%116, %c0_84, %c0_85] : memref<512x1x128xf32, #tpu.memory_space<vmem>>, vector<1x1x128xf32>
    %118 = vector.shape_cast %117 : vector<1x1x128xf32> to vector<1x128xf32>
    %c14 = arith.constant 14 : index
    %c0_86 = arith.constant 0 : index
    %119 = vector.load %arg13[%c14, %c0_86] : memref<32x128xf32, #tpu.memory_space<vmem>>, vector<1x128xf32>
    tpu.vector_store %arg13[%c14, %c0_86], %118 {strides = array<i32>} : memref<32x128xf32, #tpu.memory_space<vmem>>, vector<1x128xf32>,
    %c4_i32_87 = arith.constant 4 : i32
    %120 = arith.muli %arg0, %c4_i32_87 : i32
    %c1_i32_88 = arith.constant 1 : i32
    %121 = arith.addi %120, %c1_i32_88 : i32
    %122 = arith.index_cast %121 : i32 to index
    %c7_89 = arith.constant 7 : index
    %123 = memref.load %arg1[%122, %c7_89] : memref<4x8xi32, #tpu.memory_space<smem>>
    %124 = arith.index_cast %123 : i32 to index
    %c0_90 = arith.constant 0 : index
    %c0_91 = arith.constant 0 : index
    %125 = vector.load %arg2[%124, %c0_90, %c0_91] : memref<512x1x128xf32, #tpu.memory_space<vmem>>, vector<1x1x128xf32>
    %126 = vector.shape_cast %125 : vector<1x1x128xf32> to vector<1x128xf32>
    %c15 = arith.constant 15 : index
    %c0_92 = arith.constant 0 : index
    %127 = vector.load %arg13[%c15, %c0_92] : memref<32x128xf32, #tpu.memory_space<vmem>>, vector<1x128xf32>
    tpu.vector_store %arg13[%c15, %c0_92], %126 {strides = array<i32>} : memref<32x128xf32, #tpu.memory_space<vmem>>, vector<1x128xf32>,
    %c4_i32_93 = arith.constant 4 : i32
    %128 = arith.muli %arg0, %c4_i32_93 : i32
    %c2_i32 = arith.constant 2 : i32
    %129 = arith.addi %128, %c2_i32 : i32
    %130 = arith.index_cast %129 : i32 to index
    %c0_94 = arith.constant 0 : index
    %131 = memref.load %arg1[%130, %c0_94] : memref<4x8xi32, #tpu.memory_space<smem>>
    %132 = arith.index_cast %131 : i32 to index
    %c0_95 = arith.constant 0 : index
    %c0_96 = arith.constant 0 : index
    %133 = vector.load %arg2[%132, %c0_95, %c0_96] : memref<512x1x128xf32, #tpu.memory_space<vmem>>, vector<1x1x128xf32>
    %134 = vector.shape_cast %133 : vector<1x1x128xf32> to vector<1x128xf32>
    %c16 = arith.constant 16 : index
    %c0_97 = arith.constant 0 : index
    %135 = vector.load %arg13[%c16, %c0_97] : memref<32x128xf32, #tpu.memory_space<vmem>>, vector<1x128xf32>
    tpu.vector_store %arg13[%c16, %c0_97], %134 {strides = array<i32>} : memref<32x128xf32, #tpu.memory_space<vmem>>, vector<1x128xf32>,
    %c4_i32_98 = arith.constant 4 : i32
    %136 = arith.muli %arg0, %c4_i32_98 : i32
    %c2_i32_99 = arith.constant 2 : i32
    %137 = arith.addi %136, %c2_i32_99 : i32
    %138 = arith.index_cast %137 : i32 to index
    %c1_100 = arith.constant 1 : index
    %139 = memref.load %arg1[%138, %c1_100] : memref<4x8xi32, #tpu.memory_space<smem>>
    %140 = arith.index_cast %139 : i32 to index
    %c0_101 = arith.constant 0 : index
    %c0_102 = arith.constant 0 : index
    %141 = vector.load %arg2[%140, %c0_101, %c0_102] : memref<512x1x128xf32, #tpu.memory_space<vmem>>, vector<1x1x128xf32>
    %142 = vector.shape_cast %141 : vector<1x1x128xf32> to vector<1x128xf32>
    %c17 = arith.constant 17 : index
    %c0_103 = arith.constant 0 : index
    %143 = vector.load %arg13[%c17, %c0_103] : memref<32x128xf32, #tpu.memory_space<vmem>>, vector<1x128xf32>
    tpu.vector_store %arg13[%c17, %c0_103], %142 {strides = array<i32>} : memref<32x128xf32, #tpu.memory_space<vmem>>, vector<1x128xf32>,
    %c4_i32_104 = arith.constant 4 : i32
    %144 = arith.muli %arg0, %c4_i32_104 : i32
    %c2_i32_105 = arith.constant 2 : i32
    %145 = arith.addi %144, %c2_i32_105 : i32
    %146 = arith.index_cast %145 : i32 to index
    %c2_106 = arith.constant 2 : index
    %147 = memref.load %arg1[%146, %c2_106] : memref<4x8xi32, #tpu.memory_space<smem>>
    %148 = arith.index_cast %147 : i32 to index
    %c0_107 = arith.constant 0 : index
    %c0_108 = arith.constant 0 : index
    %149 = vector.load %arg2[%148, %c0_107, %c0_108] : memref<512x1x128xf32, #tpu.memory_space<vmem>>, vector<1x1x128xf32>
    %150 = vector.shape_cast %149 : vector<1x1x128xf32> to vector<1x128xf32>
    %c18 = arith.constant 18 : index
    %c0_109 = arith.constant 0 : index
    %151 = vector.load %arg13[%c18, %c0_109] : memref<32x128xf32, #tpu.memory_space<vmem>>, vector<1x128xf32>
    tpu.vector_store %arg13[%c18, %c0_109], %150 {strides = array<i32>} : memref<32x128xf32, #tpu.memory_space<vmem>>, vector<1x128xf32>,
    %c4_i32_110 = arith.constant 4 : i32
    %152 = arith.muli %arg0, %c4_i32_110 : i32
    %c2_i32_111 = arith.constant 2 : i32
    %153 = arith.addi %152, %c2_i32_111 : i32
    %154 = arith.index_cast %153 : i32 to index
    %c3_112 = arith.constant 3 : index
    %155 = memref.load %arg1[%154, %c3_112] : memref<4x8xi32, #tpu.memory_space<smem>>
    %156 = arith.index_cast %155 : i32 to index
    %c0_113 = arith.constant 0 : index
    %c0_114 = arith.constant 0 : index
    %157 = vector.load %arg2[%156, %c0_113, %c0_114] : memref<512x1x128xf32, #tpu.memory_space<vmem>>, vector<1x1x128xf32>
    %158 = vector.shape_cast %157 : vector<1x1x128xf32> to vector<1x128xf32>
    %c19 = arith.constant 19 : index
    %c0_115 = arith.constant 0 : index
    %159 = vector.load %arg13[%c19, %c0_115] : memref<32x128xf32, #tpu.memory_space<vmem>>, vector<1x128xf32>
    tpu.vector_store %arg13[%c19, %c0_115], %158 {strides = array<i32>} : memref<32x128xf32, #tpu.memory_space<vmem>>, vector<1x128xf32>,
    %c4_i32_116 = arith.constant 4 : i32
    %160 = arith.muli %arg0, %c4_i32_116 : i32
    %c2_i32_117 = arith.constant 2 : i32
    %161 = arith.addi %160, %c2_i32_117 : i32
    %162 = arith.index_cast %161 : i32 to index
    %c4_118 = arith.constant 4 : index
    %163 = memref.load %arg1[%162, %c4_118] : memref<4x8xi32, #tpu.memory_space<smem>>
    %164 = arith.index_cast %163 : i32 to index
    %c0_119 = arith.constant 0 : index
    %c0_120 = arith.constant 0 : index
    %165 = vector.load %arg2[%164, %c0_119, %c0_120] : memref<512x1x128xf32, #tpu.memory_space<vmem>>, vector<1x1x128xf32>
    %166 = vector.shape_cast %165 : vector<1x1x128xf32> to vector<1x128xf32>
    %c20 = arith.constant 20 : index
    %c0_121 = arith.constant 0 : index
    %167 = vector.load %arg13[%c20, %c0_121] : memref<32x128xf32, #tpu.memory_space<vmem>>, vector<1x128xf32>
    tpu.vector_store %arg13[%c20, %c0_121], %166 {strides = array<i32>} : memref<32x128xf32, #tpu.memory_space<vmem>>, vector<1x128xf32>,
    %c4_i32_122 = arith.constant 4 : i32
    %168 = arith.muli %arg0, %c4_i32_122 : i32
    %c2_i32_123 = arith.constant 2 : i32
    %169 = arith.addi %168, %c2_i32_123 : i32
    %170 = arith.index_cast %169 : i32 to index
    %c5_124 = arith.constant 5 : index
    %171 = memref.load %arg1[%170, %c5_124] : memref<4x8xi32, #tpu.memory_space<smem>>
    %172 = arith.index_cast %171 : i32 to index
    %c0_125 = arith.constant 0 : index
    %c0_126 = arith.constant 0 : index
    %173 = vector.load %arg2[%172, %c0_125, %c0_126] : memref<512x1x128xf32, #tpu.memory_space<vmem>>, vector<1x1x128xf32>
    %174 = vector.shape_cast %173 : vector<1x1x128xf32> to vector<1x128xf32>
    %c21 = arith.constant 21 : index
    %c0_127 = arith.constant 0 : index
    %175 = vector.load %arg13[%c21, %c0_127] : memref<32x128xf32, #tpu.memory_space<vmem>>, vector<1x128xf32>
    tpu.vector_store %arg13[%c21, %c0_127], %174 {strides = array<i32>} : memref<32x128xf32, #tpu.memory_space<vmem>>, vector<1x128xf32>,
    %c4_i32_128 = arith.constant 4 : i32
    %176 = arith.muli %arg0, %c4_i32_128 : i32
    %c2_i32_129 = arith.constant 2 : i32
    %177 = arith.addi %176, %c2_i32_129 : i32
    %178 = arith.index_cast %177 : i32 to index
    %c6_130 = arith.constant 6 : index
    %179 = memref.load %arg1[%178, %c6_130] : memref<4x8xi32, #tpu.memory_space<smem>>
    %180 = arith.index_cast %179 : i32 to index
    %c0_131 = arith.constant 0 : index
    %c0_132 = arith.constant 0 : index
    %181 = vector.load %arg2[%180, %c0_131, %c0_132] : memref<512x1x128xf32, #tpu.memory_space<vmem>>, vector<1x1x128xf32>
    %182 = vector.shape_cast %181 : vector<1x1x128xf32> to vector<1x128xf32>
    %c22 = arith.constant 22 : index
    %c0_133 = arith.constant 0 : index
    %183 = vector.load %arg13[%c22, %c0_133] : memref<32x128xf32, #tpu.memory_space<vmem>>, vector<1x128xf32>
    tpu.vector_store %arg13[%c22, %c0_133], %182 {strides = array<i32>} : memref<32x128xf32, #tpu.memory_space<vmem>>, vector<1x128xf32>,
    %c4_i32_134 = arith.constant 4 : i32
    %184 = arith.muli %arg0, %c4_i32_134 : i32
    %c2_i32_135 = arith.constant 2 : i32
    %185 = arith.addi %184, %c2_i32_135 : i32
    %186 = arith.index_cast %185 : i32 to index
    %c7_136 = arith.constant 7 : index
    %187 = memref.load %arg1[%186, %c7_136] : memref<4x8xi32, #tpu.memory_space<smem>>
    %188 = arith.index_cast %187 : i32 to index
    %c0_137 = arith.constant 0 : index
    %c0_138 = arith.constant 0 : index
    %189 = vector.load %arg2[%188, %c0_137, %c0_138] : memref<512x1x128xf32, #tpu.memory_space<vmem>>, vector<1x1x128xf32>
    %190 = vector.shape_cast %189 : vector<1x1x128xf32> to vector<1x128xf32>
    %c23 = arith.constant 23 : index
    %c0_139 = arith.constant 0 : index
    %191 = vector.load %arg13[%c23, %c0_139] : memref<32x128xf32, #tpu.memory_space<vmem>>, vector<1x128xf32>
    tpu.vector_store %arg13[%c23, %c0_139], %190 {strides = array<i32>} : memref<32x128xf32, #tpu.memory_space<vmem>>, vector<1x128xf32>,
    %c4_i32_140 = arith.constant 4 : i32
    %192 = arith.muli %arg0, %c4_i32_140 : i32
    %c3_i32 = arith.constant 3 : i32
    %193 = arith.addi %192, %c3_i32 : i32
    %194 = arith.index_cast %193 : i32 to index
    %c0_141 = arith.constant 0 : index
    %195 = memref.load %arg1[%194, %c0_141] : memref<4x8xi32, #tpu.memory_space<smem>>
    %196 = arith.index_cast %195 : i32 to index
    %c0_142 = arith.constant 0 : index
    %c0_143 = arith.constant 0 : index
    %197 = vector.load %arg2[%196, %c0_142, %c0_143] : memref<512x1x128xf32, #tpu.memory_space<vmem>>, vector<1x1x128xf32>
    %198 = vector.shape_cast %197 : vector<1x1x128xf32> to vector<1x128xf32>
    %c24 = arith.constant 24 : index
    %c0_144 = arith.constant 0 : index
    %199 = vector.load %arg13[%c24, %c0_144] : memref<32x128xf32, #tpu.memory_space<vmem>>, vector<1x128xf32>
    tpu.vector_store %arg13[%c24, %c0_144], %198 {strides = array<i32>} : memref<32x128xf32, #tpu.memory_space<vmem>>, vector<1x128xf32>,
    %c4_i32_145 = arith.constant 4 : i32
    %200 = arith.muli %arg0, %c4_i32_145 : i32
    %c3_i32_146 = arith.constant 3 : i32
    %201 = arith.addi %200, %c3_i32_146 : i32
    %202 = arith.index_cast %201 : i32 to index
    %c1_147 = arith.constant 1 : index
    %203 = memref.load %arg1[%202, %c1_147] : memref<4x8xi32, #tpu.memory_space<smem>>
    %204 = arith.index_cast %203 : i32 to index
    %c0_148 = arith.constant 0 : index
    %c0_149 = arith.constant 0 : index
    %205 = vector.load %arg2[%204, %c0_148, %c0_149] : memref<512x1x128xf32, #tpu.memory_space<vmem>>, vector<1x1x128xf32>
    %206 = vector.shape_cast %205 : vector<1x1x128xf32> to vector<1x128xf32>
    %c25 = arith.constant 25 : index
    %c0_150 = arith.constant 0 : index
    %207 = vector.load %arg13[%c25, %c0_150] : memref<32x128xf32, #tpu.memory_space<vmem>>, vector<1x128xf32>
    tpu.vector_store %arg13[%c25, %c0_150], %206 {strides = array<i32>} : memref<32x128xf32, #tpu.memory_space<vmem>>, vector<1x128xf32>,
    %c4_i32_151 = arith.constant 4 : i32
    %208 = arith.muli %arg0, %c4_i32_151 : i32
    %c3_i32_152 = arith.constant 3 : i32
    %209 = arith.addi %208, %c3_i32_152 : i32
    %210 = arith.index_cast %209 : i32 to index
    %c2_153 = arith.constant 2 : index
    %211 = memref.load %arg1[%210, %c2_153] : memref<4x8xi32, #tpu.memory_space<smem>>
    %212 = arith.index_cast %211 : i32 to index
    %c0_154 = arith.constant 0 : index
    %c0_155 = arith.constant 0 : index
    %213 = vector.load %arg2[%212, %c0_154, %c0_155] : memref<512x1x128xf32, #tpu.memory_space<vmem>>, vector<1x1x128xf32>
    %214 = vector.shape_cast %213 : vector<1x1x128xf32> to vector<1x128xf32>
    %c26 = arith.constant 26 : index
    %c0_156 = arith.constant 0 : index
    %215 = vector.load %arg13[%c26, %c0_156] : memref<32x128xf32, #tpu.memory_space<vmem>>, vector<1x128xf32>
    tpu.vector_store %arg13[%c26, %c0_156], %214 {strides = array<i32>} : memref<32x128xf32, #tpu.memory_space<vmem>>, vector<1x128xf32>,
    %c4_i32_157 = arith.constant 4 : i32
    %216 = arith.muli %arg0, %c4_i32_157 : i32
    %c3_i32_158 = arith.constant 3 : i32
    %217 = arith.addi %216, %c3_i32_158 : i32
    %218 = arith.index_cast %217 : i32 to index
    %c3_159 = arith.constant 3 : index
    %219 = memref.load %arg1[%218, %c3_159] : memref<4x8xi32, #tpu.memory_space<smem>>
    %220 = arith.index_cast %219 : i32 to index
    %c0_160 = arith.constant 0 : index
    %c0_161 = arith.constant 0 : index
    %221 = vector.load %arg2[%220, %c0_160, %c0_161] : memref<512x1x128xf32, #tpu.memory_space<vmem>>, vector<1x1x128xf32>
    %222 = vector.shape_cast %221 : vector<1x1x128xf32> to vector<1x128xf32>
    %c27 = arith.constant 27 : index
    %c0_162 = arith.constant 0 : index
    %223 = vector.load %arg13[%c27, %c0_162] : memref<32x128xf32, #tpu.memory_space<vmem>>, vector<1x128xf32>
    tpu.vector_store %arg13[%c27, %c0_162], %222 {strides = array<i32>} : memref<32x128xf32, #tpu.memory_space<vmem>>, vector<1x128xf32>,
    %c4_i32_163 = arith.constant 4 : i32
    %224 = arith.muli %arg0, %c4_i32_163 : i32
    %c3_i32_164 = arith.constant 3 : i32
    %225 = arith.addi %224, %c3_i32_164 : i32
    %226 = arith.index_cast %225 : i32 to index
    %c4_165 = arith.constant 4 : index
    %227 = memref.load %arg1[%226, %c4_165] : memref<4x8xi32, #tpu.memory_space<smem>>
    %228 = arith.index_cast %227 : i32 to index
    %c0_166 = arith.constant 0 : index
    %c0_167 = arith.constant 0 : index
    %229 = vector.load %arg2[%228, %c0_166, %c0_167] : memref<512x1x128xf32, #tpu.memory_space<vmem>>, vector<1x1x128xf32>
    %230 = vector.shape_cast %229 : vector<1x1x128xf32> to vector<1x128xf32>
    %c28 = arith.constant 28 : index
    %c0_168 = arith.constant 0 : index
    %231 = vector.load %arg13[%c28, %c0_168] : memref<32x128xf32, #tpu.memory_space<vmem>>, vector<1x128xf32>
    tpu.vector_store %arg13[%c28, %c0_168], %230 {strides = array<i32>} : memref<32x128xf32, #tpu.memory_space<vmem>>, vector<1x128xf32>,
    %c4_i32_169 = arith.constant 4 : i32
    %232 = arith.muli %arg0, %c4_i32_169 : i32
    %c3_i32_170 = arith.constant 3 : i32
    %233 = arith.addi %232, %c3_i32_170 : i32
    %234 = arith.index_cast %233 : i32 to index
    %c5_171 = arith.constant 5 : index
    %235 = memref.load %arg1[%234, %c5_171] : memref<4x8xi32, #tpu.memory_space<smem>>
    %236 = arith.index_cast %235 : i32 to index
    %c0_172 = arith.constant 0 : index
    %c0_173 = arith.constant 0 : index
    %237 = vector.load %arg2[%236, %c0_172, %c0_173] : memref<512x1x128xf32, #tpu.memory_space<vmem>>, vector<1x1x128xf32>
    %238 = vector.shape_cast %237 : vector<1x1x128xf32> to vector<1x128xf32>
    %c29 = arith.constant 29 : index
    %c0_174 = arith.constant 0 : index
    %239 = vector.load %arg13[%c29, %c0_174] : memref<32x128xf32, #tpu.memory_space<vmem>>, vector<1x128xf32>
    tpu.vector_store %arg13[%c29, %c0_174], %238 {strides = array<i32>} : memref<32x128xf32, #tpu.memory_space<vmem>>, vector<1x128xf32>,
    %c4_i32_175 = arith.constant 4 : i32
    %240 = arith.muli %arg0, %c4_i32_175 : i32
    %c3_i32_176 = arith.constant 3 : i32
    %241 = arith.addi %240, %c3_i32_176 : i32
    %242 = arith.index_cast %241 : i32 to index
    %c6_177 = arith.constant 6 : index
    %243 = memref.load %arg1[%242, %c6_177] : memref<4x8xi32, #tpu.memory_space<smem>>
    %244 = arith.index_cast %243 : i32 to index
    %c0_178 = arith.constant 0 : index
    %c0_179 = arith.constant 0 : index
    %245 = vector.load %arg2[%244, %c0_178, %c0_179] : memref<512x1x128xf32, #tpu.memory_space<vmem>>, vector<1x1x128xf32>
    %246 = vector.shape_cast %245 : vector<1x1x128xf32> to vector<1x128xf32>
    %c30 = arith.constant 30 : index
    %c0_180 = arith.constant 0 : index
    %247 = vector.load %arg13[%c30, %c0_180] : memref<32x128xf32, #tpu.memory_space<vmem>>, vector<1x128xf32>
    tpu.vector_store %arg13[%c30, %c0_180], %246 {strides = array<i32>} : memref<32x128xf32, #tpu.memory_space<vmem>>, vector<1x128xf32>,
    %c4_i32_181 = arith.constant 4 : i32
    %248 = arith.muli %arg0, %c4_i32_181 : i32
    %c3_i32_182 = arith.constant 3 : i32
    %249 = arith.addi %248, %c3_i32_182 : i32
    %250 = arith.index_cast %249 : i32 to index
    %c7_183 = arith.constant 7 : index
    %251 = memref.load %arg1[%250, %c7_183] : memref<4x8xi32, #tpu.memory_space<smem>>
    %252 = arith.index_cast %251 : i32 to index
    %c0_184 = arith.constant 0 : index
    %c0_185 = arith.constant 0 : index
    %253 = vector.load %arg2[%252, %c0_184, %c0_185] : memref<512x1x128xf32, #tpu.memory_space<vmem>>, vector<1x1x128xf32>
    %254 = vector.shape_cast %253 : vector<1x1x128xf32> to vector<1x128xf32>
    %c31 = arith.constant 31 : index
    %c0_186 = arith.constant 0 : index
    %255 = vector.load %arg13[%c31, %c0_186] : memref<32x128xf32, #tpu.memory_space<vmem>>, vector<1x128xf32>
    tpu.vector_store %arg13[%c31, %c0_186], %254 {strides = array<i32>} : memref<32x128xf32, #tpu.memory_space<vmem>>, vector<1x128xf32>,
    %c0_187 = arith.constant 0 : index
    %c0_188 = arith.constant 0 : index
    %256 = vector.load %arg13[%c0_187, %c0_188] : memref<32x128xf32, #tpu.memory_space<vmem>>, vector<32x128xf32>
    %257 = arith.truncf %256 : vector<32x128xf32> to vector<32x128xbf16>
    %c0_189 = arith.constant 0 : index
    %c0_190 = arith.constant 0 : index
    %258 = vector.load %arg5[%c0_189, %c0_190] : memref<128x384xbf16, #tpu.memory_space<vmem>>, vector<128x384xbf16>
    %cst = arith.constant dense<0.000000e+00> : vector<32x384xf32>
    %259 = tpu.matmul %257, %258, %cst {dimension_numbers = #tpu.dot_dimension_numbers<[1], [0], [0], [1], [0, 0, 1, 1], [], []>} : vector<32x128xbf16>, vector<128x384xbf16>, vector<32x384xf32> -> vector<32x384xf32>
    %c0_191 = arith.constant 0 : index
    %c0_192 = arith.constant 0 : index
    %260 = vector.load %arg6[%c0_191, %c0_192] : memref<1x384xf32, #tpu.memory_space<vmem>>, vector<1x384xf32>
    %261 = vector.broadcast %260 : vector<1x384xf32> to vector<32x384xf32>
    %262 = arith.addf %259, %261 : vector<32x384xf32>
    %263 = vector.extract_strided_slice %262 {offsets = [0, 0], sizes = [32, 128], strides = [1, 1]} : vector<32x384xf32> to vector<32x128xf32>
    %264 = vector.extract_strided_slice %262 {offsets = [0, 128], sizes = [32, 128], strides = [1, 1]} : vector<32x384xf32> to vector<32x128xf32>
    %265 = vector.extract_strided_slice %262 {offsets = [0, 256], sizes = [32, 128], strides = [1, 1]} : vector<32x384xf32> to vector<32x128xf32>
    %266 = vector.extract_strided_slice %263 {offsets = [0, 0], sizes = [8, 128], strides = [1, 1]} : vector<32x128xf32> to vector<8x128xf32>
    %267 = arith.truncf %266 : vector<8x128xf32> to vector<8x128xbf16>
    %268 = vector.extract_strided_slice %264 {offsets = [0, 0], sizes = [8, 128], strides = [1, 1]} : vector<32x128xf32> to vector<8x128xf32>
    %269 = arith.truncf %268 : vector<8x128xf32> to vector<8x128xbf16>
    %270 = vector.extract_strided_slice %265 {offsets = [0, 0], sizes = [8, 128], strides = [1, 1]} : vector<32x128xf32> to vector<8x128xf32>
    %271 = arith.truncf %270 : vector<8x128xf32> to vector<8x128xbf16>
    "tpu.trace_start"() <{level = 10 : i32, message = "qh,kh->qk"}> : () -> ()
    %cst_193 = arith.constant dense<0.000000e+00> : vector<8x8xf32>
    %272 = tpu.matmul %267, %269, %cst_193 {dimension_numbers = #tpu.dot_dimension_numbers<[1], [1], [0], [0], [0, 0, 1, 0], [], []>} : vector<8x128xbf16>, vector<8x128xbf16>, vector<8x8xf32> -> vector<8x8xf32>
    "tpu.trace_stop"() : () -> ()
    %c0_194 = arith.constant 0 : index
    %c0_195 = arith.constant 0 : index
    %273 = vector.load %arg3[%c0_194, %c0_195] : memref<4x8xf32, #tpu.memory_space<vmem>>, vector<1x8xf32>
    %274 = vector.broadcast %273 : vector<1x8xf32> to vector<8x8xf32>
    %275 = arith.addf %272, %274 : vector<8x8xf32>
    %cst_196 = arith.constant dense<0xFF800000> : vector<8xf32>
    %276 = vector.multi_reduction <maximumf>, %275, %cst_196 [1] : vector<8x8xf32> to vector<8xf32>
    %277 = vector.shape_cast %276 : vector<8xf32> to vector<8x1xf32>
    %278 = vector.broadcast %277 : vector<8x1xf32> to vector<8x8xf32>
    %279 = arith.subf %275, %278 : vector<8x8xf32>
    %280 = math.exp %279 : vector<8x8xf32>
    %cst_197 = arith.constant dense<0.000000e+00> : vector<8xf32>
    %281 = vector.multi_reduction <add>, %280, %cst_197 [1] : vector<8x8xf32> to vector<8xf32>
    %282 = vector.shape_cast %281 : vector<8xf32> to vector<8x1xf32>
    %283 = tpu.reciprocal %282 {approx = true} : vector<8x1xf32> -> vector<8x1xf32>
    %284 = vector.broadcast %283 : vector<8x1xf32> to vector<8x8xf32>
    %285 = arith.mulf %280, %284 : vector<8x8xf32>
    %286 = arith.truncf %285 : vector<8x8xf32> to vector<8x8xbf16>
    %cst_198 = arith.constant dense<0.000000e+00> : vector<8x128xf32>
    %287 = tpu.matmul %286, %271, %cst_198 {dimension_numbers = #tpu.dot_dimension_numbers<[1], [0], [0], [1], [0, 0, 1, 1], [], []>} : vector<8x8xbf16>, vector<8x128xbf16>, vector<8x128xf32> -> vector<8x128xf32>
    %288 = vector.extract_strided_slice %263 {offsets = [8, 0], sizes = [8, 128], strides = [1, 1]} : vector<32x128xf32> to vector<8x128xf32>
    %289 = arith.truncf %288 : vector<8x128xf32> to vector<8x128xbf16>
    %290 = vector.extract_strided_slice %264 {offsets = [8, 0], sizes = [8, 128], strides = [1, 1]} : vector<32x128xf32> to vector<8x128xf32>
    %291 = arith.truncf %290 : vector<8x128xf32> to vector<8x128xbf16>
    %292 = vector.extract_strided_slice %265 {offsets = [8, 0], sizes = [8, 128], strides = [1, 1]} : vector<32x128xf32> to vector<8x128xf32>
    %293 = arith.truncf %292 : vector<8x128xf32> to vector<8x128xbf16>
    "tpu.trace_start"() <{level = 10 : i32, message = "qh,kh->qk"}> : () -> ()
    %cst_199 = arith.constant dense<0.000000e+00> : vector<8x8xf32>
    %294 = tpu.matmul %289, %291, %cst_199 {dimension_numbers = #tpu.dot_dimension_numbers<[1], [1], [0], [0], [0, 0, 1, 0], [], []>} : vector<8x128xbf16>, vector<8x128xbf16>, vector<8x8xf32> -> vector<8x8xf32>
    "tpu.trace_stop"() : () -> ()
    %c1_200 = arith.constant 1 : index
    %c0_201 = arith.constant 0 : index
    %295 = vector.load %arg3[%c1_200, %c0_201] : memref<4x8xf32, #tpu.memory_space<vmem>>, vector<1x8xf32>
    %296 = vector.broadcast %295 : vector<1x8xf32> to vector<8x8xf32>
    %297 = arith.addf %294, %296 : vector<8x8xf32>
    %cst_202 = arith.constant dense<0xFF800000> : vector<8xf32>
    %298 = vector.multi_reduction <maximumf>, %297, %cst_202 [1] : vector<8x8xf32> to vector<8xf32>
    %299 = vector.shape_cast %298 : vector<8xf32> to vector<8x1xf32>
    %300 = vector.broadcast %299 : vector<8x1xf32> to vector<8x8xf32>
    %301 = arith.subf %297, %300 : vector<8x8xf32>
    %302 = math.exp %301 : vector<8x8xf32>
    %cst_203 = arith.constant dense<0.000000e+00> : vector<8xf32>
    %303 = vector.multi_reduction <add>, %302, %cst_203 [1] : vector<8x8xf32> to vector<8xf32>
    %304 = vector.shape_cast %303 : vector<8xf32> to vector<8x1xf32>
    %305 = tpu.reciprocal %304 {approx = true} : vector<8x1xf32> -> vector<8x1xf32>
    %306 = vector.broadcast %305 : vector<8x1xf32> to vector<8x8xf32>
    %307 = arith.mulf %302, %306 : vector<8x8xf32>
    %308 = arith.truncf %307 : vector<8x8xf32> to vector<8x8xbf16>
    %cst_204 = arith.constant dense<0.000000e+00> : vector<8x128xf32>
    %309 = tpu.matmul %308, %293, %cst_204 {dimension_numbers = #tpu.dot_dimension_numbers<[1], [0], [0], [1], [0, 0, 1, 1], [], []>} : vector<8x8xbf16>, vector<8x128xbf16>, vector<8x128xf32> -> vector<8x128xf32>
    %310 = vector.extract_strided_slice %263 {offsets = [16, 0], sizes = [8, 128], strides = [1, 1]} : vector<32x128xf32> to vector<8x128xf32>
    %311 = arith.truncf %310 : vector<8x128xf32> to vector<8x128xbf16>
    %312 = vector.extract_strided_slice %264 {offsets = [16, 0], sizes = [8, 128], strides = [1, 1]} : vector<32x128xf32> to vector<8x128xf32>
    %313 = arith.truncf %312 : vector<8x128xf32> to vector<8x128xbf16>
    %314 = vector.extract_strided_slice %265 {offsets = [16, 0], sizes = [8, 128], strides = [1, 1]} : vector<32x128xf32> to vector<8x128xf32>
    %315 = arith.truncf %314 : vector<8x128xf32> to vector<8x128xbf16>
    "tpu.trace_start"() <{level = 10 : i32, message = "qh,kh->qk"}> : () -> ()
    %cst_205 = arith.constant dense<0.000000e+00> : vector<8x8xf32>
    %316 = tpu.matmul %311, %313, %cst_205 {dimension_numbers = #tpu.dot_dimension_numbers<[1], [1], [0], [0], [0, 0, 1, 0], [], []>} : vector<8x128xbf16>, vector<8x128xbf16>, vector<8x8xf32> -> vector<8x8xf32>
    "tpu.trace_stop"() : () -> ()
    %c2_206 = arith.constant 2 : index
    %c0_207 = arith.constant 0 : index
    %317 = vector.load %arg3[%c2_206, %c0_207] : memref<4x8xf32, #tpu.memory_space<vmem>>, vector<1x8xf32>
    %318 = vector.broadcast %317 : vector<1x8xf32> to vector<8x8xf32>
    %319 = arith.addf %316, %318 : vector<8x8xf32>
    %cst_208 = arith.constant dense<0xFF800000> : vector<8xf32>
    %320 = vector.multi_reduction <maximumf>, %319, %cst_208 [1] : vector<8x8xf32> to vector<8xf32>
    %321 = vector.shape_cast %320 : vector<8xf32> to vector<8x1xf32>
    %322 = vector.broadcast %321 : vector<8x1xf32> to vector<8x8xf32>
    %323 = arith.subf %319, %322 : vector<8x8xf32>
    %324 = math.exp %323 : vector<8x8xf32>
    %cst_209 = arith.constant dense<0.000000e+00> : vector<8xf32>
    %325 = vector.multi_reduction <add>, %324, %cst_209 [1] : vector<8x8xf32> to vector<8xf32>
    %326 = vector.shape_cast %325 : vector<8xf32> to vector<8x1xf32>
    %327 = tpu.reciprocal %326 {approx = true} : vector<8x1xf32> -> vector<8x1xf32>
    %328 = vector.broadcast %327 : vector<8x1xf32> to vector<8x8xf32>
    %329 = arith.mulf %324, %328 : vector<8x8xf32>
    %330 = arith.truncf %329 : vector<8x8xf32> to vector<8x8xbf16>
    %cst_210 = arith.constant dense<0.000000e+00> : vector<8x128xf32>
    %331 = tpu.matmul %330, %315, %cst_210 {dimension_numbers = #tpu.dot_dimension_numbers<[1], [0], [0], [1], [0, 0, 1, 1], [], []>} : vector<8x8xbf16>, vector<8x128xbf16>, vector<8x128xf32> -> vector<8x128xf32>
    %332 = vector.extract_strided_slice %263 {offsets = [24, 0], sizes = [8, 128], strides = [1, 1]} : vector<32x128xf32> to vector<8x128xf32>
    %333 = arith.truncf %332 : vector<8x128xf32> to vector<8x128xbf16>
    %334 = vector.extract_strided_slice %264 {offsets = [24, 0], sizes = [8, 128], strides = [1, 1]} : vector<32x128xf32> to vector<8x128xf32>
    %335 = arith.truncf %334 : vector<8x128xf32> to vector<8x128xbf16>
    %336 = vector.extract_strided_slice %265 {offsets = [24, 0], sizes = [8, 128], strides = [1, 1]} : vector<32x128xf32> to vector<8x128xf32>
    %337 = arith.truncf %336 : vector<8x128xf32> to vector<8x128xbf16>
    "tpu.trace_start"() <{level = 10 : i32, message = "qh,kh->qk"}> : () -> ()
    %cst_211 = arith.constant dense<0.000000e+00> : vector<8x8xf32>
    %338 = tpu.matmul %333, %335, %cst_211 {dimension_numbers = #tpu.dot_dimension_numbers<[1], [1], [0], [0], [0, 0, 1, 0], [], []>} : vector<8x128xbf16>, vector<8x128xbf16>, vector<8x8xf32> -> vector<8x8xf32>
    "tpu.trace_stop"() : () -> ()
    %c3_212 = arith.constant 3 : index
    %c0_213 = arith.constant 0 : index
    %339 = vector.load %arg3[%c3_212, %c0_213] : memref<4x8xf32, #tpu.memory_space<vmem>>, vector<1x8xf32>
    %340 = vector.broadcast %339 : vector<1x8xf32> to vector<8x8xf32>
    %341 = arith.addf %338, %340 : vector<8x8xf32>
    %cst_214 = arith.constant dense<0xFF800000> : vector<8xf32>
    %342 = vector.multi_reduction <maximumf>, %341, %cst_214 [1] : vector<8x8xf32> to vector<8xf32>
    %343 = vector.shape_cast %342 : vector<8xf32> to vector<8x1xf32>
    %344 = vector.broadcast %343 : vector<8x1xf32> to vector<8x8xf32>
    %345 = arith.subf %341, %344 : vector<8x8xf32>
    %346 = math.exp %345 : vector<8x8xf32>
    %cst_215 = arith.constant dense<0.000000e+00> : vector<8xf32>
    %347 = vector.multi_reduction <add>, %346, %cst_215 [1] : vector<8x8xf32> to vector<8xf32>
    %348 = vector.shape_cast %347 : vector<8xf32> to vector<8x1xf32>
    %349 = tpu.reciprocal %348 {approx = true} : vector<8x1xf32> -> vector<8x1xf32>
    %350 = vector.broadcast %349 : vector<8x1xf32> to vector<8x8xf32>
    %351 = arith.mulf %346, %350 : vector<8x8xf32>
    %352 = arith.truncf %351 : vector<8x8xf32> to vector<8x8xbf16>
    %cst_216 = arith.constant dense<0.000000e+00> : vector<8x128xf32>
    %353 = tpu.matmul %352, %337, %cst_216 {dimension_numbers = #tpu.dot_dimension_numbers<[1], [0], [0], [1], [0, 0, 1, 1], [], []>} : vector<8x8xbf16>, vector<8x128xbf16>, vector<8x128xf32> -> vector<8x128xf32>
    %354 = tpu.concatenate %287, %309, %331, %353 in 0 : vector<8x128xf32>, vector<8x128xf32>, vector<8x128xf32>, vector<8x128xf32> -> vector<32x128xf32>
    %355 = arith.truncf %354 : vector<32x128xf32> to vector<32x128xbf16>
    %c0_217 = arith.constant 0 : index
    %c0_218 = arith.constant 0 : index
    %356 = vector.load %arg7[%c0_217, %c0_218] : memref<128x128xbf16, #tpu.memory_space<vmem>>, vector<128x128xbf16>
    %cst_219 = arith.constant dense<0.000000e+00> : vector<32x128xf32>
    %357 = tpu.matmul %355, %356, %cst_219 {dimension_numbers = #tpu.dot_dimension_numbers<[1], [0], [0], [1], [0, 0, 1, 1], [], []>} : vector<32x128xbf16>, vector<128x128xbf16>, vector<32x128xf32> -> vector<32x128xf32>
    %c0_220 = arith.constant 0 : index
    %c0_221 = arith.constant 0 : index
    %358 = vector.load %arg11[%c0_220, %c0_221] : memref<8x128xf32, #tpu.memory_space<vmem>>, vector<1x128xf32>
    %359 = vector.broadcast %358 : vector<1x128xf32> to vector<32x128xf32>
    %360 = arith.addf %357, %359 : vector<32x128xf32>
    %361 = arith.addf %256, %360 : vector<32x128xf32>
    %c1_222 = arith.constant 1 : index
    %c0_223 = arith.constant 0 : index
    %362 = vector.load %arg11[%c1_222, %c0_223] : memref<8x128xf32, #tpu.memory_space<vmem>>, vector<1x128xf32>
    %c2_224 = arith.constant 2 : index
    %c0_225 = arith.constant 0 : index
    %363 = vector.load %arg11[%c2_224, %c0_225] : memref<8x128xf32, #tpu.memory_space<vmem>>, vector<1x128xf32>
    %cst_226 = arith.constant dense<0.000000e+00> : vector<32xf32>
    %364 = vector.multi_reduction <add>, %361, %cst_226 [1] : vector<32x128xf32> to vector<32xf32>
    %365 = vector.shape_cast %364 : vector<32xf32> to vector<32x1xf32>
    %cst_227 = arith.constant 1.280000e+02 : f32
    %366 = vector.broadcast %cst_227 : f32 to vector<32x1xf32>
    %367 = arith.divf %365, %366 : vector<32x1xf32>
    %368 = vector.broadcast %367 : vector<32x1xf32> to vector<32x128xf32>
    %369 = arith.subf %361, %368 : vector<32x128xf32>
    %370 = arith.mulf %369, %369 : vector<32x128xf32>
    %cst_228 = arith.constant dense<0.000000e+00> : vector<32xf32>
    %371 = vector.multi_reduction <add>, %370, %cst_228 [1] : vector<32x128xf32> to vector<32xf32>
    %372 = vector.shape_cast %371 : vector<32xf32> to vector<32x1xf32>
    %cst_229 = arith.constant 1.280000e+02 : f32
    %373 = vector.broadcast %cst_229 : f32 to vector<32x1xf32>
    %374 = arith.divf %372, %373 : vector<32x1xf32>
    %375 = vector.broadcast %367 : vector<32x1xf32> to vector<32x128xf32>
    %376 = arith.subf %361, %375 : vector<32x128xf32>
    %cst_230 = arith.constant 9.99999974E-6 : f32
    %377 = vector.broadcast %cst_230 : f32 to vector<32x1xf32>
    %378 = arith.addf %374, %377 : vector<32x1xf32>
    %379 = math.rsqrt %378 : vector<32x1xf32>
    %380 = vector.broadcast %379 : vector<32x1xf32> to vector<32x128xf32>
    %381 = arith.mulf %376, %380 : vector<32x128xf32>
    %382 = vector.broadcast %362 : vector<1x128xf32> to vector<32x128xf32>
    %383 = arith.mulf %381, %382 : vector<32x128xf32>
    %384 = vector.broadcast %363 : vector<1x128xf32> to vector<32x128xf32>
    %385 = arith.addf %383, %384 : vector<32x128xf32>
    %386 = arith.truncf %385 : vector<32x128xf32> to vector<32x128xbf16>
    %c0_231 = arith.constant 0 : index
    %c0_232 = arith.constant 0 : index
    %387 = vector.load %arg8[%c0_231, %c0_232] : memref<128x256xbf16, #tpu.memory_space<vmem>>, vector<128x256xbf16>
    %cst_233 = arith.constant dense<0.000000e+00> : vector<32x256xf32>
    %388 = tpu.matmul %386, %387, %cst_233 {dimension_numbers = #tpu.dot_dimension_numbers<[1], [0], [0], [1], [0, 0, 1, 1], [], []>} : vector<32x128xbf16>, vector<128x256xbf16>, vector<32x256xf32> -> vector<32x256xf32>
    %c0_234 = arith.constant 0 : index
    %c0_235 = arith.constant 0 : index
    %389 = vector.load %arg9[%c0_234, %c0_235] : memref<1x256xf32, #tpu.memory_space<vmem>>, vector<1x256xf32>
    %390 = vector.broadcast %389 : vector<1x256xf32> to vector<32x256xf32>
    %391 = arith.addf %388, %390 : vector<32x256xf32>
    %392 = arith.mulf %391, %391 : vector<32x256xf32>
    %393 = arith.mulf %391, %392 : vector<32x256xf32>
    %cst_236 = arith.constant 4.471500e-02 : f32
    %394 = vector.broadcast %cst_236 : f32 to vector<32x256xf32>
    %395 = arith.mulf %394, %393 : vector<32x256xf32>
    %396 = arith.addf %391, %395 : vector<32x256xf32>
    %cst_237 = arith.constant 0.797884583 : f32
    %397 = vector.broadcast %cst_237 : f32 to vector<32x256xf32>
    %398 = arith.mulf %397, %396 : vector<32x256xf32>
    %399 = math.tanh %398 : vector<32x256xf32>
    %cst_238 = arith.constant 1.000000e+00 : f32
    %400 = vector.broadcast %cst_238 : f32 to vector<32x256xf32>
    %401 = arith.addf %400, %399 : vector<32x256xf32>
    %cst_239 = arith.constant 5.000000e-01 : f32
    %402 = vector.broadcast %cst_239 : f32 to vector<32x256xf32>
    %403 = arith.mulf %402, %401 : vector<32x256xf32>
    %404 = arith.mulf %391, %403 : vector<32x256xf32>
    %405 = arith.truncf %404 : vector<32x256xf32> to vector<32x256xbf16>
    %c0_240 = arith.constant 0 : index
    %c0_241 = arith.constant 0 : index
    %406 = vector.load %arg10[%c0_240, %c0_241] : memref<256x128xbf16, #tpu.memory_space<vmem>>, vector<256x128xbf16>
    %cst_242 = arith.constant dense<0.000000e+00> : vector<32x128xf32>
    %407 = tpu.matmul %405, %406, %cst_242 {dimension_numbers = #tpu.dot_dimension_numbers<[1], [0], [0], [1], [0, 0, 1, 1], [], []>} : vector<32x256xbf16>, vector<256x128xbf16>, vector<32x128xf32> -> vector<32x128xf32>
    %c3_243 = arith.constant 3 : index
    %c0_244 = arith.constant 0 : index
    %408 = vector.load %arg11[%c3_243, %c0_244] : memref<8x128xf32, #tpu.memory_space<vmem>>, vector<1x128xf32>
    %409 = vector.broadcast %408 : vector<1x128xf32> to vector<32x128xf32>
    %410 = arith.addf %407, %409 : vector<32x128xf32>
    %411 = arith.addf %385, %410 : vector<32x128xf32>
    %c4_245 = arith.constant 4 : index
    %c0_246 = arith.constant 0 : index
    %412 = vector.load %arg11[%c4_245, %c0_246] : memref<8x128xf32, #tpu.memory_space<vmem>>, vector<1x128xf32>
    %c5_247 = arith.constant 5 : index
    %c0_248 = arith.constant 0 : index
    %413 = vector.load %arg11[%c5_247, %c0_248] : memref<8x128xf32, #tpu.memory_space<vmem>>, vector<1x128xf32>
    %cst_249 = arith.constant dense<0.000000e+00> : vector<32xf32>
    %414 = vector.multi_reduction <add>, %411, %cst_249 [1] : vector<32x128xf32> to vector<32xf32>
    %415 = vector.shape_cast %414 : vector<32xf32> to vector<32x1xf32>
    %cst_250 = arith.constant 1.280000e+02 : f32
    %416 = vector.broadcast %cst_250 : f32 to vector<32x1xf32>
    %417 = arith.divf %415, %416 : vector<32x1xf32>
    %418 = vector.broadcast %417 : vector<32x1xf32> to vector<32x128xf32>
    %419 = arith.subf %411, %418 : vector<32x128xf32>
    %420 = arith.mulf %419, %419 : vector<32x128xf32>
    %cst_251 = arith.constant dense<0.000000e+00> : vector<32xf32>
    %421 = vector.multi_reduction <add>, %420, %cst_251 [1] : vector<32x128xf32> to vector<32xf32>
    %422 = vector.shape_cast %421 : vector<32xf32> to vector<32x1xf32>
    %cst_252 = arith.constant 1.280000e+02 : f32
    %423 = vector.broadcast %cst_252 : f32 to vector<32x1xf32>
    %424 = arith.divf %422, %423 : vector<32x1xf32>
    %425 = vector.broadcast %417 : vector<32x1xf32> to vector<32x128xf32>
    %426 = arith.subf %411, %425 : vector<32x128xf32>
    %cst_253 = arith.constant 9.99999974E-6 : f32
    %427 = vector.broadcast %cst_253 : f32 to vector<32x1xf32>
    %428 = arith.addf %424, %427 : vector<32x1xf32>
    %429 = math.rsqrt %428 : vector<32x1xf32>
    %430 = vector.broadcast %429 : vector<32x1xf32> to vector<32x128xf32>
    %431 = arith.mulf %426, %430 : vector<32x128xf32>
    %432 = vector.broadcast %412 : vector<1x128xf32> to vector<32x128xf32>
    %433 = arith.mulf %431, %432 : vector<32x128xf32>
    %434 = vector.broadcast %413 : vector<1x128xf32> to vector<32x128xf32>
    %435 = arith.addf %433, %434 : vector<32x128xf32>
    %436 = vector.extract_strided_slice %435 {offsets = [0, 0], sizes = [1, 128], strides = [1, 1]} : vector<32x128xf32> to vector<1x128xf32>
    %437 = vector.extract_strided_slice %435 {offsets = [8, 0], sizes = [1, 128], strides = [1, 1]} : vector<32x128xf32> to vector<1x128xf32>
    %438 = vector.extract_strided_slice %435 {offsets = [16, 0], sizes = [1, 128], strides = [1, 1]} : vector<32x128xf32> to vector<1x128xf32>
    %439 = vector.extract_strided_slice %435 {offsets = [24, 0], sizes = [1, 128], strides = [1, 1]} : vector<32x128xf32> to vector<1x128xf32>
    %440 = tpu.concatenate %436, %437, %438, %439 in 0 : vector<1x128xf32>, vector<1x128xf32>, vector<1x128xf32>, vector<1x128xf32> -> vector<4x128xf32>
    %c6_254 = arith.constant 6 : index
    %c0_255 = arith.constant 0 : index
    %441 = vector.load %arg11[%c6_254, %c0_255] : memref<8x128xf32, #tpu.memory_space<vmem>>, vector<1x128xf32>
    %442 = vector.broadcast %441 : vector<1x128xf32> to vector<4x128xf32>
    %443 = arith.mulf %440, %442 : vector<4x128xf32>
    %cst_256 = arith.constant dense<0.000000e+00> : vector<4xf32>
    %444 = vector.multi_reduction <add>, %443, %cst_256 [1] : vector<4x128xf32> to vector<4xf32>
    %445 = vector.shape_cast %444 : vector<4xf32> to vector<4x1xf32>
    %c7_257 = arith.constant 7 : index
    %c0_258 = arith.constant 0 : index
    %446 = vector.load %arg11[%c7_257, %c0_258] : memref<8x128xf32, #tpu.memory_space<vmem>>, vector<1x1xf32>
    %c7_259 = arith.constant 7 : index
    %c1_260 = arith.constant 1 : index
    %447 = vector.load %arg11[%c7_259, %c1_260] : memref<8x128xf32, #tpu.memory_space<vmem>>, vector<1x1xf32>
    %c0_261 = arith.constant 0 : index
    %c0_262 = arith.constant 0 : index
    %448 = vector.load %arg4[%c0_261, %c0_262] : memref<4x1xf32, #tpu.memory_space<vmem>>, vector<4x1xf32>
    %449 = vector.broadcast %446 : vector<1x1xf32> to vector<4x1xf32>
    %450 = arith.mulf %448, %449 : vector<4x1xf32>
    %451 = arith.addf %445, %450 : vector<4x1xf32>
    %452 = vector.broadcast %447 : vector<1x1xf32> to vector<4x1xf32>
    %453 = arith.addf %451, %452 : vector<4x1xf32>
    %c0_263 = arith.constant 0 : index
    %c0_264 = arith.constant 0 : index
    %454 = vector.load %arg12[%c0_263, %c0_264] : memref<4x1xf32, #tpu.memory_space<vmem>>, vector<4x1xf32>
    tpu.vector_store %arg12[%c0_263, %c0_264], %453 {strides = array<i32>} : memref<4x1xf32, #tpu.memory_space<vmem>>, vector<4x1xf32>,
    return
  }
  func.func @transform_0(%arg0: i32, %arg1: memref<4x8xi32, #tpu.memory_space<smem>>) -> (i32, i32, i32) {
    %c0_i32 = arith.constant 0 : i32
    %c0_i32_0 = arith.constant 0 : i32
    %c0_i32_1 = arith.constant 0 : i32
    %c0_i32_2 = arith.constant 0 : i32
    return %c0_i32, %c0_i32_0, %c0_i32_1 : i32, i32, i32
  }
  func.func @transform_1(%arg0: i32, %arg1: memref<4x8xi32, #tpu.memory_space<smem>>) -> (i32, i32) {
    %c0_i32 = arith.constant 0 : i32
    %c0_i32_0 = arith.constant 0 : i32
    return %arg0, %c0_i32 : i32, i32
  }
  func.func @transform_2(%arg0: i32, %arg1: memref<4x8xi32, #tpu.memory_space<smem>>) -> (i32, i32) {
    %c0_i32 = arith.constant 0 : i32
    %c0_i32_0 = arith.constant 0 : i32
    return %arg0, %c0_i32 : i32, i32
  }
  func.func @transform_3(%arg0: i32, %arg1: memref<4x8xi32, #tpu.memory_space<smem>>) -> (i32, i32) {
    %c0_i32 = arith.constant 0 : i32
    %c0_i32_0 = arith.constant 0 : i32
    %c0_i32_1 = arith.constant 0 : i32
    return %c0_i32, %c0_i32_0 : i32, i32
  }
  func.func @transform_4(%arg0: i32, %arg1: memref<4x8xi32, #tpu.memory_space<smem>>) -> (i32, i32) {
    %c0_i32 = arith.constant 0 : i32
    %c0_i32_0 = arith.constant 0 : i32
    %c0_i32_1 = arith.constant 0 : i32
    return %c0_i32, %c0_i32_0 : i32, i32
  }
  func.func @transform_5(%arg0: i32, %arg1: memref<4x8xi32, #tpu.memory_space<smem>>) -> (i32, i32) {
    %c0_i32 = arith.constant 0 : i32
    %c0_i32_0 = arith.constant 0 : i32
    %c0_i32_1 = arith.constant 0 : i32
    return %c0_i32, %c0_i32_0 : i32, i32
  }
  func.func @transform_6(%arg0: i32, %arg1: memref<4x8xi32, #tpu.memory_space<smem>>) -> (i32, i32) {
    %c0_i32 = arith.constant 0 : i32
    %c0_i32_0 = arith.constant 0 : i32
    %c0_i32_1 = arith.constant 0 : i32
    return %c0_i32, %c0_i32_0 : i32, i32
  }
  func.func @transform_7(%arg0: i32, %arg1: memref<4x8xi32, #tpu.memory_space<smem>>) -> (i32, i32) {
    %c0_i32 = arith.constant 0 : i32
    %c0_i32_0 = arith.constant 0 : i32
    %c0_i32_1 = arith.constant 0 : i32
    return %c0_i32, %c0_i32_0 : i32, i32
  }
  func.func @transform_8(%arg0: i32, %arg1: memref<4x8xi32, #tpu.memory_space<smem>>) -> (i32, i32) {
    %c0_i32 = arith.constant 0 : i32
    %c0_i32_0 = arith.constant 0 : i32
    %c0_i32_1 = arith.constant 0 : i32
    return %c0_i32, %c0_i32_0 : i32, i32
  }
  func.func @transform_9(%arg0: i32, %arg1: memref<4x8xi32, #tpu.memory_space<smem>>) -> (i32, i32) {
    %c0_i32 = arith.constant 0 : i32
    %c0_i32_0 = arith.constant 0 : i32
    %c0_i32_1 = arith.constant 0 : i32
    return %c0_i32, %c0_i32_0 : i32, i32
  }
  func.func @transform_10(%arg0: i32, %arg1: memref<4x8xi32, #tpu.memory_space<smem>>) -> (i32, i32) {
    %c0_i32 = arith.constant 0 : i32
    %c0_i32_0 = arith.constant 0 : i32
    return %arg0, %c0_i32 : i32, i32
  }
}

</mosaic_0001>

<bundles_post_ra>
// kernel: _forward_impl.1
= control target key start
LH: loop header
LB: loop body
LE: loop exit
PB: predicated region body
PF: predicated region fallthrough
CT: control target
= control target key end

     0   :  { %s2696_s0 = inlined_call_operand.vmem [shape: s32[4,8], index: 0, kind: input, shape index: {}]   ;;  %s2697_s1 = inlined_call_operand.hbm [shape: f32[512,1,128], index: 1, kind: input, shape index: {}]   ;;  %s2698_s2 = inlined_call_operand.vmem [shape: f32[4,8], index: 2, kind: input, shape index: {}]   ;;  %s2699_s3 = inlined_call_operand.vmem [shape: f32[4,1], index: 3, kind: input, shape index: {}]   ;;  %s2700_s4 = inlined_call_operand.hbm [shape: bf16[128,384], index: 4, kind: input, shape index: {}]   ;;  %s2701_s5 = inlined_call_operand.vmem [shape: f32[1,384], index: 5, kind: input, shape index: {}]   ;;  %s2702_s6 = inlined_call_operand.hbm [shape: bf16[128,128], index: 6, kind: input, shape index: {}]   ;;  %s2703_s7 = inlined_call_operand.hbm [shape: bf16[128,256], index: 7, kind: input, shape index: {}]   ;;  %s2704_s8 = inlined_call_operand.vmem [shape: f32[1,256], index: 8, kind: input, shape index: {}]   ;;  %s2705_s9 = inlined_call_operand.hbm [shape: bf16[256,128], index: 9, kind: input, shape index: {}]   ;;  %s2706_s10 = inlined_call_operand.vmem [shape: f32[8,128], index: 10, kind: input, shape index: {}]   ;;  %s2707_s11 = inlined_call_operand.vmem [shape: f32[4,1], index: 11, kind: output, shape index: {}]  }
   0x1   :  { %s16_s19 = sshll.u32 %s2696_s0, 4  ;;  %s17_s19 = int_to_ptr.vmem [resolvable:$true] %s16_s19 }
   0x2   :  { %s2147_s20 = scalar_lea.vmem %s17_s19, 64  ;;  %p2152_p1 = scmp.lt.s32.totalorder %s17_s19, %s17_s19 }
   0x3   :  { %p2148_p0 = scmp.ne.s32.totalorder %s17_s19, %s2147_s20  ;;  %p2153_p2 = scmp.lt.s32.totalorder %s2147_s20, %s2147_s20 }
   0x5   :  { %p2154_p3 = por %p2153_p2, %p2152_p1 }
   0x7   :  { %p2155_p4 = pnand %p2154_p3, %p2148_p0 }
   0x9   :  { %2158 = shalt.err (!%p2155_p4)  }
   0xa   :  { %s2277_s21 = smov [#allocation4]  }
   0xb   :  { %19 = dma.vmem_to_smem %s17_s19, 64, %s2277_s21, [#allocation3] }
   0xc   :  { %2269 = dma.done.wait [#allocation3], 64 }
   0xd   :  { %2270 = vsyncadd [#allocation3], 4294967232 }
   0xe   :  { %21 = sfence }
   0xf   :  { %22 = vsyncpa [#allocation6], 0 }
  0x10   :  { %23 = vsyncpa [#allocation8], 0 }
  0x11   :  { %24 = vsyncpa [#allocation11], 0  ;;  %s2278_s22 = smov [#allocation7]   ;;  %s2159_s25 = scalar_lea.hbm %s2700_s4, 3072 }
  0x12   :  { %s46_s23 = sshll.u32 %s2278_s22, 4  ;;  %p2160_p5 = scmp.ne.s32.totalorder %s2700_s4, %s2159_s25  ;;  %s47_s23 = int_to_ptr.vmem [resolvable:$true] %s46_s23 }
  0x13   :  { %p2163_p6 = scmp.lt.u32.totalorder %s2159_s25, %s2700_s4 }
  0x15   :  { %p2165_p7 = pnand %p2163_p6, %p2160_p5 }
  0x17   :  { %2168 = shalt.err (!%p2165_p7)
}
  0x18   :  { %s2169_s30 = scalar_lea.vmem %s47_s23, 3072  ;;  %p2174_p9 = scmp.lt.s32.totalorder %s47_s23, %s47_s23 }
  0x19   :  { %p2170_p8 = scmp.ne.s32.totalorder %s47_s23, %s2169_s30  ;;  %p2175_p10 = scmp.lt.s32.totalorder %s2169_s30, %s2169_s30 }
  0x1b   :  { %p2176_p11 = por %p2175_p10, %p2174_p9 }
  0x1d   :  { %p2177_p12 = pnand %p2176_p11, %p2170_p8 }
  0x1f   :  { %2180 = shalt.err (!%p2177_p12)
}
  0x20   :  { %s2279_s12 = smov 192   ;;  %s2280_s13 = smov 12  }
  0x21   :  { %52 = dma.hbm_to_vmem [thread:$0]  %s2700_s4, 3072, %s47_s23, [#allocation8], %s2279_s12, %s2279_s12, %s2280_s13  }
  0x22   :  { %s2281_s16 = smov [#allocation10]   ;;  %s2181_s20 = scalar_lea.hbm %s2703_s7, 2048 }
  0x23   :  { %s72_s17 = sshll.u32 %s2281_s16, 4  ;;  %p2182_p13 = scmp.ne.s32.totalorder %s2703_s7, %s2181_s20  ;;  %s73_s17 = int_to_ptr.vmem [resolvable:$true] %s72_s17 }
  0x24   :  { %p2185_p0 = scmp.lt.u32.totalorder %s2181_s20, %s2703_s7 }
  0x26   :  { %p2187_p1 = pnand %p2185_p0, %p2182_p13 }
  0x28   :  { %2190 = shalt.err (!%p2187_p1)
}
  0x29   :  { %s2191_s25 = scalar_lea.vmem %s73_s17, 2048  ;;  %p2196_p3 = scmp.lt.s32.totalorder %s73_s17, %s73_s17 }
  0x2a   :  { %p2192_p2 = scmp.ne.s32.totalorder %s73_s17, %s2191_s25  ;;  %p2197_p4 = scmp.lt.s32.totalorder %s2191_s25, %s2191_s25 }
  0x2c   :  { %p2198_p5 = por %p2197_p4, %p2196_p3 }
  0x2e   :  { %p2199_p6 = pnand %p2198_p5, %p2192_p2 }
  0x30   :  { %2202 = shalt.err (!%p2199_p6)
}
  0x31   :  { %s2282_s4 = smov 128   ;;  %s2283_s23 = smov 8  }
  0x32   :  { %78 = dma.hbm_to_vmem [thread:$0]  %s2703_s7, 2048, %s73_s17, [#allocation11], %s2282_s4, %s2282_s4, %s2283_s23  }
  0x33   :  { %s2284_s28 = smov [#allocation5]   ;;  %s2203_s13 = scalar_lea.hbm %s2697_s1, 8192 }
  0x34   :  { %s30_s29 = sshll.u32 %s2284_s28, 4  ;;  %p2204_p7 = scmp.ne.s32.totalorder %s2697_s1, %s2203_s13  ;;  %s31_s29 = int_to_ptr.vmem [resolvable:$true] %s30_s29 }
  0x35   :  { %p2207_p8 = scmp.lt.u32.totalorder %s2203_s13, %s2697_s1 }
  0x37   :  { %p2209_p9 = pnand %p2207_p8, %p2204_p7 }
  0x39   :  { %2212 = shalt.err (!%p2209_p9)
}
  0x3a   :  { %s2213_s19 = scalar_lea.vmem %s31_s29, 8192  ;;  %p2218_p11 = scmp.lt.s32.totalorder %s31_s29, %s31_s29 }
  0x3b   :  { %p2214_p10 = scmp.ne.s32.totalorder %s31_s29, %s2213_s19  ;;  %p2219_p12 = scmp.lt.s32.totalorder %s2213_s19, %s2213_s19 }
  0x3d   :  { %p2220_p13 = por %p2219_p12, %p2218_p11 }
  0x3f   :  { %p2221_p0 = pnand %p2220_p13, %p2214_p10 }
  0x41   :  { %2224 = shalt.err (!%p2221_p0)
}
  0x42   :  { %s2285_s7 = smov 16   ;;  %s2286_s17 = smov 1  }
  0x43   :  { %36 = dma.hbm_to_vmem [thread:$0]  %s2697_s1, 8192, %s31_s29, [#allocation6], %s2285_s7, %s2285_s7, %s2286_s17  }
  0x44   :  { %s2287_s22 = smov [#allocation9]   ;;  %s2225_s4 = scalar_lea.hbm %s2702_s6, 1024 }
  0x45   :  { %s60_s0 = sshll.u32 %s2287_s22, 4  ;;  %p2226_p1 = scmp.ne.s32.totalorder %s2702_s6, %s2225_s4  ;;  %s61_s0 = int_to_ptr.vmem [resolvable:$true] %s60_s0 }
  0x46   :  { %p2229_p2 = scmp.lt.u32.totalorder %s2225_s4, %s2702_s6 }
  0x48   :  { %p2231_p3 = pnand %p2229_p2, %p2226_p1 }
  0x4a   :  { %2234 = shalt.err (!%p2231_p3)
}
  0x4b   :  { %s2235_s30 = scalar_lea.vmem %s61_s0, 1024  ;;  %p2240_p5 = scmp.lt.s32.totalorder %s61_s0, %s61_s0 }
  0x4c   :  { %p2236_p4 = scmp.ne.s32.totalorder %s61_s0, %s2235_s30  ;;  %p2241_p6 = scmp.lt.s32.totalorder %s2235_s30, %s2235_s30 }
  0x4e   :  { %p2242_p7 = por %p2241_p6, %p2240_p5 }
  0x50   :  { %p2243_p8 = pnand %p2242_p7, %p2236_p4 }
  0x52   :  { %2246 = shalt.err (!%p2243_p8)
}
  0x53   :  { %s2288_s1 = smov 64   ;;  %s2289_s29 = smov 4  }
  0x54   :  { %66 = dma.hbm_to_vmem [thread:$0]  %s2702_s6, 1024, %s61_s0, [#allocation8], %s2288_s1, %s2288_s1, %s2289_s29  }
  0x55   :  { %s2290_s14 = smov [#allocation12]   ;;  %s2247_s19 = scalar_lea.hbm %s2705_s9, 2048 }
  0x56   :  { %s86_s15 = sshll.u32 %s2290_s14, 4  ;;  %p2248_p9 = scmp.ne.s32.totalorder %s2705_s9, %s2247_s19  ;;  %s87_s15 = int_to_ptr.vmem [resolvable:$true] %s86_s15 }
  0x57   :  { %p2251_p10 = scmp.lt.u32.totalorder %s2247_s19, %s2705_s9 }
  0x59   :  { %p2253_p11 = pnand %p2251_p10, %p2248_p9 }
  0x5b   :  { %2256 = shalt.err (!%p2253_p11)
}
  0x5c   :  { %s2257_s22 = scalar_lea.vmem %s87_s15, 2048  ;;  %p2262_p13 = scmp.lt.s32.totalorder %s87_s15, %s87_s15 }
  0x5d   :  { %p2258_p12 = scmp.ne.s32.totalorder %s87_s15, %s2257_s22  ;;  %p2263_p0 = scmp.lt.s32.totalorder %s2257_s22, %s2257_s22 }
  0x5f   :  { %p2264_p1 = por %p2263_p0, %p2262_p13 }
  0x61   :  { %p2265_p2 = pnand %p2264_p1, %p2258_p12 }
  0x63   :  { %2268 = shalt.err (!%p2265_p2)
}
  0x64   :  { %92 = dma.hbm_to_vmem [thread:$0]  %s2705_s9, 2048, %s87_s15, [#allocation11], %s2288_s1, %s2288_s1, %s2289_s29  }
  0x65   :  { %2271 = dma.done.wait [#allocation6], 8192  }
  0x66   :  { %2272 = vsyncadd [#allocation6], 4294959104 }
  0x67   :  { %2273 = dma.done.wait [#allocation8], 4096  }
  0x68   :  { %2274 = vsyncadd [#allocation8], 4294963200 }
  0x69   :  { %2275 = dma.done.wait [#allocation11], 4096  }
  0x6a   :  { %2276 = vsyncadd [#allocation11], 4294963200  ;;  %v2291_v0 = vmov 0   ;;  %s2419_s24 = sld [smem:[#allocation4]]  ;;  %s2421_s25 = sld [smem:[#allocation4 + $0x1]]  ;;  %v2292_v63 = vmov 0.0  }
  0x6b   :  { %490 = vmatprep.mubr.bf16.mxu0 %v2291_v0  ;;  %s2423_s4 = sld [smem:[#allocation4 + $0x2]]  ;;  %s2425_s23 = sld [smem:[#allocation4 + $0x3]]  ;;  %v2019_v1 = vld [vmem:[#allocation7 + $0x4] ss:$12 sps:$4 sm:$0xff]   ;;  %v2021_v2 = vld [vmem:[#allocation7] ss:$12 sps:$4 sm:$0xff]  }
  0x6c   :  { %s2427_s26 = sld [smem:[#allocation4 + $0x4]]  ;;  %s2429_s9 = sld [smem:[#allocation4 + $0x5]]  ;;  %458 = vmatprep.subr.bf16.mxu0 %v2019_v1  ;;  %v2022_v3 = vld [vmem:[#allocation7 + $0x1c] ss:$12 sps:$4 sm:$0xff]   ;;  %v2024_v4 = vld [vmem:[#allocation7 + $0x18] ss:$12 sps:$4 sm:$0xff]   ;;  %v315_v1 = vlaneseq }
  0x6d   :  { %s2431_s27 = sld [smem:[#allocation4 + $0x6]]  ;;  %s2433_s28 = sld [smem:[#allocation4 + $0x7]]  ;;  %459 = vmatpush1.bf16.msra.mxu0 %v2021_v2  ;;  %v2025_v5 = vld [vmem:[#allocation7 + $0x34] ss:$12 sps:$4 sm:$0xff]   ;;  %v2027_v6 = vld [vmem:[#allocation7 + $0x30] ss:$12 sps:$4 sm:$0xff]  }
  0x6e   :  { %s2435_s30 = sld [smem:[#allocation4 + $0x80]]  ;;  %s2437_s1 = sld [smem:[#allocation4 + $0x81]]  ;;  %460 = vmatprep.subr.bf16.mxu0 %v2022_v3  ;;  %v2028_v7 = vld [vmem:[#allocation7 + $0x4c] ss:$12 sps:$4 sm:$0xff]   ;;  %v2030_v8 = vld [vmem:[#allocation7 + $0x48] ss:$12 sps:$4 sm:$0xff]  }
  0x6f   :  { %s2439_s29 = sld [smem:[#allocation4 + $0x82]]  ;;  %s2441_s12 = sld [smem:[#allocation4 + $0x83]]  ;;  %v2031_v9 = vld [vmem:[#allocation7 + $0x64] ss:$12 sps:$4 sm:$0xff]   ;;  %v2033_v17 = vld [vmem:[#allocation7 + $0x60] ss:$12 sps:$4 sm:$0xff]  }
  0x70   :  { %s2443_s13 = sld [smem:[#allocation4 + $0x84]]  ;;  %s2445_s14 = sld [smem:[#allocation4 + $0x85]]  ;;  %v2034_v21 = vld [vmem:[#allocation7 + $0x7c] ss:$12 sps:$4 sm:$0xff]   ;;  %v2036_v26 = vld [vmem:[#allocation7 + $0x78] ss:$12 sps:$4 sm:$0xff]  }
  0x71   :  { %461 = vmatpush1.bf16.msra.mxu0 %v2024_v4  ;;  %s114_s15 = scalar_lea.vmem [#allocation5], %s2419_s24  ;;  %s119_s16 = scalar_lea.vmem [#allocation5], %s2421_s25  ;;  %v2037_v27 = vld [vmem:[#allocation7 + $0x94] ss:$12 sps:$4 sm:$0xff]   ;;  %v2039_v29 = vld [vmem:[#allocation7 + $0x90] ss:$12 sps:$4 sm:$0xff]  }
  0x72   :  { %462 = vmatprep.subr.bf16.mxu0 %v2025_v5  ;;  %v115_v10 = vld [vmem:[%s114_s15] sm:$0x1]  ;;  %s124_s18 = scalar_lea.vmem [#allocation5], %s2423_s4  ;;  %s129_s19 = scalar_lea.vmem [#allocation5], %s2425_s23  ;;  %v2043_v28 = vld [vmem:[#allocation7 + $0x8] ss:$12 sps:$4 sm:$0xff]  }
  0x73   :  { %116 = vst [vmem:[#allocation2] sm:$0x1] %v115_v10  ;;  %v120_v11 = vld [vmem:[%s119_s16] sm:$0x1]  ;;  %s134_s7 = scalar_lea.vmem [#allocation5], %s2427_s26  ;;  %s139_s17 = scalar_lea.vmem [#allocation5], %s2429_s9  ;;  %1913 = vmatprep.subr.bf16.mxu1 %v2043_v28 }
  0x74   :  { %v125_v12 = vld [vmem:[%s124_s18] sm:$0x1]  ;;  %121 = vst [vmem:[#allocation2 + $0x1] sm:$0x1] %v120_v11  ;;  %s144_s20 = scalar_lea.vmem [#allocation5], %s2431_s27  ;;  %s149_s21 = scalar_lea.vmem [#allocation5], %s2433_s28  ;;  %1914 = vmatpush3.bf16.msra.mxu1 %v2043_v28 }
  0x75   :  { %463 = vmatpush1.bf16.msra.mxu0 %v2027_v6  ;;  %v130_v13 = vld [vmem:[%s129_s19] sm:$0x1]  ;;  %126 = vst [vmem:[#allocation2 + $0x2] sm:$0x1] %v125_v12  ;;  %s155_s22 = scalar_lea.vmem [#allocation5], %s2435_s30  ;;  %s160_s6 = scalar_lea.vmem [#allocation5], %s2437_s1 }
  0x76   :  { %464 = vmatprep.subr.bf16.mxu0 %v2028_v7  ;;  %131 = vst [vmem:[#allocation2 + $0x3] sm:$0x1] %v130_v13  ;;  %v135_v14 = vld [vmem:[%s134_s7] sm:$0x1]  ;;  %s165_s0 = scalar_lea.vmem [#allocation5], %s2439_s29  ;;  %s170_s24 = scalar_lea.vmem [#allocation5], %s2441_s12 }
  0x77   :  { %v140_v15 = vld [vmem:[%s139_s17] sm:$0x1]  ;;  %136 = vst [vmem:[#allocation2 + $0x4] sm:$0x1] %v135_v14  ;;  %s175_s25 = scalar_lea.vmem [#allocation5], %s2443_s13  ;;  %s1751_s4 = sld [smem:[#allocation4 + $0x86]] }
  0x78   :  { %v145_v16 = vld [vmem:[%s144_s20] sm:$0x1]  ;;  %141 = vst [vmem:[#allocation2 + $0x5] sm:$0x1] %v140_v15  ;;  %s180_s23 = scalar_lea.vmem [#allocation5], %s2445_s14  ;;  %s1752_s26 = sld [smem:[#allocation4 + $0x87]] }
  0x79   :  { %146 = vst [vmem:[#allocation2 + $0x6] sm:$0x1] %v145_v16  ;;  %v150_v18 = vld [vmem:[%s149_s21] sm:$0x1]  ;;  %465 = vmatpush1.bf16.msra.mxu0 %v2030_v8  ;;  %s1753_s9 = sld [smem:[#allocation4 + $0x100]]  ;;  %s2461_s27 = sld [smem:[#allocation4 + $0x101]] }
  0x7a   :  { %v156_v19 = vld [vmem:[%s155_s22] sm:$0x1]  ;;  %151 = vst [vmem:[#allocation2 + $0x7] sm:$0x1] %v150_v18  ;;  %466 = vmatprep.subr.bf16.mxu0 %v2031_v9  ;;  %s2463_s28 = sld [smem:[#allocation4 + $0x102]]  ;;  %s2465_s30 = sld [smem:[#allocation4 + $0x103]] }
  0x7b   :  { %v161_v20 = vld [vmem:[%s160_s6] sm:$0x1]  ;;  %157 = vst [vmem:[#allocation2 + $0x8] sm:$0x1] %v156_v19  ;;  %s2467_s1 = sld [smem:[#allocation4 + $0x104]]  ;;  %s2469_s29 = sld [smem:[#allocation4 + $0x105]] }
  0x7c   :  { %162 = vst [vmem:[#allocation2 + $0x9] sm:$0x1] %v161_v20  ;;  %v166_v22 = vld [vmem:[%s165_s0] sm:$0x1]  ;;  %s2471_s12 = sld [smem:[#allocation4 + $0x106]]  ;;  %s2473_s13 = sld [smem:[#allocation4 + $0x107]] }
  0x7d   :  { %v171_v23 = vld [vmem:[%s170_s24] sm:$0x1]  ;;  %167 = vst [vmem:[#allocation2 + $0xa] sm:$0x1] %v166_v22  ;;  %467 = vmatpush1.bf16.msra.mxu0 %v2033_v17  ;;  %s2475_s14 = sld [smem:[#allocation4 + $0x180]]  ;;  %s2477_s15 = sld [smem:[#allocation4 + $0x181]] }
  0x7e   :  { %172 = vst [vmem:[#allocation2 + $0xb] sm:$0x1] %v171_v23  ;;  %v176_v24 = vld [vmem:[%s175_s25] sm:$0x1]  ;;  %468 = vmatprep.subr.bf16.mxu0 %v2034_v21  ;;  %v2040_v30 = vld [vmem:[#allocation7 + $0xac] ss:$12 sps:$4 sm:$0xff]  }
  0x7f   :  { %177 = vst [vmem:[#allocation2 + $0xc] sm:$0x1] %v176_v24  ;;  %v181_v25 = vld [vmem:[%s180_s23] sm:$0x1]  ;;  %s185_s16 = scalar_lea.vmem [#allocation5], %s1751_s4  ;;  %s190_s18 = scalar_lea.vmem [#allocation5], %s1752_s26 }
  0x80   :  { %182 = vst [vmem:[#allocation2 + $0xd] sm:$0x1] %v181_v25  ;;  %v186_v31 = vld [vmem:[%s185_s16] sm:$0x1]  ;;  %s196_s19 = scalar_lea.vmem [#allocation5], %s1753_s9  ;;  %s201_s7 = scalar_lea.vmem [#allocation5], %s2461_s27 }
  0x81   :  { %v2044_v32 = vld [vmem:[#allocation7 + $0x20] ss:$12 sps:$4 sm:$0xff]   ;;  %469 = vmatpush1.bf16.msra.mxu0 %v2036_v26  ;;  %187 = vst [vmem:[#allocation2 + $0xe] sm:$0x1] %v186_v31  ;;  %s206_s17 = scalar_lea.vmem [#allocation5], %s2463_s28  ;;  %s211_s20 = scalar_lea.vmem [#allocation5], %s2465_s30 }
  0x82   :  { %v191_v33 = vld [vmem:[%s190_s18] sm:$0x1]  ;;  %470 = vmatprep.subr.bf16.mxu0 %v2037_v27  ;;  %1915 = vmatprep.subr.bf16.mxu1 %v2044_v32  ;;  %v2042_v37 = vld [vmem:[#allocation7 + $0xa8] ss:$12 sps:$4 sm:$0xff]   ;;  %s216_s21 = scalar_lea.vmem [#allocation5], %s2467_s1  ;;  %s221_s22 = scalar_lea.vmem [#allocation5], %s2469_s29 }
  0x83   :  { %v197_v34 = vld [vmem:[%s196_s19] sm:$0x1]  ;;  %192 = vst [vmem:[#allocation2 + $0xf] sm:$0x1] %v191_v33  ;;  %s226_s6 = scalar_lea.vmem [#allocation5], %s2471_s12  ;;  %1916 = vmatpush3.bf16.msra.mxu1 %v2044_v32  ;;  %s231_s0 = scalar_lea.vmem [#allocation5], %s2473_s13 }
  0x84   :  { %198 = vst [vmem:[#allocation2 + $0x10] sm:$0x1] %v197_v34  ;;  %v202_v35 = vld [vmem:[%s201_s7] sm:$0x1]  ;;  %s237_s24 = scalar_lea.vmem [#allocation5], %s2475_s14  ;;  %s242_s25 = scalar_lea.vmem [#allocation5], %s2477_s15 }
  0x85   :  { %v207_v36 = vld [vmem:[%s206_s17] sm:$0x1]  ;;  %203 = vst [vmem:[#allocation2 + $0x11] sm:$0x1] %v202_v35  ;;  %471 = vmatpush1.bf16.msra.mxu0 %v2039_v29  ;;  %s1763_s4 = sld [smem:[#allocation4 + $0x182]]  ;;  %s1764_s23 = sld [smem:[#allocation4 + $0x183]] }
  0x86   :  { %208 = vst [vmem:[#allocation2 + $0x12] sm:$0x1] %v207_v36  ;;  %v212_v38 = vld [vmem:[%s211_s20] sm:$0x1]  ;;  %472 = vmatprep.subr.bf16.mxu0 %v2040_v30  ;;  %s1765_s26 = sld [smem:[#allocation4 + $0x184]]  ;;  %s1766_s9 = sld [smem:[#allocation4 + $0x185]] }
  0x87   :  { %v217_v39 = vld [vmem:[%s216_s21] sm:$0x1]  ;;  %213 = vst [vmem:[#allocation2 + $0x13] sm:$0x1] %v212_v38  ;;  %s1767_s27 = sld [smem:[#allocation4 + $0x186]]  ;;  %s1768_s28 = sld [smem:[#allocation4 + $0x187]] }
  0x88   :  { %218 = vst [vmem:[#allocation2 + $0x14] sm:$0x1] %v217_v39  ;;  %v222_v40 = vld [vmem:[%s221_s22] sm:$0x1]  ;;  %v2045_v47 = vld [vmem:[#allocation7 + $0x38] ss:$12 sps:$4 sm:$0xff]  }
  0x89   :  { %v227_v41 = vld [vmem:[%s226_s6] sm:$0x1]  ;;  %223 = vst [vmem:[#allocation2 + $0x15] sm:$0x1] %v222_v40  ;;  %473 = vmatpush1.bf16.msra.mxu0 %v2042_v37  ;;  %v2046_v49 = vld [vmem:[#allocation7 + $0x50] ss:$12 sps:$4 sm:$0xff]   ;;  %1917 = vmatprep.subr.bf16.mxu1 %v2045_v47 }
  0x8a   :  { %v2485_v42 = vld [vmem:[#allocation2] sm:$0xff]  ;;  %228 = vst [vmem:[#allocation2 + $0x16] sm:$0x1] %v227_v41  ;;  %v2490_v46 = vld [vmem:[#allocation2 + $0x8] sm:$0xff]  ;;  %1918 = vmatpush3.bf16.msra.mxu1 %v2045_v47  ;;  %v2050_v61 = vld [vmem:[#allocation7 + $0xb0] ss:$12 sps:$4 sm:$0xff]   ;;  %1933 = vmatprep.subr.bf16.mxu0 %v2292_v63 }
  0x8b   :  { %v232_v43 = vld [vmem:[%s231_s0] sm:$0x1]  ;;  %v279_v48 = vpack.c.bf16 %v2490_v46, %v2485_v42  ;;  %v2047_v50 = vld [vmem:[#allocation7 + $0x68] ss:$12 sps:$4 sm:$0xff]   ;;  %s247_s30 = scalar_lea.vmem [#allocation5], %s1763_s4  ;;  %s252_s1 = scalar_lea.vmem [#allocation5], %s1764_s23  ;;  %1919 = vmatprep.subr.bf16.mxu1 %v2046_v49 }
  0x8c   :  { %v238_v44 = vld [vmem:[%s237_s24] sm:$0x1]  ;;  %233 = vst [vmem:[#allocation2 + $0x17] sm:$0x1] %v232_v43  ;;  %s257_s29 = scalar_lea.vmem [#allocation5], %s1765_s26  ;;  %s262_s12 = scalar_lea.vmem [#allocation5], %s1766_s9 }
  0x8d   :  { %239 = vst [vmem:[#allocation2 + $0x18] sm:$0x1] %v238_v44  ;;  %v243_v45 = vld [vmem:[%s242_s25] sm:$0x1]  ;;  %491 = vmatmul.mubr.bf16.vlgmr.msra.gmra.mrb[0].mxu0 %v279_v48  ;;  %1929 = vmatprep.mubr.bf16.mxu1 %v279_v48  ;;  %s267_s13 = scalar_lea.vmem [#allocation5], %s1767_s27  ;;  %s272_s14 = scalar_lea.vmem [#allocation5], %s1768_s28 }
  0x8e   :  { %244 = vst [vmem:[#allocation2 + $0x19] sm:$0x1] %v243_v45  ;;  %500 = vmatprep.mubr.bf16.mxu0 %v2291_v0  ;;  %v248_v51 = vld [vmem:[%s247_s30] sm:$0x1]  ;;  %1920 = vmatpush3.bf16.msra.mxu1 %v2046_v49  ;;  %v2049_v59 = vld [vmem:[#allocation7 + $0x98] ss:$12 sps:$4 sm:$0xff]  }
  0x8f   :  { %v253_v52 = vld [vmem:[%s252_s1] sm:$0x1]  ;;  %249 = vst [vmem:[#allocation2 + $0x1a] sm:$0x1] %v248_v51  ;;  %1921 = vmatprep.subr.bf16.mxu1 %v2047_v50  ;;  %vm2293_vm0 = vmmov 0   ;;  %v2507_v2 = vshrl.u32 %v315_v1, 7 }
  0x90   :  { %254 = vst [vmem:[#allocation2 + $0x1b] sm:$0x1] %v253_v52  ;;  %v258_v53 = vld [vmem:[%s257_s29] sm:$0x1]  ;;  %vm624_vm1 = vcmask 1043456   ;;  %vm608_vm2 = vcmask 64512  }
  0x91   :  { %v263_v54 = vld [vmem:[%s262_s12] sm:$0x1]  ;;  %259 = vst [vmem:[#allocation2 + $0x1c] sm:$0x1] %v258_v53  ;;  %v321_v3 = vsub.s32 1, %v2507_v2  ;;  %v317_v6 = vsub.s32 0, %v2507_v2 }
  0x92   :  { %264 = vst [vmem:[#allocation2 + $0x1d] sm:$0x1] %v263_v54  ;;  %v268_v55 = vld [vmem:[%s267_s13] sm:$0x1]  ;;  %1922 = vmatpush3.bf16.msra.mxu1 %v2047_v50  ;;  %v325_v25 = vsub.s32 2, %v2507_v2  ;;  %s2294_s30 = smov 127  }
  0x93   :  { %v273_v56 = vld [vmem:[%s272_s14] sm:$0x1]  ;;  %269 = vst [vmem:[#allocation2 + $0x1e] sm:$0x1] %v268_v55  ;;  %v2495_v58 = vld [vmem:[#allocation2 + $0x10] sm:$0xff]  ;;  %vm1669_vm3 = vcmask 1040384  }
  0x94   :  { %274 = vst [vmem:[#allocation2 + $0x1f] sm:$0x1] %v273_v56  ;;  %v2048_v57 = vld [vmem:[#allocation7 + $0x80] ss:$12 sps:$4 sm:$0xff]   ;;  %vm1671_vm4 = vcmask 1041408   ;;  %vm1673_vm5 = vcmask 1042432  }
  0x95   :  { %1923 = vmatprep.subr.bf16.mxu1 %v2048_v57  ;;  %v313_v4 = vld [vmem:[%s2701_s5] sm:$0x7]  ;;  %vm1697_vm6 = vcmask 3072  }
  0x96   :  { %1924 = vmatpush3.bf16.msra.mxu1 %v2048_v57  ;;  %v322_v5 = vrot.slane %v313_v4, %v321_v3  ;;  %v318_v11 = vrot.slane %v313_v4, %v317_v6  ;;  %v2526_v28 = vrot.slane %v313_v4, %v325_v25  ;;  %v1793_v41 = vld [vmem:[%s2698_s2] ss:$0 sm:$0xff]  ;;  %v1795_v44 = vld [vmem:[%s2698_s2 + $0x1] ss:$0 sm:$0xff]  ;;  %v1797_v57 = vld [vmem:[%s2698_s2 + $0x2] ss:$0 sm:$0xff] }
  0x97   :  { %1925 = vmatprep.subr.bf16.mxu1 %v2049_v59 }
  0x9a   :  { %1926 = vmatpush3.bf16.msra.mxu1 %v2049_v59 }
  0x9b   :  { %v2497_v60 = vld [vmem:[#allocation2 + $0x18] sm:$0xff]  ;;  %1927 = vmatprep.subr.bf16.mxu1 %v2050_v61 }
  0x9c   :  { %v280_v62 = vpack.c.bf16 %v2497_v60, %v2495_v58 }
  0x9e   :  { %501 = vmatmul.mubr.bf16.gmra.mrb[4].mxu0 %v280_v62  ;;  %1928 = vmatpush3.bf16.msra.mxu1 %v2050_v61 }
  0x9f   :  { %1945 = vmatprep.subr.bf16.mxu1 %v2292_v63  ;;  %1935 = vmatprep.mubr.msk.bf16.mxu0 %vm2293_vm0, %v2292_v63 }
  0xa1   :  { %1930 = vmatmul.mubr.bf16.vlgmr.msra.gmra.mrb[0].mxu1 %v280_v62 }
  0xa2   :  { %1947 = vmatprep.mubr.msk.bf16.mxu1 %vm2293_vm0, %v2292_v63 }
 0x160   :  { %v492_v7 = vpop.f32.mrb[0].mxu0 }
 0x161   :  { %v494_v8 = vpop.f32.mrb[1].mxu0  ;;  %v493_v16 = vadd.f32 %v492_v7, %v318_v11  ;;  %v1799_v7 = vld [vmem:[%s2698_s2 + $0x3] ss:$0 sm:$0xff] }
 0x162   :  { %v495_v9 = vadd.f32 %v494_v8, %v322_v5  ;;  %v496_v10 = vpop.f32.mrb[2].mxu0 }
 0x163   :  { %v498_v12 = vpop.f32.mrb[3].mxu0  ;;  %v497_v17 = vadd.f32 %v496_v10, %v318_v11  ;;  %v560_v18 = vpack.c.bf16 %v493_v16, %v493_v16 }
 0x164   :  { %v561_v13 = vpack.c.bf16 %v495_v9, %v495_v9  ;;  %v499_v14 = vadd.f32 %v498_v12, %v322_v5 }
 0x165   :  { %v668_v19 = vpack.c.bf16 %v497_v17, %v497_v17 }
 0x166   :  { %v669_v15 = vpack.c.bf16 %v499_v14, %v499_v14  ;;  %1934 = vmatpush3.bf16.xpose.msra.mxu0 %v561_v13 }
 0x167   :  { %1939 = vmatprep.subr.bf16.mxu0 %v2292_v63 }
 0x168   :  { %1946 = vmatpush3.bf16.xpose.msra.mxu1 %v669_v15 }
 0x169   :  { %1957 = vmatprep.subr.bf16.mxu1 %v2292_v63 }
 0x16d   :  { %1936 = vmatmul.mubr.bf16.vlgmr.msra.gmra.mrb[8].mxu0 %v560_v18 }
 0x16e   :  { %1941 = vmatprep.mubr.msk.bf16.mxu0 %vm2293_vm0, %v2292_v63 }
 0x16f   :  { %1948 = vmatmul.mubr.bf16.vlgmr.msra.gmra.mrb[4].mxu1 %v668_v19 }
 0x170   :  { %1959 = vmatprep.mubr.msk.bf16.mxu1 %vm2293_vm0, %v2292_v63 }
 0x171   :  { %v502_v20 = vpop.f32.mrb[4].mxu0 }
 0x172   :  { %v504_v21 = vpop.f32.mrb[5].mxu0  ;;  %v503_v27 = vadd.f32 %v502_v20, %v318_v11 }
 0x173   :  { %v505_v22 = vadd.f32 %v504_v21, %v322_v5  ;;  %v506_v23 = vpop.f32.mrb[6].mxu0 }
 0x174   :  { %v508_v24 = vpop.f32.mrb[7].mxu0  ;;  %v2528_v30 = vpop.f32.mrb[0].mxu1  ;;  %v774_v32 = vpack.c.bf16 %v503_v27, %v503_v27  ;;  %v507_v37 = vadd.f32 %v506_v23, %v318_v11 }
 0x175   :  { %v775_v26 = vpack.c.bf16 %v505_v22, %v505_v22  ;;  %v509_v29 = vadd.f32 %v508_v24, %v322_v5  ;;  %v545_v31 = vpop.f32.mrb[1].mxu1 }
 0x176   :  { %v546_v33 = vadd.f32 %v545_v31, %v2526_v28  ;;  %v2531_v34 = vpop.f32.mrb[2].mxu1  ;;  %v880_v39 = vpack.c.bf16 %v507_v37, %v507_v37  ;;  %v2051_v37 = vld [vmem:[#allocation9] sm:$0xff]  }
 0x177   :  { %1958 = vmatpush3.bf16.xpose.msra.mxu1 %v775_v26  ;;  %v881_v35 = vpack.c.bf16 %v509_v29, %v509_v29  ;;  %v2537_v40 = vpop.f32.mrb[3].mxu1 }
 0x178   :  { %1969 = vmatprep.subr.bf16.mxu1 %v2292_v63  ;;  %v562_v36 = vpack.c.bf16 %v546_v33, %v546_v33 }
 0x17a   :  { %v626_v38 = vsel %vm624_vm1, %v562_v36, 0 }
 0x17b   :  { %1940 = vmatpush3.bf16.msra.mxu0 %v626_v38  ;;  %v2052_v38 = vld [vmem:[#allocation9 + $0x8] sm:$0xff]  }
 0x17c   :  { %1951 = vmatprep.subr.bf16.mxu0 %v2292_v63 }
 0x17e   :  { %1960 = vmatmul.mubr.bf16.vlgmr.msra.gmra.mrb[8].mxu1 %v774_v32 }
 0x17f   :  { %1970 = vmatpush3.bf16.xpose.msra.mxu1 %v881_v35  ;;  %1971 = vmatprep.mubr.msk.bf16.mxu1 %vm2293_vm0, %v2292_v63 }
 0x180   :  { %1981 = vmatprep.subr.bf16.mxu1 %v2051_v37 }
 0x186   :  { %1972 = vmatmul.mubr.bf16.vlgmr.msra.gmra.mrb[12].mxu1 %v880_v39 }
 0x187   :  { %1982 = vmatpush3.bf16.msra.mxu1 %v2051_v37 }
 0x188   :  { %1983 = vmatprep.subr.bf16.mxu1 %v2052_v38 }
 0x18b   :  { %1984 = vmatpush3.bf16.msra.mxu1 %v2052_v38 }
 0x240   :  { %v602_v43 = vpop.f32.mrb[8].mxu0 }
 0x241   :  { %v603_v45 = vadd.f32 %v1793_v41, %v602_v43  ;;  %v1937_v47 = vpop.f32.mrb[9].mxu0  ;;  %v549_v43 = vadd.f32 %v2537_v40, %v2526_v28 }
 0x242   :  { %v605_v48 = vpop.f32.mrb[10].mxu0  ;;  %v710_v49 = vpop.f32.mrb[4].mxu1 }
 0x243   :  { %v711_v50 = vadd.f32 %v1795_v44, %v710_v49  ;;  %v1938_v51 = vpop.f32.mrb[11].mxu0  ;;  %v1949_v52 = vpop.f32.mrb[5].mxu1  ;;  %v609_v53 = vsel %vm608_vm2, %v603_v45, -inf }
 0x244   :  { %v713_v54 = vpop.f32.mrb[6].mxu1  ;;  %610 = vmax.xlane.f32.xlu0 %v609_v53  ;;  %v554_v51 = vadd.f32 %v2528_v30, %v2526_v28  ;;  %v557_v30 = vadd.f32 %v2531_v34, %v2526_v28 }
 0x245   :  { %v1950_v55 = vpop.f32.mrb[7].mxu1  ;;  %v716_v56 = vsel %vm608_vm2, %v711_v50, -inf }
 0x246   :  { %v776_v40 = vpack.c.bf16 %v554_v51, %v554_v51  ;;  %v2062_v51 = vld [vmem:[#allocation10 + $0x10] ss:$8 sps:$4 sm:$0xff]  }
 0x248   :  { %717 = vmax.xlane.f32.xlu0 %v716_v56  ;;  %v838_v56 = vsel %vm624_vm1, %v776_v40, 0 }
 0x251   :  { %v816_v59 = vpop.f32.mrb[8].mxu1 }
 0x252   :  { %v817_v61 = vadd.f32 %v1797_v57, %v816_v59  ;;  %v1961_v62 = vpop.f32.mrb[9].mxu1 }
 0x253   :  { %v819_v1 = vpop.f32.mrb[10].mxu1 }
 0x254   :  { %v822_v4 = vsel %vm608_vm2, %v817_v61, -inf  ;;  %v1962_v5 = vpop.f32.mrb[11].mxu1 }
 0x255   :  { %823 = vmax.xlane.f32.xlu1 %v822_v4  ;;  %v2053_v5 = vld [vmem:[#allocation9 + $0x10] sm:$0xff]  }
 0x256   :  { %1985 = vmatprep.subr.bf16.mxu1 %v2053_v5 }
 0x257   :  { %1986 = vmatpush3.bf16.msra.mxu1 %v2053_v5  ;;  %v2068_v5 = vld [vmem:[#allocation10 + $0x30] ss:$8 sps:$4 sm:$0xff]  }
 0x259   :  { %v922_v8 = vpop.f32.mrb[12].mxu1 }
 0x25a   :  { %v923_v9 = vadd.f32 %v1799_v7, %v922_v8  ;;  %v1973_v10 = vpop.f32.mrb[13].mxu1  ;;  %v2054_v7 = vld [vmem:[#allocation9 + $0x18] sm:$0xff]   ;;  %v2055_v8 = vld [vmem:[#allocation9 + $0x20] sm:$0xff]  }
 0x25b   :  { %v925_v11 = vpop.f32.mrb[14].mxu1  ;;  %1987 = vmatprep.subr.bf16.mxu1 %v2054_v7  ;;  %v2057_v10 = vld [vmem:[#allocation9 + $0x30] sm:$0xff]  }
 0x25c   :  { %v1974_v12 = vpop.f32.mrb[15].mxu1  ;;  %v928_v13 = vsel %vm608_vm2, %v923_v9, -inf  ;;  %1988 = vmatpush3.bf16.msra.mxu1 %v2054_v7  ;;  %v2073_v7 = vld [vmem:[#allocation10 + $0x44] ss:$8 sps:$4 sm:$0xff]  }
 0x25d   :  { %929 = vmax.xlane.f32.xlu1 %v928_v13  ;;  %1989 = vmatprep.subr.bf16.mxu1 %v2055_v8 }
 0x260   :  { %1990 = vmatpush3.bf16.msra.mxu1 %v2055_v8  ;;  %v2071_v8 = vld [vmem:[#allocation10 + $0x40] ss:$8 sps:$4 sm:$0xff]  }
 0x2d1   :  { %v611_v14 = vpop.xlane.xlu0 %610 }
 0x2d2   :  { %v612_v15 = vsub.f32 %v603_v45, %v611_v14  ;;  %v670_v45 = vpack.c.bf16 %v549_v43, %v549_v43 }
 0x2d4   :  { %v613_v16 = vmul.f32 1.442695, %v612_v15  ;;  %v732_v52 = vsel %vm624_vm1, %v670_v45, 0 }
 0x2d5   :  { %v718_v17 = vpop.xlane.xlu0 %717 }
 0x2d6   :  { %2099 = vpow2.f32 %v613_v16  ;;  %v719_v18 = vsub.f32 %v711_v50, %v718_v17 }
 0x2d8   :  { %v720_v19 = vmul.f32 1.442695, %v719_v18 }
 0x2da   :  { %2101 = vpow2.f32 %v720_v19 }
 0x2e0   :  { %v2100_v21 = vpop.eup %2099 }
 0x2e1   :  { %v615_v23 = vsel %vm608_vm2, %v2100_v21, 0.0 }
 0x2e2   :  { %v824_v20 = vpop.xlane.xlu1 %823  ;;  %616 = vadd.xlane.f32.xlu0 %v615_v23 }
 0x2e3   :  { %v825_v22 = vsub.f32 %v817_v61, %v824_v20  ;;  %v882_v61 = vpack.c.bf16 %v557_v30, %v557_v30 }
 0x2e4   :  { %v2102_v25 = vpop.eup %2101 }
 0x2e5   :  { %v826_v24 = vmul.f32 1.442695, %v825_v22  ;;  %v722_v26 = vsel %vm608_vm2, %v2102_v25, 0.0  ;;  %v944_v1 = vsel %vm624_vm1, %v882_v61, 0 }
 0x2e6   :  { %723 = vadd.xlane.f32.xlu1 %v722_v26 }
 0x2e7   :  { %2103 = vpow2.f32 %v826_v24 }
 0x2ea   :  { %v930_v27 = vpop.xlane.xlu1 %929 }
 0x2eb   :  { %v931_v29 = vsub.f32 %v923_v9, %v930_v27  ;;  %v2056_v9 = vld [vmem:[#allocation9 + $0x28] sm:$0xff]  }
 0x2ec   :  { %1991 = vmatprep.subr.bf16.mxu1 %v2056_v9 }
 0x2ed   :  { %v932_v31 = vmul.f32 1.442695, %v931_v29  ;;  %1992 = vmatpush3.bf16.msra.mxu1 %v2056_v9  ;;  %v2076_v9 = vld [vmem:[#allocation10 + $0x54] ss:$8 sps:$4 sm:$0xff]  }
 0x2ee   :  { %1993 = vmatprep.subr.bf16.mxu1 %v2057_v10 }
 0x2ef   :  { %2105 = vpow2.f32 %v932_v31  ;;  %v1801_v31 = vld [vmem:[%s2706_s10] ss:$0 sm:$0xff] }
 0x2f1   :  { %v2104_v32 = vpop.eup %2103  ;;  %1994 = vmatpush3.bf16.msra.mxu1 %v2057_v10  ;;  %v2074_v10 = vld [vmem:[#allocation10 + $0x50] ss:$8 sps:$4 sm:$0xff]  }
 0x2f2   :  { %v828_v33 = vsel %vm608_vm2, %v2104_v32, 0.0 }
 0x2f3   :  { %829 = vadd.xlane.f32.xlu0 %v828_v33 }
 0x2f9   :  { %v2106_v35 = vpop.eup %2105 }
 0x2fa   :  { %v934_v36 = vsel %vm608_vm2, %v2106_v35, 0.0 }
 0x2fb   :  { %935 = vadd.xlane.f32.xlu1 %v934_v36 }
 0x36f   :  { %v617_v39 = vpop.xlane.xlu0 %616 }
 0x370   :  { %2107 = vrcp.f32 %v617_v39 }
 0x373   :  { %v724_v41 = vpop.xlane.xlu1 %723 }
 0x374   :  { %2109 = vrcp.f32 %v724_v41 }
 0x37a   :  { %v2108_v44 = vpop.eup %2107 }
 0x37b   :  { %v619_v47 = vmul.f32 %v2108_v44, %v2100_v21 }
 0x37d   :  { %v620_v49 = vpack.c.bf16 %v619_v47, %v619_v47 }
 0x37e   :  { %v2110_v50 = vpop.eup %2109 }
 0x37f   :  { %1942 = vmatmul.mubr.msk.bf16.vlgmr.msra.gmra.mrb[12].mxu0 %vm608_vm2, %v620_v49  ;;  %v726_v53 = vmul.f32 %v2110_v50, %v2102_v25  ;;  %v2061_v49 = vld [vmem:[#allocation10 + $0x4] ss:$8 sps:$4 sm:$0xff]   ;;  %v2064_v50 = vld [vmem:[#allocation10 + $0x14] ss:$8 sps:$4 sm:$0xff]  }
 0x380   :  { %v830_v48 = vpop.xlane.xlu0 %829  ;;  %1952 = vmatpush3.bf16.msra.mxu0 %v732_v52  ;;  %1953 = vmatprep.mubr.msk.bf16.mxu0 %vm2293_vm0, %v2292_v63 }
 0x381   :  { %2111 = vrcp.f32 %v830_v48  ;;  %1963 = vmatprep.subr.bf16.mxu0 %v2292_v63  ;;  %v727_v55 = vpack.c.bf16 %v726_v53, %v726_v53  ;;  %v2059_v48 = vld [vmem:[#allocation10] ss:$8 sps:$4 sm:$0xff]  }
 0x387   :  { %1954 = vmatmul.mubr.msk.bf16.vlgmr.msra.gmra.mrb[16].mxu0 %vm608_vm2, %v727_v55 }
 0x388   :  { %v936_v54 = vpop.xlane.xlu1 %935  ;;  %1964 = vmatpush3.bf16.msra.mxu0 %v838_v56  ;;  %1965 = vmatprep.mubr.msk.bf16.mxu0 %vm2293_vm0, %v2292_v63 }
 0x389   :  { %2113 = vrcp.f32 %v936_v54  ;;  %1975 = vmatprep.subr.bf16.mxu0 %v2292_v63 }
 0x38b   :  { %v2112_v57 = vpop.eup %2111 }
 0x38c   :  { %v832_v59 = vmul.f32 %v2112_v57, %v2104_v32 }
 0x38e   :  { %v833_v62 = vpack.c.bf16 %v832_v59, %v832_v59 }
 0x390   :  { %1966 = vmatmul.mubr.msk.bf16.vlgmr.msra.gmra.mrb[20].mxu0 %vm608_vm2, %v833_v62 }
 0x391   :  { %1976 = vmatpush3.bf16.msra.mxu0 %v944_v1  ;;  %1977 = vmatprep.mubr.msk.bf16.mxu0 %vm2293_vm0, %v2292_v63  ;;  %v2058_v63 = vld [vmem:[#allocation9 + $0x38] sm:$0xff]  }
 0x392   :  { %1995 = vmatprep.subr.bf16.mxu1 %v2058_v63  ;;  %1283 = vmatprep.subr.bf16.mxu0 %v2061_v49 }
 0x393   :  { %v2114_v4 = vpop.eup %2113  ;;  %1996 = vmatpush3.bf16.msra.mxu1 %v2058_v63  ;;  %v2079_v63 = vld [vmem:[#allocation10 + $0x64] ss:$8 sps:$4 sm:$0xff]  }
 0x394   :  { %v938_v28 = vmul.f32 %v2114_v4, %v2106_v35  ;;  %v2067_v4 = vld [vmem:[#allocation10 + $0x24] ss:$8 sps:$4 sm:$0xff]  }
 0x396   :  { %v939_v34 = vpack.c.bf16 %v938_v28, %v938_v28  ;;  %v2065_v28 = vld [vmem:[#allocation10 + $0x20] ss:$8 sps:$4 sm:$0xff]  }
 0x398   :  { %1978 = vmatmul.mubr.msk.bf16.vlgmr.msra.gmra.mrb[24].mxu0 %vm608_vm2, %v939_v34  ;;  %v2070_v34 = vld [vmem:[#allocation10 + $0x34] ss:$8 sps:$4 sm:$0xff]  }
 0x399   :  { %1315 = vmatprep.mubr.bf16.mxu0 %v2291_v0  ;;  %1284 = vmatpush1.bf16.msra.mxu0 %v2059_v48 }
 0x39a   :  { %1285 = vmatprep.subr.bf16.mxu0 %v2064_v50 }
 0x39d   :  { %1286 = vmatpush1.bf16.msra.mxu0 %v2062_v51 }
 0x39e   :  { %1287 = vmatprep.subr.bf16.mxu0 %v2067_v4 }
 0x3a1   :  { %1288 = vmatpush1.bf16.msra.mxu0 %v2065_v28 }
 0x3a2   :  { %1289 = vmatprep.subr.bf16.mxu0 %v2070_v34 }
 0x3a5   :  { %1290 = vmatpush1.bf16.msra.mxu0 %v2068_v5 }
 0x3a6   :  { %1291 = vmatprep.subr.bf16.mxu0 %v2073_v7 }
 0x3a9   :  { %1292 = vmatpush1.bf16.msra.mxu0 %v2071_v8 }
 0x3aa   :  { %1293 = vmatprep.subr.bf16.mxu0 %v2076_v9 }
 0x3ad   :  { %1294 = vmatpush1.bf16.msra.mxu0 %v2074_v10 }
 0x3ae   :  { %1295 = vmatprep.subr.bf16.mxu0 %v2079_v63 }
 0x452   :  { %v662_v11 = vpop.f32.mrb[12].mxu0 }
 0x453   :  { %v1943_v12 = vpop.f32.mrb[13].mxu0 }
 0x454   :  { %v665_v13 = vpop.f32.mrb[14].mxu0  ;;  %v2082_v12 = vld [vmem:[#allocation10 + $0x74] ss:$8 sps:$4 sm:$0xff]  }
 0x455   :  { %v1944_v14 = vpop.f32.mrb[15].mxu0  ;;  %v2080_v13 = vld [vmem:[#allocation10 + $0x70] ss:$8 sps:$4 sm:$0xff]  }
 0x45a   :  { %v768_v15 = vpop.f32.mrb[16].mxu0 }
 0x45b   :  { %v986_v16 = vpack.c.bf16 %v768_v15, %v662_v11  ;;  %v1955_v17 = vpop.f32.mrb[17].mxu0  ;;  %v2077_v11 = vld [vmem:[#allocation10 + $0x60] ss:$8 sps:$4 sm:$0xff]  }
 0x45c   :  { %v771_v18 = vpop.f32.mrb[18].mxu0  ;;  %1296 = vmatpush1.bf16.msra.mxu0 %v2077_v11 }
 0x45d   :  { %v1956_v19 = vpop.f32.mrb[19].mxu0  ;;  %1997 = vmatprep.mubr.bf16.mxu1 %v986_v16  ;;  %1297 = vmatprep.subr.bf16.mxu0 %v2082_v12 }
 0x460   :  { %1298 = vmatpush1.bf16.msra.mxu0 %v2080_v13 }
 0x463   :  { %v874_v20 = vpop.f32.mrb[20].mxu0 }
 0x464   :  { %v1967_v21 = vpop.f32.mrb[21].mxu0 }
 0x465   :  { %v877_v22 = vpop.f32.mrb[22].mxu0 }
 0x466   :  { %v1968_v23 = vpop.f32.mrb[23].mxu0 }
 0x46b   :  { %v980_v24 = vpop.f32.mrb[24].mxu0 }
 0x46c   :  { %v987_v25 = vpack.c.bf16 %v980_v24, %v874_v20  ;;  %v1979_v26 = vpop.f32.mrb[25].mxu0 }
 0x46d   :  { %v983_v27 = vpop.f32.mrb[26].mxu0 }
 0x46e   :  { %v1980_v29 = vpop.f32.mrb[27].mxu0  ;;  %1998 = vmatmul.mubr.bf16.vlgmr.msra.gmra.mrb[16].mxu1 %v987_v25  ;;  %v1810_v27 = vld [vmem:[%s2706_s10 + $0x1] ss:$0 sm:$0xff] }
 0x541   :  { %v1999_v32 = vpop.f32.mrb[16].mxu1 }
 0x542   :  { %v1091_v33 = vpop.f32.mrb[17].mxu1  ;;  %v1100_v38 = vadd.f32 %v1999_v32, %v1801_v31 }
 0x543   :  { %v1092_v35 = vadd.f32 %v1801_v31, %v1091_v33  ;;  %v2000_v36 = vpop.f32.mrb[18].mxu1 }
 0x544   :  { %v1094_v37 = vpop.f32.mrb[19].mxu1  ;;  %v1103_v43 = vadd.f32 %v2000_v36, %v1801_v31  ;;  %v1108_v45 = vadd.f32 %v1100_v38, %v2495_v58  ;;  %v1811_v36 = vld [vmem:[%s2706_s10 + $0x2] ss:$0 sm:$0xff] }
 0x545   :  { %v1095_v39 = vadd.f32 %v1801_v31, %v1094_v37  ;;  %v1106_v41 = vadd.f32 %v1092_v35, %v2485_v42 }
 0x546   :  { %v1109_v47 = vadd.f32 %v1103_v43, %v2497_v60 }
 0x547   :  { %1112 = vadd.xlane.f32.xlu0 %v1106_v41  ;;  %v1107_v44 = vadd.f32 %v1095_v39, %v2490_v46 }
 0x549   :  { %1114 = vadd.xlane.f32.xlu1 %v1107_v44 }
 0x54b   :  { %1116 = vadd.xlane.f32.xlu0 %v1108_v45 }
 0x54d   :  { %1118 = vadd.xlane.f32.xlu1 %v1109_v47 }
 0x5d4   :  { %v1113_v42 = vpop.xlane.xlu0 %1112 }
 0x5d5   :  { %v1121_v52 = vmul.f32 0.0078125, %v1113_v42  ;;  %v2083_v42 = vld [vmem:[#allocation12 + $0x40] sm:$0xff]  }
 0x5d6   :  { %v1115_v53 = vpop.xlane.xlu1 %1114  ;;  %1885 = vmatprep.subr.bf16.mxu1 %v2083_v42 }
 0x5d7   :  { %v1125_v40 = vsub.f32 %v1106_v41, %v1121_v52  ;;  %v1122_v46 = vmul.f32 0.0078125, %v1115_v53  ;;  %v2084_v52 = vld [vmem:[#allocation12] sm:$0xff]   ;;  %v2085_v53 = vld [vmem:[#allocation12 + $0x48] sm:$0xff]  }
 0x5d8   :  { %v1117_v54 = vpop.xlane.xlu0 %1116  ;;  %1886 = vmatpush3.bf16.msra.mxu1 %v2084_v52 }
 0x5d9   :  { %v1126_v55 = vsub.f32 %v1107_v44, %v1122_v46  ;;  %v1123_v58 = vmul.f32 0.0078125, %v1117_v54  ;;  %v1129_v56 = vmul.f32 %v1125_v40, %v1125_v40  ;;  %1887 = vmatprep.subr.bf16.mxu1 %v2085_v53  ;;  %v2087_v46 = vld [vmem:[#allocation12 + $0x50] sm:$0xff]  }
 0x5da   :  { %v1119_v30 = vpop.xlane.xlu1 %1118  ;;  %v2088_v54 = vld [vmem:[#allocation12 + $0x10] sm:$0xff]  }
 0x5db   :  { %v1127_v60 = vsub.f32 %v1108_v45, %v1123_v58  ;;  %v1124_v57 = vmul.f32 0.0078125, %v1119_v30  ;;  %1133 = vadd.xlane.f32.xlu0 %v1129_v56  ;;  %v1130_v59 = vmul.f32 %v1126_v55, %v1126_v55  ;;  %v2091_v58 = vld [vmem:[#allocation12 + $0x60] sm:$0xff]   ;;  %v2093_v30 = vld [vmem:[#allocation12 + $0x68] sm:$0xff]  }
 0x5dc   :  { %v2092_v56 = vld [vmem:[#allocation12 + $0x20] sm:$0xff]  }
 0x5dd   :  { %v1128_v61 = vsub.f32 %v1109_v47, %v1124_v57  ;;  %1135 = vadd.xlane.f32.xlu1 %v1130_v59  ;;  %v1131_v62 = vmul.f32 %v1127_v60, %v1127_v60  ;;  %v2095_v57 = vld [vmem:[#allocation12 + $0x70] sm:$0xff]  }
 0x5de   :  { %v2096_v59 = vld [vmem:[#allocation12 + $0x30] sm:$0xff]  }
 0x5df   :  { %1137 = vadd.xlane.f32.xlu0 %v1131_v62  ;;  %v1132_v1 = vmul.f32 %v1128_v61, %v1128_v61  ;;  %v2098_v62 = vld [vmem:[#allocation12 + $0x38] sm:$0xff]  }
 0x5e1   :  { %1139 = vadd.xlane.f32.xlu1 %v1132_v1  ;;  %v1191_v1 = vld [vmem:[%s2704_s8] sm:$0x3] }
 0x5e2   :  { %v1196_v4 = vrot.slane %v1191_v1, %v317_v6  ;;  %v1200_v28 = vrot.slane %v1191_v1, %v321_v3 }
 0x668   :  { %v1134_v14 = vpop.xlane.xlu0 %1133 }
 0x669   :  { %v1141_v15 = vmul.f32 0.0078125, %v1134_v14 }
 0x66a   :  { %v1136_v16 = vpop.xlane.xlu1 %1135 }
 0x66b   :  { %v1145_v17 = vadd.f32 1e-05, %v1141_v15  ;;  %v1142_v18 = vmul.f32 0.0078125, %v1136_v16 }
 0x66c   :  { %v1138_v19 = vpop.xlane.xlu0 %1137 }
 0x66d   :  { %2115 = vrsqrt.f32 %v1145_v17  ;;  %v1146_v20 = vadd.f32 1e-05, %v1142_v18  ;;  %v1143_v21 = vmul.f32 0.0078125, %v1138_v19 }
 0x66e   :  { %v1140_v22 = vpop.xlane.xlu1 %1139 }
 0x66f   :  { %2117 = vrsqrt.f32 %v1146_v20  ;;  %v1147_v23 = vadd.f32 1e-05, %v1143_v21  ;;  %v1144_v24 = vmul.f32 0.0078125, %v1140_v22 }
 0x671   :  { %2119 = vrsqrt.f32 %v1147_v23  ;;  %v1148_v25 = vadd.f32 1e-05, %v1144_v24 }
 0x673   :  { %2121 = vrsqrt.f32 %v1148_v25 }
 0x677   :  { %v2116_v26 = vpop.eup %2115 }
 0x678   :  { %v1153_v29 = vmul.f32 %v2116_v26, %v1125_v40  ;;  %v2086_v40 = vld [vmem:[#allocation12 + $0x8] sm:$0xff]  }
 0x679   :  { %v2118_v31 = vpop.eup %2117  ;;  %1888 = vmatpush3.bf16.msra.mxu1 %v2086_v40 }
 0x67a   :  { %v1154_v32 = vmul.f32 %v2118_v31, %v1126_v55  ;;  %v1161_v33 = vmul.f32 %v1810_v27, %v1153_v29  ;;  %1889 = vmatprep.subr.bf16.mxu1 %v2087_v46  ;;  %v2090_v55 = vld [vmem:[#allocation12 + $0x18] sm:$0xff]  }
 0x67b   :  { %v2120_v35 = vpop.eup %2119 }
 0x67c   :  { %v1162_v37 = vmul.f32 %v1810_v27, %v1154_v32  ;;  %v2594_v39 = vadd.f32 %v1811_v36, %v1161_v33  ;;  %v1155_v43 = vmul.f32 %v2120_v35, %v1127_v60  ;;  %v2094_v60 = vld [vmem:[#allocation12 + $0x28] sm:$0xff]  }
 0x67d   :  { %v2122_v38 = vpop.eup %2121  ;;  %1890 = vmatpush3.bf16.msra.mxu1 %v2088_v54 }
 0x67e   :  { %v2596_v41 = vadd.f32 %v1811_v36, %v1162_v37  ;;  %v1156_v44 = vmul.f32 %v2122_v38, %v1128_v61  ;;  %v1163_v48 = vmul.f32 %v1810_v27, %v1155_v43  ;;  %v2097_v61 = vld [vmem:[#allocation12 + $0x78] sm:$0xff]  }
 0x680   :  { %v1173_v45 = vpack.c.bf16 %v2596_v41, %v2594_v39  ;;  %v1164_v47 = vmul.f32 %v1810_v27, %v1156_v44  ;;  %v2603_v50 = vadd.f32 %v1811_v36, %v1163_v48 }
 0x682   :  { %1316 = vmatmul.mubr.bf16.vlgmr.msra.gmra.mrb[28].mxu0 %v1173_v45  ;;  %v2601_v49 = vadd.f32 %v1811_v36, %v1164_v47 }
 0x683   :  { %1325 = vmatprep.mubr.bf16.mxu0 %v2291_v0  ;;  %v2089_v0 = vld [vmem:[#allocation12 + $0x58] sm:$0xff]  }
 0x684   :  { %v1174_v51 = vpack.c.bf16 %v2601_v49, %v2603_v50  ;;  %1891 = vmatprep.subr.bf16.mxu1 %v2089_v0 }
 0x685   :  { %1892 = vmatpush3.bf16.msra.mxu1 %v2090_v55 }
 0x686   :  { %1893 = vmatprep.subr.bf16.mxu1 %v2091_v58 }
 0x689   :  { %1894 = vmatpush3.bf16.msra.mxu1 %v2092_v56 }
 0x68a   :  { %1326 = vmatmul.mubr.bf16.gmra.mrb[32].mxu0 %v1174_v51  ;;  %1895 = vmatprep.subr.bf16.mxu1 %v2093_v30 }
 0x68d   :  { %1896 = vmatpush3.bf16.msra.mxu1 %v2094_v60 }
 0x68e   :  { %1897 = vmatprep.subr.bf16.mxu1 %v2095_v57 }
 0x691   :  { %1898 = vmatpush3.bf16.msra.mxu1 %v2096_v59 }
 0x692   :  { %1899 = vmatprep.subr.bf16.mxu1 %v2097_v61 }
 0x695   :  { %1900 = vmatpush3.bf16.msra.mxu1 %v2098_v62 }
 0x755   :  { %v1317_v34 = vpop.f32.mrb[28].mxu0 }
 0x756   :  { %v2614_v5 = vadd.f32 %v1317_v34, %v1196_v4  ;;  %v1319_v7 = vpop.f32.mrb[29].mxu0 }
 0x757   :  { %v2616_v8 = vadd.f32 %v1319_v7, %v1200_v28  ;;  %v1321_v9 = vpop.f32.mrb[30].mxu0 }
 0x758   :  { %v1336_v10 = vmul.f32 %v2614_v5, %v2614_v5  ;;  %v2620_v63 = vadd.f32 %v1321_v9, %v1196_v4  ;;  %v1323_v11 = vpop.f32.mrb[31].mxu0 }
 0x759   :  { %v1337_v12 = vmul.f32 %v2616_v8, %v2616_v8  ;;  %v2624_v6 = vadd.f32 %v1323_v11, %v1200_v28 }
 0x75a   :  { %v1344_v2 = vmul.f32 %v1336_v10, %v2614_v5  ;;  %v1338_v3 = vmul.f32 %v2620_v63, %v2620_v63 }
 0x75b   :  { %v1345_v13 = vmul.f32 %v1337_v12, %v2616_v8  ;;  %v1339_v14 = vmul.f32 %v2624_v6, %v2624_v6 }
 0x75c   :  { %v1352_v15 = vmul.f32 0.044715, %v1344_v2  ;;  %v1346_v16 = vmul.f32 %v1338_v3, %v2620_v63 }
 0x75d   :  { %v1353_v17 = vmul.f32 0.044715, %v1345_v13  ;;  %v1347_v18 = vmul.f32 %v1339_v14, %v2624_v6  ;;  %v1327_v19 = vpop.f32.mrb[32].mxu0 }
 0x75e   :  { %v1360_v20 = vadd.f32 %v1352_v15, %v2614_v5  ;;  %v1354_v21 = vmul.f32 0.044715, %v1346_v16  ;;  %v2635_v22 = vadd.f32 %v1327_v19, %v1196_v4  ;;  %v1329_v23 = vpop.f32.mrb[33].mxu0 }
 0x75f   :  { %v1361_v24 = vadd.f32 %v1353_v17, %v2616_v8  ;;  %v1355_v25 = vmul.f32 0.044715, %v1347_v18  ;;  %v2638_v26 = vadd.f32 %v1329_v23, %v1200_v28  ;;  %v1331_v27 = vpop.f32.mrb[34].mxu0 }
 0x760   :  { %v1368_v29 = vmul.f32 0.7978846, %v1360_v20  ;;  %v1362_v31 = vadd.f32 %v1354_v21, %v2620_v63  ;;  %v1340_v32 = vmul.f32 %v2635_v22, %v2635_v22  ;;  %v2643_v33 = vadd.f32 %v1331_v27, %v1196_v4  ;;  %v1333_v35 = vpop.f32.mrb[35].mxu0 }
 0x761   :  { %v1369_v36 = vmul.f32 0.7978846, %v1361_v24  ;;  %v1363_v37 = vadd.f32 %v1355_v25, %v2624_v6  ;;  %v1341_v38 = vmul.f32 %v2638_v26, %v2638_v26  ;;  %v2648_v43 = vadd.f32 %v1333_v35, %v1200_v28 }
 0x762   :  { %2123 = vtanh.f32 %v1368_v29  ;;  %v1370_v44 = vmul.f32 0.7978846, %v1362_v31  ;;  %v1348_v45 = vmul.f32 %v1340_v32, %v2635_v22  ;;  %v1342_v47 = vmul.f32 %v2643_v33, %v2643_v33 }
 0x763   :  { %2125 = vtanh.f32 %v1369_v36  ;;  %v1371_v48 = vmul.f32 0.7978846, %v1363_v37  ;;  %v1349_v51 = vmul.f32 %v1341_v38, %v2638_v26  ;;  %v1343_v42 = vmul.f32 %v2648_v43, %v2648_v43 }
 0x764   :  { %2127 = vtanh.f32 %v1370_v44  ;;  %v1356_v52 = vmul.f32 0.044715, %v1348_v45  ;;  %v1350_v53 = vmul.f32 %v1342_v47, %v2643_v33 }
 0x765   :  { %2129 = vtanh.f32 %v1371_v48  ;;  %v1357_v40 = vmul.f32 0.044715, %v1349_v51  ;;  %v1351_v46 = vmul.f32 %v1343_v42, %v2648_v43 }
 0x766   :  { %v1364_v54 = vadd.f32 %v1356_v52, %v2635_v22  ;;  %v1358_v0 = vmul.f32 0.044715, %v1350_v53 }
 0x767   :  { %v1365_v55 = vadd.f32 %v1357_v40, %v2638_v26  ;;  %v1359_v58 = vmul.f32 0.044715, %v1351_v46 }
 0x768   :  { %v1372_v56 = vmul.f32 0.7978846, %v1364_v54  ;;  %v1366_v30 = vadd.f32 %v1358_v0, %v2643_v33 }
 0x769   :  { %v1373_v60 = vmul.f32 0.7978846, %v1365_v55  ;;  %v1367_v57 = vadd.f32 %v1359_v58, %v2648_v43 }
 0x76a   :  { %2131 = vtanh.f32 %v1372_v56  ;;  %v1374_v59 = vmul.f32 0.7978846, %v1366_v30 }
 0x76b   :  { %2133 = vtanh.f32 %v1373_v60  ;;  %v1375_v61 = vmul.f32 0.7978846, %v1367_v57 }
 0x76c   :  { %v2124_v62 = vpop.eup %2123  ;;  %2135 = vtanh.f32 %v1374_v59 }
 0x76d   :  { %v2126_v1 = vpop.eup %2125  ;;  %v1384_v4 = vadd.f32 1.0, %v2124_v62  ;;  %2137 = vtanh.f32 %v1375_v61 }
 0x76e   :  { %v2128_v28 = vpop.eup %2127  ;;  %v1385_v34 = vadd.f32 1.0, %v2126_v1 }
 0x76f   :  { %v2130_v7 = vpop.eup %2129  ;;  %v1392_v9 = vmul.f32 0.5, %v1384_v4  ;;  %v1386_v10 = vadd.f32 1.0, %v2128_v28 }
 0x770   :  { %v1387_v11 = vadd.f32 1.0, %v2130_v7  ;;  %v1393_v12 = vmul.f32 0.5, %v1385_v34 }
 0x771   :  { %v1394_v2 = vmul.f32 0.5, %v1386_v10  ;;  %v1400_v13 = vmul.f32 %v1392_v9, %v2614_v5 }
 0x772   :  { %v1395_v3 = vmul.f32 0.5, %v1387_v11  ;;  %v1401_v16 = vmul.f32 %v1393_v12, %v2616_v8  ;;  %v1848_v12 = vld [vmem:[%s2706_s10 + $0x7] ss:$0 sm:$0xff] }
 0x773   :  { %v1402_v14 = vmul.f32 %v1394_v2, %v2620_v63 }
 0x774   :  { %v2132_v15 = vpop.eup %2131  ;;  %v1403_v17 = vmul.f32 %v1395_v3, %v2624_v6 }
 0x775   :  { %v2134_v18 = vpop.eup %2133  ;;  %v1408_v19 = vpack.c.bf16 %v1402_v14, %v1400_v13  ;;  %v1388_v20 = vadd.f32 1.0, %v2132_v15 }
 0x776   :  { %v2136_v21 = vpop.eup %2135  ;;  %v1409_v23 = vpack.c.bf16 %v1403_v17, %v1401_v16  ;;  %v1389_v24 = vadd.f32 1.0, %v2134_v18 }
 0x777   :  { %v2138_v25 = vpop.eup %2137  ;;  %v1390_v27 = vadd.f32 1.0, %v2136_v21  ;;  %v1396_v29 = vmul.f32 0.5, %v1388_v20 }
 0x778   :  { %1577 = vmatprep.mubr.bf16.mxu1 %v1409_v23  ;;  %v1391_v31 = vadd.f32 1.0, %v2138_v25  ;;  %v1397_v32 = vmul.f32 0.5, %v1389_v24 }
 0x779   :  { %1578 = vmatmul.mubr.bf16.vlgmr.msra.gmra.mrb[20].mxu1 %v1408_v19  ;;  %v1398_v5 = vmul.f32 0.5, %v1390_v27  ;;  %v1404_v35 = vmul.f32 %v1396_v29, %v2635_v22  ;;  %v1828_v22 = vld [vmem:[%s2706_s10 + $0x3] ss:$0 sm:$0xff]  ;;  %v1845_v29 = vld [vmem:[%s2706_s10 + $0x4] ss:$0 sm:$0xff] }
 0x77a   :  { %v1399_v63 = vmul.f32 0.5, %v1391_v31  ;;  %v1405_v6 = vmul.f32 %v1397_v32, %v2638_v26 }
 0x77b   :  { %v1406_v8 = vmul.f32 %v1398_v5, %v2643_v33 }
 0x77c   :  { %v1407_v36 = vmul.f32 %v1399_v63, %v2648_v43 }
 0x77d   :  { %v1410_v37 = vpack.c.bf16 %v1406_v8, %v1404_v35  ;;  %v1846_v35 = vld [vmem:[%s2706_s10 + $0x5] ss:$0 sm:$0xff] }
 0x77e   :  { %v1411_v38 = vpack.c.bf16 %v1407_v36, %v1405_v6 }
 0x780   :  { %1585 = vmatprep.mubr.bf16.mxu1 %v1411_v38 }
 0x781   :  { %1586 = vmatmul.mubr.bf16.gmra.mrb[24].mxu1 %v1410_v37 }
 0x84c   :  { %v1901_v44 = vpop.f32.mrb[20].mxu1 }
 0x84d   :  { %v1902_v45 = vpop.f32.mrb[21].mxu1 }
 0x84e   :  { %v1903_v47 = vadd.f32 %v1902_v45, %v1901_v44  ;;  %v1904_v48 = vpop.f32.mrb[22].mxu1 }
 0x84f   :  { %v1905_v51 = vpop.f32.mrb[23].mxu1 }
 0x850   :  { %v1906_v42 = vadd.f32 %v1905_v51, %v1904_v48  ;;  %v1580_v33 = vadd.f32 %v1903_v47, %v1828_v22 }
 0x852   :  { %v1583_v52 = vadd.f32 %v1906_v42, %v1828_v22  ;;  %v1594_v58 = vadd.f32 %v1580_v33, %v2594_v39  ;;  %v1847_v33 = vld [vmem:[%s2706_s10 + $0x6] ss:$0 sm:$0xff] }
 0x854   :  { %v1907_v53 = vpop.f32.mrb[24].mxu1  ;;  %v1595_v26 = vadd.f32 %v1583_v52, %v2596_v41 }
 0x855   :  { %v1908_v43 = vpop.f32.mrb[25].mxu1 }
 0x856   :  { %v1909_v40 = vadd.f32 %v1908_v43, %v1907_v53  ;;  %v1910_v46 = vpop.f32.mrb[26].mxu1  ;;  %1602 = vadd.xlane.f32.xlu0 %v1595_v26 }
 0x857   :  { %v1911_v54 = vpop.f32.mrb[27].mxu1 }
 0x858   :  { %v1588_v0 = vadd.f32 %v1909_v40, %v1828_v22  ;;  %v1912_v55 = vadd.f32 %v1911_v54, %v1910_v46  ;;  %v1685_v46 = vld [vmem:[%s2699_s3] sm:$0xf] }
 0x859   :  { %v1690_v54 = vmul.f32 %v1848_v12, %v1685_v46 }
 0x85a   :  { %v1591_v56 = vadd.f32 %v1912_v55, %v1828_v22  ;;  %1600 = vadd.xlane.f32.xlu0 %v1594_v58  ;;  %v1596_v30 = vadd.f32 %v1588_v0, %v2603_v50 }
 0x85c   :  { %1604 = vadd.xlane.f32.xlu1 %v1596_v30  ;;  %v1597_v60 = vadd.f32 %v1591_v56, %v2601_v49 }
 0x860   :  { %1606 = vadd.xlane.f32.xlu1 %v1597_v60 }
 0x8e3   :  { %v1603_v57 = vpop.xlane.xlu0 %1602 }
 0x8e4   :  { %v1609_v59 = vmul.f32 0.0078125, %v1603_v57 }
 0x8e6   :  { %v1613_v41 = vsub.f32 %v1595_v26, %v1609_v59 }
 0x8e7   :  { %v1601_v61 = vpop.xlane.xlu0 %1600 }
 0x8e8   :  { %v1608_v62 = vmul.f32 0.0078125, %v1601_v61  ;;  %v1617_v1 = vmul.f32 %v1613_v41, %v1613_v41 }
 0x8e9   :  { %v1605_v4 = vpop.xlane.xlu1 %1604 }
 0x8ea   :  { %v1612_v28 = vsub.f32 %v1594_v58, %v1608_v62  ;;  %v1610_v34 = vmul.f32 0.0078125, %v1605_v4  ;;  %1622 = vadd.xlane.f32.xlu0 %v1617_v1 }
 0x8ec   :  { %v1614_v7 = vsub.f32 %v1596_v30, %v1610_v34  ;;  %v1616_v39 = vmul.f32 %v1612_v28, %v1612_v28 }
 0x8ed   :  { %v1607_v9 = vpop.xlane.xlu1 %1606 }
 0x8ee   :  { %v1611_v10 = vmul.f32 0.0078125, %v1607_v9  ;;  %1620 = vadd.xlane.f32.xlu0 %v1616_v39  ;;  %v1618_v50 = vmul.f32 %v1614_v7, %v1614_v7 }
 0x8f0   :  { %v1615_v11 = vsub.f32 %v1597_v60, %v1611_v10  ;;  %1624 = vadd.xlane.f32.xlu1 %v1618_v50 }
 0x8f2   :  { %v1619_v49 = vmul.f32 %v1615_v11, %v1615_v11 }
 0x8f4   :  { %1626 = vadd.xlane.f32.xlu1 %v1619_v49 }
 0x905   :  { %1693 = vrot.lane.b32.xlu1 %v1848_v12, %s2294_s30 }
 0x977   :  { %v1623_v2 = vpop.xlane.xlu0 %1622 }
 0x978   :  { %v1629_v3 = vmul.f32 0.0078125, %v1623_v2 }
 0x97a   :  { %v1633_v13 = vadd.f32 1e-05, %v1629_v3 }
 0x97b   :  { %v1621_v14 = vpop.xlane.xlu0 %1620 }
 0x97c   :  { %2139 = vrsqrt.f32 %v1633_v13  ;;  %v1628_v15 = vmul.f32 0.0078125, %v1621_v14 }
 0x97d   :  { %v1625_v16 = vpop.xlane.xlu1 %1624 }
 0x97e   :  { %v1632_v17 = vadd.f32 1e-05, %v1628_v15  ;;  %v1630_v18 = vmul.f32 0.0078125, %v1625_v16 }
 0x980   :  { %2141 = vrsqrt.f32 %v1632_v17  ;;  %v1634_v19 = vadd.f32 1e-05, %v1630_v18 }
 0x981   :  { %v1627_v20 = vpop.xlane.xlu1 %1626 }
 0x982   :  { %2143 = vrsqrt.f32 %v1634_v19  ;;  %v1631_v21 = vmul.f32 0.0078125, %v1627_v20 }
 0x984   :  { %v1635_v23 = vadd.f32 1e-05, %v1631_v21 }
 0x985   :  { %v1694_v55 = vpop.permute.xlu1 %1693 }
 0x986   :  { %v2140_v24 = vpop.eup %2139  ;;  %2145 = vrsqrt.f32 %v1635_v23 }
 0x987   :  { %v1641_v25 = vmul.f32 %v2140_v24, %v1613_v41 }
 0x989   :  { %v1649_v5 = vmul.f32 %v1845_v29, %v1641_v25 }
 0x98a   :  { %v2142_v27 = vpop.eup %2141 }
 0x98b   :  { %v1640_v31 = vmul.f32 %v2142_v27, %v1612_v28  ;;  %v1657_v38 = vadd.f32 %v1846_v35, %v1649_v5 }
 0x98c   :  { %v2144_v32 = vpop.eup %2143 }
 0x98d   :  { %v1642_v63 = vmul.f32 %v2144_v32, %v1614_v7  ;;  %v1648_v8 = vmul.f32 %v1845_v29, %v1640_v31  ;;  %v1661_v42 = vrot.slane %v1657_v38, 7 }
 0x98f   :  { %v1650_v6 = vmul.f32 %v1845_v29, %v1642_v63  ;;  %v1656_v47 = vadd.f32 %v1846_v35, %v1648_v8 }
 0x990   :  { %v2146_v36 = vpop.eup %2145 }
 0x991   :  { %v1643_v37 = vmul.f32 %v2146_v36, %v1615_v11  ;;  %v1658_v44 = vadd.f32 %v1846_v35, %v1650_v6  ;;  %v1670_v52 = vsel %vm1669_vm3, %v1656_v47, %v1661_v42 }
 0x993   :  { %v1651_v45 = vmul.f32 %v1845_v29, %v1643_v37  ;;  %v1664_v48 = vrot.slane %v1658_v44, 6 }
 0x995   :  { %v1659_v51 = vadd.f32 %v1846_v35, %v1651_v45  ;;  %v1672_v53 = vsel %vm1671_vm4, %v1670_v52, %v1664_v48 }
 0x997   :  { %v1667_v22 = vrot.slane %v1659_v51, 5 }
 0x999   :  { %v1674_v26 = vsel %vm1673_vm5, %v1672_v53, %v1667_v22 }
 0x99a   :  { %v1680_v43 = vmul.f32 %v1847_v33, %v1674_v26 }
 0x99c   :  { %v1681_v40 = vsel %vm624_vm1, %v1680_v43, 0.0 }
 0x99d   :  { %1682 = vadd.xlane.f32.xlu0 %v1681_v40 }
 0xa2a   :  { %v1683_v0 = vpop.xlane.xlu0 %1682 }
 0xa2b   :  { %v1691_v58 = vadd.f32 %v1690_v54, %v1683_v0 }
 0xa2d   :  { %v1696_v56 = vadd.f32 %v1694_v55, %v1691_v58 }
 0xa2f   :  { %1698 = vst.msk [vmem:[%s2707_s11] sm:$0xf] %vm1697_vm6, %v1696_v56 }
 0xa30   :  { %1703 = vsyncpa [#allocation6], 1 }
 0xa31   :  { %1704 = vsyncpa [#allocation8], 1 }
 0xa32   :  { %1705 = vsyncpa [#allocation11], 1 }

// kernel: _forward_impl.1
= control target key start
LH: loop header
LB: loop body
LE: loop exit
PB: predicated region body
PF: predicated region fallthrough
CT: control target
= control target key end

     0   :  { %s2696_s0 = inlined_call_operand.vmem [shape: s32[4,8], index: 0, kind: input, shape index: {}]   ;;  %s2697_s1 = inlined_call_operand.hbm [shape: f32[512,1,128], index: 1, kind: input, shape index: {}]   ;;  %s2698_s2 = inlined_call_operand.vmem [shape: f32[4,8], index: 2, kind: input, shape index: {}]   ;;  %s2699_s3 = inlined_call_operand.vmem [shape: f32[4,1], index: 3, kind: input, shape index: {}]   ;;  %s2700_s4 = inlined_call_operand.hbm [shape: bf16[128,384], index: 4, kind: input, shape index: {}]   ;;  %s2701_s5 = inlined_call_operand.vmem [shape: f32[1,384], index: 5, kind: input, shape index: {}]   ;;  %s2702_s6 = inlined_call_operand.hbm [shape: bf16[128,128], index: 6, kind: input, shape index: {}]   ;;  %s2703_s7 = inlined_call_operand.hbm [shape: bf16[128,256], index: 7, kind: input, shape index: {}]   ;;  %s2704_s8 = inlined_call_operand.vmem [shape: f32[1,256], index: 8, kind: input, shape index: {}]   ;;  %s2705_s9 = inlined_call_operand.hbm [shape: bf16[256,128], index: 9, kind: input, shape index: {}]   ;;  %s2706_s10 = inlined_call_operand.vmem [shape: f32[8,128], index: 10, kind: input, shape index: {}]   ;;  %s2707_s11 = inlined_call_operand.vmem [shape: f32[4,1], index: 11, kind: output, shape index: {}]  }
   0x1   :  { %s16_s19 = sshll.u32 %s2696_s0, 4  ;;  %s17_s19 = int_to_ptr.vmem [resolvable:$true] %s16_s19 }
   0x2   :  { %s2147_s20 = scalar_lea.vmem %s17_s19, 64  ;;  %p2152_p1 = scmp.lt.s32.totalorder %s17_s19, %s17_s19 }
   0x3   :  { %p2148_p0 = scmp.ne.s32.totalorder %s17_s19, %s2147_s20  ;;  %p2153_p2 = scmp.lt.s32.totalorder %s2147_s20, %s2147_s20 }
   0x5   :  { %p2154_p3 = por %p2153_p2, %p2152_p1 }
   0x7   :  { %p2155_p4 = pnand %p2154_p3, %p2148_p0 }
   0x9   :  { %2158 = shalt.err (!%p2155_p4)  }
   0xa   :  { %s2277_s21 = smov [#allocation4]  }
   0xb   :  { %19 = dma.vmem_to_smem %s17_s19, 64, %s2277_s21, [#allocation3] }
   0xc   :  { %2269 = dma.done.wait [#allocation3], 64 }
   0xd   :  { %2270 = vsyncadd [#allocation3], 4294967232 }
   0xe   :  { %21 = sfence }
   0xf   :  { %22 = vsyncpa [#allocation6], 0 }
  0x10   :  { %23 = vsyncpa [#allocation8], 0 }
  0x11   :  { %24 = vsyncpa [#allocation11], 0  ;;  %s2278_s22 = smov [#allocation7]   ;;  %s2159_s25 = scalar_lea.hbm %s2700_s4, 3072 }
  0x12   :  { %s46_s23 = sshll.u32 %s2278_s22, 4  ;;  %p2160_p5 = scmp.ne.s32.totalorder %s2700_s4, %s2159_s25  ;;  %s47_s23 = int_to_ptr.vmem [resolvable:$true] %s46_s23 }
  0x13   :  { %p2163_p6 = scmp.lt.u32.totalorder %s2159_s25, %s2700_s4 }
  0x15   :  { %p2165_p7 = pnand %p2163_p6, %p2160_p5 }
  0x17   :  { %2168 = shalt.err (!%p2165_p7)
}
  0x18   :  { %s2169_s30 = scalar_lea.vmem %s47_s23, 3072  ;;  %p2174_p9 = scmp.lt.s32.totalorder %s47_s23, %s47_s23 }
  0x19   :  { %p2170_p8 = scmp.ne.s32.totalorder %s47_s23, %s2169_s30  ;;  %p2175_p10 = scmp.lt.s32.totalorder %s2169_s30, %s2169_s30 }
  0x1b   :  { %p2176_p11 = por %p2175_p10, %p2174_p9 }
  0x1d   :  { %p2177_p12 = pnand %p2176_p11, %p2170_p8 }
  0x1f   :  { %2180 = shalt.err (!%p2177_p12)
}
  0x20   :  { %s2279_s12 = smov 192   ;;  %s2280_s13 = smov 12  }
  0x21   :  { %52 = dma.hbm_to_vmem [thread:$0]  %s2700_s4, 3072, %s47_s23, [#allocation8], %s2279_s12, %s2279_s12, %s2280_s13  }
  0x22   :  { %s2281_s16 = smov [#allocation10]   ;;  %s2181_s20 = scalar_lea.hbm %s2703_s7, 2048 }
  0x23   :  { %s72_s17 = sshll.u32 %s2281_s16, 4  ;;  %p2182_p13 = scmp.ne.s32.totalorder %s2703_s7, %s2181_s20  ;;  %s73_s17 = int_to_ptr.vmem [resolvable:$true] %s72_s17 }
  0x24   :  { %p2185_p0 = scmp.lt.u32.totalorder %s2181_s20, %s2703_s7 }
  0x26   :  { %p2187_p1 = pnand %p2185_p0, %p2182_p13 }
  0x28   :  { %2190 = shalt.err (!%p2187_p1)
}
  0x29   :  { %s2191_s25 = scalar_lea.vmem %s73_s17, 2048  ;;  %p2196_p3 = scmp.lt.s32.totalorder %s73_s17, %s73_s17 }
  0x2a   :  { %p2192_p2 = scmp.ne.s32.totalorder %s73_s17, %s2191_s25  ;;  %p2197_p4 = scmp.lt.s32.totalorder %s2191_s25, %s2191_s25 }
  0x2c   :  { %p2198_p5 = por %p2197_p4, %p2196_p3 }
  0x2e   :  { %p2199_p6 = pnand %p2198_p5, %p2192_p2 }
  0x30   :  { %2202 = shalt.err (!%p2199_p6)
}
  0x31   :  { %s2282_s4 = smov 128   ;;  %s2283_s23 = smov 8  }
  0x32   :  { %78 = dma.hbm_to_vmem [thread:$0]  %s2703_s7, 2048, %s73_s17, [#allocation11], %s2282_s4, %s2282_s4, %s2283_s23  }
  0x33   :  { %s2284_s28 = smov [#allocation5]   ;;  %s2203_s13 = scalar_lea.hbm %s2697_s1, 8192 }
  0x34   :  { %s30_s29 = sshll.u32 %s2284_s28, 4  ;;  %p2204_p7 = scmp.ne.s32.totalorder %s2697_s1, %s2203_s13  ;;  %s31_s29 = int_to_ptr.vmem [resolvable:$true] %s30_s29 }
  0x35   :  { %p2207_p8 = scmp.lt.u32.totalorder %s2203_s13, %s2697_s1 }
  0x37   :  { %p2209_p9 = pnand %p2207_p8, %p2204_p7 }
  0x39   :  { %2212 = shalt.err (!%p2209_p9)
}
  0x3a   :  { %s2213_s19 = scalar_lea.vmem %s31_s29, 8192  ;;  %p2218_p11 = scmp.lt.s32.totalorder %s31_s29, %s31_s29 }
  0x3b   :  { %p2214_p10 = scmp.ne.s32.totalorder %s31_s29, %s2213_s19  ;;  %p2219_p12 = scmp.lt.s32.totalorder %s2213_s19, %s2213_s19 }
  0x3d   :  { %p2220_p13 = por %p2219_p12, %p2218_p11 }
  0x3f   :  { %p2221_p0 = pnand %p2220_p13, %p2214_p10 }
  0x41   :  { %2224 = shalt.err (!%p2221_p0)
}
  0x42   :  { %s2285_s7 = smov 16   ;;  %s2286_s17 = smov 1  }
  0x43   :  { %36 = dma.hbm_to_vmem [thread:$0]  %s2697_s1, 8192, %s31_s29, [#allocation6], %s2285_s7, %s2285_s7, %s2286_s17  }
  0x44   :  { %s2287_s22 = smov [#allocation9]   ;;  %s2225_s4 = scalar_lea.hbm %s2702_s6, 1024 }
  0x45   :  { %s60_s0 = sshll.u32 %s2287_s22, 4  ;;  %p2226_p1 = scmp.ne.s32.totalorder %s2702_s6, %s2225_s4  ;;  %s61_s0 = int_to_ptr.vmem [resolvable:$true] %s60_s0 }
  0x46   :  { %p2229_p2 = scmp.lt.u32.totalorder %s2225_s4, %s2702_s6 }
  0x48   :  { %p2231_p3 = pnand %p2229_p2, %p2226_p1 }
  0x4a   :  { %2234 = shalt.err (!%p2231_p3)
}
  0x4b   :  { %s2235_s30 = scalar_lea.vmem %s61_s0, 1024  ;;  %p2240_p5 = scmp.lt.s32.totalorder %s61_s0, %s61_s0 }
  0x4c   :  { %p2236_p4 = scmp.ne.s32.totalorder %s61_s0, %s2235_s30  ;;  %p2241_p6 = scmp.lt.s32.totalorder %s2235_s30, %s2235_s30 }
  0x4e   :  { %p2242_p7 = por %p2241_p6, %p2240_p5 }
  0x50   :  { %p2243_p8 = pnand %p2242_p7, %p2236_p4 }
  0x52   :  { %2246 = shalt.err (!%p2243_p8)
}
  0x53   :  { %s2288_s1 = smov 64   ;;  %s2289_s29 = smov 4  }
  0x54   :  { %66 = dma.hbm_to_vmem [thread:$0]  %s2702_s6, 1024, %s61_s0, [#allocation8], %s2288_s1, %s2288_s1, %s2289_s29  }
  0x55   :  { %s2290_s14 = smov [#allocation12]   ;;  %s2247_s19 = scalar_lea.hbm %s2705_s9, 2048 }
  0x56   :  { %s86_s15 = sshll.u32 %s2290_s14, 4  ;;  %p2248_p9 = scmp.ne.s32.totalorder %s2705_s9, %s2247_s19  ;;  %s87_s15 = int_to_ptr.vmem [resolvable:$true] %s86_s15 }
  0x57   :  { %p2251_p10 = scmp.lt.u32.totalorder %s2247_s19, %s2705_s9 }
  0x59   :  { %p2253_p11 = pnand %p2251_p10, %p2248_p9 }
  0x5b   :  { %2256 = shalt.err (!%p2253_p11)
}
  0x5c   :  { %s2257_s22 = scalar_lea.vmem %s87_s15, 2048  ;;  %p2262_p13 = scmp.lt.s32.totalorder %s87_s15, %s87_s15 }
  0x5d   :  { %p2258_p12 = scmp.ne.s32.totalorder %s87_s15, %s2257_s22  ;;  %p2263_p0 = scmp.lt.s32.totalorder %s2257_s22, %s2257_s22 }
  0x5f   :  { %p2264_p1 = por %p2263_p0, %p2262_p13 }
  0x61   :  { %p2265_p2 = pnand %p2264_p1, %p2258_p12 }
  0x63   :  { %2268 = shalt.err (!%p2265_p2)
}
  0x64   :  { %92 = dma.hbm_to_vmem [thread:$0]  %s2705_s9, 2048, %s87_s15, [#allocation11], %s2288_s1, %s2288_s1, %s2289_s29  }
  0x65   :  { %2271 = dma.done.wait [#allocation6], 8192  }
  0x66   :  { %2272 = vsyncadd [#allocation6], 4294959104 }
  0x67   :  { %2273 = dma.done.wait [#allocation8], 4096  }
  0x68   :  { %2274 = vsyncadd [#allocation8], 4294963200 }
  0x69   :  { %2275 = dma.done.wait [#allocation11], 4096  }
  0x6a   :  { %2276 = vsyncadd [#allocation11], 4294963200  ;;  %v2291_v0 = vmov 0   ;;  %s2419_s24 = sld [smem:[#allocation4]]  ;;  %s2421_s25 = sld [smem:[#allocation4 + $0x1]]  ;;  %v2292_v63 = vmov 0.0  }
  0x6b   :  { %490 = vmatprep.mubr.bf16.mxu0 %v2291_v0  ;;  %s2423_s4 = sld [smem:[#allocation4 + $0x2]]  ;;  %s2425_s23 = sld [smem:[#allocation4 + $0x3]]  ;;  %v2019_v1 = vld [vmem:[#allocation7 + $0x4] ss:$12 sps:$4 sm:$0xff]   ;;  %v2021_v2 = vld [vmem:[#allocation7] ss:$12 sps:$4 sm:$0xff]  }
  0x6c   :  { %s2427_s26 = sld [smem:[#allocation4 + $0x4]]  ;;  %s2429_s9 = sld [smem:[#allocation4 + $0x5]]  ;;  %458 = vmatprep.subr.bf16.mxu0 %v2019_v1  ;;  %v2022_v3 = vld [vmem:[#allocation7 + $0x1c] ss:$12 sps:$4 sm:$0xff]   ;;  %v2024_v4 = vld [vmem:[#allocation7 + $0x18] ss:$12 sps:$4 sm:$0xff]   ;;  %v315_v1 = vlaneseq }
  0x6d   :  { %s2431_s27 = sld [smem:[#allocation4 + $0x6]]  ;;  %s2433_s28 = sld [smem:[#allocation4 + $0x7]]  ;;  %459 = vmatpush1.bf16.msra.mxu0 %v2021_v2  ;;  %v2025_v5 = vld [vmem:[#allocation7 + $0x34] ss:$12 sps:$4 sm:$0xff]   ;;  %v2027_v6 = vld [vmem:[#allocation7 + $0x30] ss:$12 sps:$4 sm:$0xff]  }
  0x6e   :  { %s2435_s30 = sld [smem:[#allocation4 + $0x80]]  ;;  %s2437_s1 = sld [smem:[#allocation4 + $0x81]]  ;;  %460 = vmatprep.subr.bf16.mxu0 %v2022_v3  ;;  %v2028_v7 = vld [vmem:[#allocation7 + $0x4c] ss:$12 sps:$4 sm:$0xff]   ;;  %v2030_v8 = vld [vmem:[#allocation7 + $0x48] ss:$12 sps:$4 sm:$0xff]  }
  0x6f   :  { %s2439_s29 = sld [smem:[#allocation4 + $0x82]]  ;;  %s2441_s12 = sld [smem:[#allocation4 + $0x83]]  ;;  %v2031_v9 = vld [vmem:[#allocation7 + $0x64] ss:$12 sps:$4 sm:$0xff]   ;;  %v2033_v17 = vld [vmem:[#allocation7 + $0x60] ss:$12 sps:$4 sm:$0xff]  }
  0x70   :  { %s2443_s13 = sld [smem:[#allocation4 + $0x84]]  ;;  %s2445_s14 = sld [smem:[#allocation4 + $0x85]]  ;;  %v2034_v21 = vld [vmem:[#allocation7 + $0x7c] ss:$12 sps:$4 sm:$0xff]   ;;  %v2036_v26 = vld [vmem:[#allocation7 + $0x78] ss:$12 sps:$4 sm:$0xff]  }
  0x71   :  { %461 = vmatpush1.bf16.msra.mxu0 %v2024_v4  ;;  %s114_s15 = scalar_lea.vmem [#allocation5], %s2419_s24  ;;  %s119_s16 = scalar_lea.vmem [#allocation5], %s2421_s25  ;;  %v2037_v27 = vld [vmem:[#allocation7 + $0x94] ss:$12 sps:$4 sm:$0xff]   ;;  %v2039_v29 = vld [vmem:[#allocation7 + $0x90] ss:$12 sps:$4 sm:$0xff]  }
  0x72   :  { %462 = vmatprep.subr.bf16.mxu0 %v2025_v5  ;;  %v115_v10 = vld [vmem:[%s114_s15] sm:$0x1]  ;;  %s124_s18 = scalar_lea.vmem [#allocation5], %s2423_s4  ;;  %s129_s19 = scalar_lea.vmem [#allocation5], %s2425_s23  ;;  %v2043_v28 = vld [vmem:[#allocation7 + $0x8] ss:$12 sps:$4 sm:$0xff]  }
  0x73   :  { %116 = vst [vmem:[#allocation2] sm:$0x1] %v115_v10  ;;  %v120_v11 = vld [vmem:[%s119_s16] sm:$0x1]  ;;  %s134_s7 = scalar_lea.vmem [#allocation5], %s2427_s26  ;;  %s139_s17 = scalar_lea.vmem [#allocation5], %s2429_s9  ;;  %1913 = vmatprep.subr.bf16.mxu1 %v2043_v28 }
  0x74   :  { %v125_v12 = vld [vmem:[%s124_s18] sm:$0x1]  ;;  %121 = vst [vmem:[#allocation2 + $0x1] sm:$0x1] %v120_v11  ;;  %s144_s20 = scalar_lea.vmem [#allocation5], %s2431_s27  ;;  %s149_s21 = scalar_lea.vmem [#allocation5], %s2433_s28  ;;  %1914 = vmatpush3.bf16.msra.mxu1 %v2043_v28 }
  0x75   :  { %463 = vmatpush1.bf16.msra.mxu0 %v2027_v6  ;;  %v130_v13 = vld [vmem:[%s129_s19] sm:$0x1]  ;;  %126 = vst [vmem:[#allocation2 + $0x2] sm:$0x1] %v125_v12  ;;  %s155_s22 = scalar_lea.vmem [#allocation5], %s2435_s30  ;;  %s160_s6 = scalar_lea.vmem [#allocation5], %s2437_s1 }
  0x76   :  { %464 = vmatprep.subr.bf16.mxu0 %v2028_v7  ;;  %131 = vst [vmem:[#allocation2 + $0x3] sm:$0x1] %v130_v13  ;;  %v135_v14 = vld [vmem:[%s134_s7] sm:$0x1]  ;;  %s165_s0 = scalar_lea.vmem [#allocation5], %s2439_s29  ;;  %s170_s24 = scalar_lea.vmem [#allocation5], %s2441_s12 }
  0x77   :  { %v140_v15 = vld [vmem:[%s139_s17] sm:$0x1]  ;;  %136 = vst [vmem:[#allocation2 + $0x4] sm:$0x1] %v135_v14  ;;  %s175_s25 = scalar_lea.vmem [#allocation5], %s2443_s13  ;;  %s1751_s4 = sld [smem:[#allocation4 + $0x86]] }
  0x78   :  { %v145_v16 = vld [vmem:[%s144_s20] sm:$0x1]  ;;  %141 = vst [vmem:[#allocation2 + $0x5] sm:$0x1] %v140_v15  ;;  %s180_s23 = scalar_lea.vmem [#allocation5], %s2445_s14  ;;  %s1752_s26 = sld [smem:[#allocation4 + $0x87]] }
  0x79   :  { %146 = vst [vmem:[#allocation2 + $0x6] sm:$0x1] %v145_v16  ;;  %v150_v18 = vld [vmem:[%s149_s21] sm:$0x1]  ;;  %465 = vmatpush1.bf16.msra.mxu0 %v2030_v8  ;;  %s1753_s9 = sld [smem:[#allocation4 + $0x100]]  ;;  %s2461_s27 = sld [smem:[#allocation4 + $0x101]] }
  0x7a   :  { %v156_v19 = vld [vmem:[%s155_s22] sm:$0x1]  ;;  %151 = vst [vmem:[#allocation2 + $0x7] sm:$0x1] %v150_v18  ;;  %466 = vmatprep.subr.bf16.mxu0 %v2031_v9  ;;  %s2463_s28 = sld [smem:[#allocation4 + $0x102]]  ;;  %s2465_s30 = sld [smem:[#allocation4 + $0x103]] }
  0x7b   :  { %v161_v20 = vld [vmem:[%s160_s6] sm:$0x1]  ;;  %157 = vst [vmem:[#allocation2 + $0x8] sm:$0x1] %v156_v19  ;;  %s2467_s1 = sld [smem:[#allocation4 + $0x104]]  ;;  %s2469_s29 = sld [smem:[#allocation4 + $0x105]] }
  0x7c   :  { %162 = vst [vmem:[#allocation2 + $0x9] sm:$0x1] %v161_v20  ;;  %v166_v22 = vld [vmem:[%s165_s0] sm:$0x1]  ;;  %s2471_s12 = sld [smem:[#allocation4 + $0x106]]  ;;  %s2473_s13 = sld [smem:[#allocation4 + $0x107]] }
  0x7d   :  { %v171_v23 = vld [vmem:[%s170_s24] sm:$0x1]  ;;  %167 = vst [vmem:[#allocation2 + $0xa] sm:$0x1] %v166_v22  ;;  %467 = vmatpush1.bf16.msra.mxu0 %v2033_v17  ;;  %s2475_s14 = sld [smem:[#allocation4 + $0x180]]  ;;  %s2477_s15 = sld [smem:[#allocation4 + $0x181]] }
  0x7e   :  { %172 = vst [vmem:[#allocation2 + $0xb] sm:$0x1] %v171_v23  ;;  %v176_v24 = vld [vmem:[%s175_s25] sm:$0x1]  ;;  %468 = vmatprep.subr.bf16.mxu0 %v2034_v21  ;;  %v2040_v30 = vld [vmem:[#allocation7 + $0xac] ss:$12 sps:$4 sm:$0xff]  }
  0x7f   :  { %177 = vst [vmem:[#allocation2 + $0xc] sm:$0x1] %v176_v24  ;;  %v181_v25 = vld [vmem:[%s180_s23] sm:$0x1]  ;;  %s185_s16 = scalar_lea.vmem [#allocation5], %s1751_s4  ;;  %s190_s18 = scalar_lea.vmem [#allocation5], %s1752_s26 }
  0x80   :  { %182 = vst [vmem:[#allocation2 + $0xd] sm:$0x1] %v181_v25  ;;  %v186_v31 = vld [vmem:[%s185_s16] sm:$0x1]  ;;  %s196_s19 = scalar_lea.vmem [#allocation5], %s1753_s9  ;;  %s201_s7 = scalar_lea.vmem [#allocation5], %s2461_s27 }
  0x81   :  { %v2044_v32 = vld [vmem:[#allocation7 + $0x20] ss:$12 sps:$4 sm:$0xff]   ;;  %469 = vmatpush1.bf16.msra.mxu0 %v2036_v26  ;;  %187 = vst [vmem:[#allocation2 + $0xe] sm:$0x1] %v186_v31  ;;  %s206_s17 = scalar_lea.vmem [#allocation5], %s2463_s28  ;;  %s211_s20 = scalar_lea.vmem [#allocation5], %s2465_s30 }
  0x82   :  { %v191_v33 = vld [vmem:[%s190_s18] sm:$0x1]  ;;  %470 = vmatprep.subr.bf16.mxu0 %v2037_v27  ;;  %1915 = vmatprep.subr.bf16.mxu1 %v2044_v32  ;;  %v2042_v37 = vld [vmem:[#allocation7 + $0xa8] ss:$12 sps:$4 sm:$0xff]   ;;  %s216_s21 = scalar_lea.vmem [#allocation5], %s2467_s1  ;;  %s221_s22 = scalar_lea.vmem [#allocation5], %s2469_s29 }
  0x83   :  { %v197_v34 = vld [vmem:[%s196_s19] sm:$0x1]  ;;  %192 = vst [vmem:[#allocation2 + $0xf] sm:$0x1] %v191_v33  ;;  %s226_s6 = scalar_lea.vmem [#allocation5], %s2471_s12  ;;  %1916 = vmatpush3.bf16.msra.mxu1 %v2044_v32  ;;  %s231_s0 = scalar_lea.vmem [#allocation5], %s2473_s13 }
  0x84   :  { %198 = vst [vmem:[#allocation2 + $0x10] sm:$0x1] %v197_v34  ;;  %v202_v35 = vld [vmem:[%s201_s7] sm:$0x1]  ;;  %s237_s24 = scalar_lea.vmem [#allocation5], %s2475_s14  ;;  %s242_s25 = scalar_lea.vmem [#allocation5], %s2477_s15 }
  0x85   :  { %v207_v36 = vld [vmem:[%s206_s17] sm:$0x1]  ;;  %203 = vst [vmem:[#allocation2 + $0x11] sm:$0x1] %v202_v35  ;;  %471 = vmatpush1.bf16.msra.mxu0 %v2039_v29  ;;  %s1763_s4 = sld [smem:[#allocation4 + $0x182]]  ;;  %s1764_s23 = sld [smem:[#allocation4 + $0x183]] }
  0x86   :  { %208 = vst [vmem:[#allocation2 + $0x12] sm:$0x1] %v207_v36  ;;  %v212_v38 = vld [vmem:[%s211_s20] sm:$0x1]  ;;  %472 = vmatprep.subr.bf16.mxu0 %v2040_v30  ;;  %s1765_s26 = sld [smem:[#allocation4 + $0x184]]  ;;  %s1766_s9 = sld [smem:[#allocation4 + $0x185]] }
  0x87   :  { %v217_v39 = vld [vmem:[%s216_s21] sm:$0x1]  ;;  %213 = vst [vmem:[#allocation2 + $0x13] sm:$0x1] %v212_v38  ;;  %s1767_s27 = sld [smem:[#allocation4 + $0x186]]  ;;  %s1768_s28 = sld [smem:[#allocation4 + $0x187]] }
  0x88   :  { %218 = vst [vmem:[#allocation2 + $0x14] sm:$0x1] %v217_v39  ;;  %v222_v40 = vld [vmem:[%s221_s22] sm:$0x1]  ;;  %v2045_v47 = vld [vmem:[#allocation7 + $0x38] ss:$12 sps:$4 sm:$0xff]  }
  0x89   :  { %v227_v41 = vld [vmem:[%s226_s6] sm:$0x1]  ;;  %223 = vst [vmem:[#allocation2 + $0x15] sm:$0x1] %v222_v40  ;;  %473 = vmatpush1.bf16.msra.mxu0 %v2042_v37  ;;  %v2046_v49 = vld [vmem:[#allocation7 + $0x50] ss:$12 sps:$4 sm:$0xff]   ;;  %1917 = vmatprep.subr.bf16.mxu1 %v2045_v47 }
  0x8a   :  { %v2485_v42 = vld [vmem:[#allocation2] sm:$0xff]  ;;  %228 = vst [vmem:[#allocation2 + $0x16] sm:$0x1] %v227_v41  ;;  %v2490_v46 = vld [vmem:[#allocation2 + $0x8] sm:$0xff]  ;;  %1918 = vmatpush3.bf16.msra.mxu1 %v2045_v47  ;;  %v2050_v61 = vld [vmem:[#allocation7 + $0xb0] ss:$12 sps:$4 sm:$0xff]   ;;  %1933 = vmatprep.subr.bf16.mxu0 %v2292_v63 }
  0x8b   :  { %v232_v43 = vld [vmem:[%s231_s0] sm:$0x1]  ;;  %v279_v48 = vpack.c.bf16 %v2490_v46, %v2485_v42  ;;  %v2047_v50 = vld [vmem:[#allocation7 + $0x68] ss:$12 sps:$4 sm:$0xff]   ;;  %s247_s30 = scalar_lea.vmem [#allocation5], %s1763_s4  ;;  %s252_s1 = scalar_lea.vmem [#allocation5], %s1764_s23  ;;  %1919 = vmatprep.subr.bf16.mxu1 %v2046_v49 }
  0x8c   :  { %v238_v44 = vld [vmem:[%s237_s24] sm:$0x1]  ;;  %233 = vst [vmem:[#allocation2 + $0x17] sm:$0x1] %v232_v43  ;;  %s257_s29 = scalar_lea.vmem [#allocation5], %s1765_s26  ;;  %s262_s12 = scalar_lea.vmem [#allocation5], %s1766_s9 }
  0x8d   :  { %239 = vst [vmem:[#allocation2 + $0x18] sm:$0x1] %v238_v44  ;;  %v243_v45 = vld [vmem:[%s242_s25] sm:$0x1]  ;;  %491 = vmatmul.mubr.bf16.vlgmr.msra.gmra.mrb[0].mxu0 %v279_v48  ;;  %1929 = vmatprep.mubr.bf16.mxu1 %v279_v48  ;;  %s267_s13 = scalar_lea.vmem [#allocation5], %s1767_s27  ;;  %s272_s14 = scalar_lea.vmem [#allocation5], %s1768_s28 }
  0x8e   :  { %244 = vst [vmem:[#allocation2 + $0x19] sm:$0x1] %v243_v45  ;;  %500 = vmatprep.mubr.bf16.mxu0 %v2291_v0  ;;  %v248_v51 = vld [vmem:[%s247_s30] sm:$0x1]  ;;  %1920 = vmatpush3.bf16.msra.mxu1 %v2046_v49  ;;  %v2049_v59 = vld [vmem:[#allocation7 + $0x98] ss:$12 sps:$4 sm:$0xff]  }
  0x8f   :  { %v253_v52 = vld [vmem:[%s252_s1] sm:$0x1]  ;;  %249 = vst [vmem:[#allocation2 + $0x1a] sm:$0x1] %v248_v51  ;;  %1921 = vmatprep.subr.bf16.mxu1 %v2047_v50  ;;  %vm2293_vm0 = vmmov 0   ;;  %v2507_v2 = vshrl.u32 %v315_v1, 7 }
  0x90   :  { %254 = vst [vmem:[#allocation2 + $0x1b] sm:$0x1] %v253_v52  ;;  %v258_v53 = vld [vmem:[%s257_s29] sm:$0x1]  ;;  %vm624_vm1 = vcmask 1043456   ;;  %vm608_vm2 = vcmask 64512  }
  0x91   :  { %v263_v54 = vld [vmem:[%s262_s12] sm:$0x1]  ;;  %259 = vst [vmem:[#allocation2 + $0x1c] sm:$0x1] %v258_v53  ;;  %v321_v3 = vsub.s32 1, %v2507_v2  ;;  %v317_v6 = vsub.s32 0, %v2507_v2 }
  0x92   :  { %264 = vst [vmem:[#allocation2 + $0x1d] sm:$0x1] %v263_v54  ;;  %v268_v55 = vld [vmem:[%s267_s13] sm:$0x1]  ;;  %1922 = vmatpush3.bf16.msra.mxu1 %v2047_v50  ;;  %v325_v25 = vsub.s32 2, %v2507_v2  ;;  %s2294_s30 = smov 127  }
  0x93   :  { %v273_v56 = vld [vmem:[%s272_s14] sm:$0x1]  ;;  %269 = vst [vmem:[#allocation2 + $0x1e] sm:$0x1] %v268_v55  ;;  %v2495_v58 = vld [vmem:[#allocation2 + $0x10] sm:$0xff]  ;;  %vm1669_vm3 = vcmask 1040384  }
  0x94   :  { %274 = vst [vmem:[#allocation2 + $0x1f] sm:$0x1] %v273_v56  ;;  %v2048_v57 = vld [vmem:[#allocation7 + $0x80] ss:$12 sps:$4 sm:$0xff]   ;;  %vm1671_vm4 = vcmask 1041408   ;;  %vm1673_vm5 = vcmask 1042432  }
  0x95   :  { %1923 = vmatprep.subr.bf16.mxu1 %v2048_v57  ;;  %v313_v4 = vld [vmem:[%s2701_s5] sm:$0x7]  ;;  %vm1697_vm6 = vcmask 3072  }
  0x96   :  { %1924 = vmatpush3.bf16.msra.mxu1 %v2048_v57  ;;  %v322_v5 = vrot.slane %v313_v4, %v321_v3  ;;  %v318_v11 = vrot.slane %v313_v4, %v317_v6  ;;  %v2526_v28 = vrot.slane %v313_v4, %v325_v25  ;;  %v1793_v41 = vld [vmem:[%s2698_s2] ss:$0 sm:$0xff]  ;;  %v1795_v44 = vld [vmem:[%s2698_s2 + $0x1] ss:$0 sm:$0xff]  ;;  %v1797_v57 = vld [vmem:[%s2698_s2 + $0x2] ss:$0 sm:$0xff] }
  0x97   :  { %1925 = vmatprep.subr.bf16.mxu1 %v2049_v59 }
  0x9a   :  { %1926 = vmatpush3.bf16.msra.mxu1 %v2049_v59 }
  0x9b   :  { %v2497_v60 = vld [vmem:[#allocation2 + $0x18] sm:$0xff]  ;;  %1927 = vmatprep.subr.bf16.mxu1 %v2050_v61 }
  0x9c   :  { %v280_v62 = vpack.c.bf16 %v2497_v60, %v2495_v58 }
  0x9e   :  { %501 = vmatmul.mubr.bf16.gmra.mrb[4].mxu0 %v280_v62  ;;  %1928 = vmatpush3.bf16.msra.mxu1 %v2050_v61 }
  0x9f   :  { %1945 = vmatprep.subr.bf16.mxu1 %v2292_v63  ;;  %1935 = vmatprep.mubr.msk.bf16.mxu0 %vm2293_vm0, %v2292_v63 }
  0xa1   :  { %1930 = vmatmul.mubr.bf16.vlgmr.msra.gmra.mrb[0].mxu1 %v280_v62 }
  0xa2   :  { %1947 = vmatprep.mubr.msk.bf16.mxu1 %vm2293_vm0, %v2292_v63 }
 0x160   :  { %v492_v7 = vpop.f32.mrb[0].mxu0 }
 0x161   :  { %v494_v8 = vpop.f32.mrb[1].mxu0  ;;  %v493_v16 = vadd.f32 %v492_v7, %v318_v11  ;;  %v1799_v7 = vld [vmem:[%s2698_s2 + $0x3] ss:$0 sm:$0xff] }
 0x162   :  { %v495_v9 = vadd.f32 %v494_v8, %v322_v5  ;;  %v496_v10 = vpop.f32.mrb[2].mxu0 }
 0x163   :  { %v498_v12 = vpop.f32.mrb[3].mxu0  ;;  %v497_v17 = vadd.f32 %v496_v10, %v318_v11  ;;  %v560_v18 = vpack.c.bf16 %v493_v16, %v493_v16 }
 0x164   :  { %v561_v13 = vpack.c.bf16 %v495_v9, %v495_v9  ;;  %v499_v14 = vadd.f32 %v498_v12, %v322_v5 }
 0x165   :  { %v668_v19 = vpack.c.bf16 %v497_v17, %v497_v17 }
 0x166   :  { %v669_v15 = vpack.c.bf16 %v499_v14, %v499_v14  ;;  %1934 = vmatpush3.bf16.xpose.msra.mxu0 %v561_v13 }
 0x167   :  { %1939 = vmatprep.subr.bf16.mxu0 %v2292_v63 }
 0x168   :  { %1946 = vmatpush3.bf16.xpose.msra.mxu1 %v669_v15 }
 0x169   :  { %1957 = vmatprep.subr.bf16.mxu1 %v2292_v63 }
 0x16d   :  { %1936 = vmatmul.mubr.bf16.vlgmr.msra.gmra.mrb[8].mxu0 %v560_v18 }
 0x16e   :  { %1941 = vmatprep.mubr.msk.bf16.mxu0 %vm2293_vm0, %v2292_v63 }
 0x16f   :  { %1948 = vmatmul.mubr.bf16.vlgmr.msra.gmra.mrb[4].mxu1 %v668_v19 }
 0x170   :  { %1959 = vmatprep.mubr.msk.bf16.mxu1 %vm2293_vm0, %v2292_v63 }
 0x171   :  { %v502_v20 = vpop.f32.mrb[4].mxu0 }
 0x172   :  { %v504_v21 = vpop.f32.mrb[5].mxu0  ;;  %v503_v27 = vadd.f32 %v502_v20, %v318_v11 }
 0x173   :  { %v505_v22 = vadd.f32 %v504_v21, %v322_v5  ;;  %v506_v23 = vpop.f32.mrb[6].mxu0 }
 0x174   :  { %v508_v24 = vpop.f32.mrb[7].mxu0  ;;  %v2528_v30 = vpop.f32.mrb[0].mxu1  ;;  %v774_v32 = vpack.c.bf16 %v503_v27, %v503_v27  ;;  %v507_v37 = vadd.f32 %v506_v23, %v318_v11 }
 0x175   :  { %v775_v26 = vpack.c.bf16 %v505_v22, %v505_v22  ;;  %v509_v29 = vadd.f32 %v508_v24, %v322_v5  ;;  %v545_v31 = vpop.f32.mrb[1].mxu1 }
 0x176   :  { %v546_v33 = vadd.f32 %v545_v31, %v2526_v28  ;;  %v2531_v34 = vpop.f32.mrb[2].mxu1  ;;  %v880_v39 = vpack.c.bf16 %v507_v37, %v507_v37  ;;  %v2051_v37 = vld [vmem:[#allocation9] sm:$0xff]  }
 0x177   :  { %1958 = vmatpush3.bf16.xpose.msra.mxu1 %v775_v26  ;;  %v881_v35 = vpack.c.bf16 %v509_v29, %v509_v29  ;;  %v2537_v40 = vpop.f32.mrb[3].mxu1 }
 0x178   :  { %1969 = vmatprep.subr.bf16.mxu1 %v2292_v63  ;;  %v562_v36 = vpack.c.bf16 %v546_v33, %v546_v33 }
 0x17a   :  { %v626_v38 = vsel %vm624_vm1, %v562_v36, 0 }
 0x17b   :  { %1940 = vmatpush3.bf16.msra.mxu0 %v626_v38  ;;  %v2052_v38 = vld [vmem:[#allocation9 + $0x8] sm:$0xff]  }
 0x17c   :  { %1951 = vmatprep.subr.bf16.mxu0 %v2292_v63 }
 0x17e   :  { %1960 = vmatmul.mubr.bf16.vlgmr.msra.gmra.mrb[8].mxu1 %v774_v32 }
 0x17f   :  { %1970 = vmatpush3.bf16.xpose.msra.mxu1 %v881_v35  ;;  %1971 = vmatprep.mubr.msk.bf16.mxu1 %vm2293_vm0, %v2292_v63 }
 0x180   :  { %1981 = vmatprep.subr.bf16.mxu1 %v2051_v37 }
 0x186   :  { %1972 = vmatmul.mubr.bf16.vlgmr.msra.gmra.mrb[12].mxu1 %v880_v39 }
 0x187   :  { %1982 = vmatpush3.bf16.msra.mxu1 %v2051_v37 }
 0x188   :  { %1983 = vmatprep.subr.bf16.mxu1 %v2052_v38 }
 0x18b   :  { %1984 = vmatpush3.bf16.msra.mxu1 %v2052_v38 }
 0x240   :  { %v602_v43 = vpop.f32.mrb[8].mxu0 }
 0x241   :  { %v603_v45 = vadd.f32 %v1793_v41, %v602_v43  ;;  %v1937_v47 = vpop.f32.mrb[9].mxu0  ;;  %v549_v43 = vadd.f32 %v2537_v40, %v2526_v28 }
 0x242   :  { %v605_v48 = vpop.f32.mrb[10].mxu0  ;;  %v710_v49 = vpop.f32.mrb[4].mxu1 }
 0x243   :  { %v711_v50 = vadd.f32 %v1795_v44, %v710_v49  ;;  %v1938_v51 = vpop.f32.mrb[11].mxu0  ;;  %v1949_v52 = vpop.f32.mrb[5].mxu1  ;;  %v609_v53 = vsel %vm608_vm2, %v603_v45, -inf }
 0x244   :  { %v713_v54 = vpop.f32.mrb[6].mxu1  ;;  %610 = vmax.xlane.f32.xlu0 %v609_v53  ;;  %v554_v51 = vadd.f32 %v2528_v30, %v2526_v28  ;;  %v557_v30 = vadd.f32 %v2531_v34, %v2526_v28 }
 0x245   :  { %v1950_v55 = vpop.f32.mrb[7].mxu1  ;;  %v716_v56 = vsel %vm608_vm2, %v711_v50, -inf }
 0x246   :  { %v776_v40 = vpack.c.bf16 %v554_v51, %v554_v51  ;;  %v2062_v51 = vld [vmem:[#allocation10 + $0x10] ss:$8 sps:$4 sm:$0xff]  }
 0x248   :  { %717 = vmax.xlane.f32.xlu0 %v716_v56  ;;  %v838_v56 = vsel %vm624_vm1, %v776_v40, 0 }
 0x251   :  { %v816_v59 = vpop.f32.mrb[8].mxu1 }
 0x252   :  { %v817_v61 = vadd.f32 %v1797_v57, %v816_v59  ;;  %v1961_v62 = vpop.f32.mrb[9].mxu1 }
 0x253   :  { %v819_v1 = vpop.f32.mrb[10].mxu1 }
 0x254   :  { %v822_v4 = vsel %vm608_vm2, %v817_v61, -inf  ;;  %v1962_v5 = vpop.f32.mrb[11].mxu1 }
 0x255   :  { %823 = vmax.xlane.f32.xlu1 %v822_v4  ;;  %v2053_v5 = vld [vmem:[#allocation9 + $0x10] sm:$0xff]  }
 0x256   :  { %1985 = vmatprep.subr.bf16.mxu1 %v2053_v5 }
 0x257   :  { %1986 = vmatpush3.bf16.msra.mxu1 %v2053_v5  ;;  %v2068_v5 = vld [vmem:[#allocation10 + $0x30] ss:$8 sps:$4 sm:$0xff]  }
 0x259   :  { %v922_v8 = vpop.f32.mrb[12].mxu1 }
 0x25a   :  { %v923_v9 = vadd.f32 %v1799_v7, %v922_v8  ;;  %v1973_v10 = vpop.f32.mrb[13].mxu1  ;;  %v2054_v7 = vld [vmem:[#allocation9 + $0x18] sm:$0xff]   ;;  %v2055_v8 = vld [vmem:[#allocation9 + $0x20] sm:$0xff]  }
 0x25b   :  { %v925_v11 = vpop.f32.mrb[14].mxu1  ;;  %1987 = vmatprep.subr.bf16.mxu1 %v2054_v7  ;;  %v2057_v10 = vld [vmem:[#allocation9 + $0x30] sm:$0xff]  }
 0x25c   :  { %v1974_v12 = vpop.f32.mrb[15].mxu1  ;;  %v928_v13 = vsel %vm608_vm2, %v923_v9, -inf  ;;  %1988 = vmatpush3.bf16.msra.mxu1 %v2054_v7  ;;  %v2073_v7 = vld [vmem:[#allocation10 + $0x44] ss:$8 sps:$4 sm:$0xff]  }
 0x25d   :  { %929 = vmax.xlane.f32.xlu1 %v928_v13  ;;  %1989 = vmatprep.subr.bf16.mxu1 %v2055_v8 }
 0x260   :  { %1990 = vmatpush3.bf16.msra.mxu1 %v2055_v8  ;;  %v2071_v8 = vld [vmem:[#allocation10 + $0x40] ss:$8 sps:$4 sm:$0xff]  }
 0x2d1   :  { %v611_v14 = vpop.xlane.xlu0 %610 }
 0x2d2   :  { %v612_v15 = vsub.f32 %v603_v45, %v611_v14  ;;  %v670_v45 = vpack.c.bf16 %v549_v43, %v549_v43 }
 0x2d4   :  { %v613_v16 = vmul.f32 1.442695, %v612_v15  ;;  %v732_v52 = vsel %vm624_vm1, %v670_v45, 0 }
 0x2d5   :  { %v718_v17 = vpop.xlane.xlu0 %717 }
 0x2d6   :  { %2099 = vpow2.f32 %v613_v16  ;;  %v719_v18 = vsub.f32 %v711_v50, %v718_v17 }
 0x2d8   :  { %v720_v19 = vmul.f32 1.442695, %v719_v18 }
 0x2da   :  { %2101 = vpow2.f32 %v720_v19 }
 0x2e0   :  { %v2100_v21 = vpop.eup %2099 }
 0x2e1   :  { %v615_v23 = vsel %vm608_vm2, %v2100_v21, 0.0 }
 0x2e2   :  { %v824_v20 = vpop.xlane.xlu1 %823  ;;  %616 = vadd.xlane.f32.xlu0 %v615_v23 }
 0x2e3   :  { %v825_v22 = vsub.f32 %v817_v61, %v824_v20  ;;  %v882_v61 = vpack.c.bf16 %v557_v30, %v557_v30 }
 0x2e4   :  { %v2102_v25 = vpop.eup %2101 }
 0x2e5   :  { %v826_v24 = vmul.f32 1.442695, %v825_v22  ;;  %v722_v26 = vsel %vm608_vm2, %v2102_v25, 0.0  ;;  %v944_v1 = vsel %vm624_vm1, %v882_v61, 0 }
 0x2e6   :  { %723 = vadd.xlane.f32.xlu1 %v722_v26 }
 0x2e7   :  { %2103 = vpow2.f32 %v826_v24 }
 0x2ea   :  { %v930_v27 = vpop.xlane.xlu1 %929 }
 0x2eb   :  { %v931_v29 = vsub.f32 %v923_v9, %v930_v27  ;;  %v2056_v9 = vld [vmem:[#allocation9 + $0x28] sm:$0xff]  }
 0x2ec   :  { %1991 = vmatprep.subr.bf16.mxu1 %v2056_v9 }
 0x2ed   :  { %v932_v31 = vmul.f32 1.442695, %v931_v29  ;;  %1992 = vmatpush3.bf16.msra.mxu1 %v2056_v9  ;;  %v2076_v9 = vld [vmem:[#allocation10 + $0x54] ss:$8 sps:$4 sm:$0xff]  }
 0x2ee   :  { %1993 = vmatprep.subr.bf16.mxu1 %v2057_v10 }
 0x2ef   :  { %2105 = vpow2.f32 %v932_v31  ;;  %v1801_v31 = vld [vmem:[%s2706_s10] ss:$0 sm:$0xff] }
 0x2f1   :  { %v2104_v32 = vpop.eup %2103  ;;  %1994 = vmatpush3.bf16.msra.mxu1 %v2057_v10  ;;  %v2074_v10 = vld [vmem:[#allocation10 + $0x50] ss:$8 sps:$4 sm:$0xff]  }
 0x2f2   :  { %v828_v33 = vsel %vm608_vm2, %v2104_v32, 0.0 }
 0x2f3   :  { %829 = vadd.xlane.f32.xlu0 %v828_v33 }
 0x2f9   :  { %v2106_v35 = vpop.eup %2105 }
 0x2fa   :  { %v934_v36 = vsel %vm608_vm2, %v2106_v35, 0.0 }
 0x2fb   :  { %935 = vadd.xlane.f32.xlu1 %v934_v36 }
 0x36f   :  { %v617_v39 = vpop.xlane.xlu0 %616 }
 0x370   :  { %2107 = vrcp.f32 %v617_v39 }
 0x373   :  { %v724_v41 = vpop.xlane.xlu1 %723 }
 0x374   :  { %2109 = vrcp.f32 %v724_v41 }
 0x37a   :  { %v2108_v44 = vpop.eup %2107 }
 0x37b   :  { %v619_v47 = vmul.f32 %v2108_v44, %v2100_v21 }
 0x37d   :  { %v620_v49 = vpack.c.bf16 %v619_v47, %v619_v47 }
 0x37e   :  { %v2110_v50 = vpop.eup %2109 }
 0x37f   :  { %1942 = vmatmul.mubr.msk.bf16.vlgmr.msra.gmra.mrb[12].mxu0 %vm608_vm2, %v620_v49  ;;  %v726_v53 = vmul.f32 %v2110_v50, %v2102_v25  ;;  %v2061_v49 = vld [vmem:[#allocation10 + $0x4] ss:$8 sps:$4 sm:$0xff]   ;;  %v2064_v50 = vld [vmem:[#allocation10 + $0x14] ss:$8 sps:$4 sm:$0xff]  }
 0x380   :  { %v830_v48 = vpop.xlane.xlu0 %829  ;;  %1952 = vmatpush3.bf16.msra.mxu0 %v732_v52  ;;  %1953 = vmatprep.mubr.msk.bf16.mxu0 %vm2293_vm0, %v2292_v63 }
 0x381   :  { %2111 = vrcp.f32 %v830_v48  ;;  %1963 = vmatprep.subr.bf16.mxu0 %v2292_v63  ;;  %v727_v55 = vpack.c.bf16 %v726_v53, %v726_v53  ;;  %v2059_v48 = vld [vmem:[#allocation10] ss:$8 sps:$4 sm:$0xff]  }
 0x387   :  { %1954 = vmatmul.mubr.msk.bf16.vlgmr.msra.gmra.mrb[16].mxu0 %vm608_vm2, %v727_v55 }
 0x388   :  { %v936_v54 = vpop.xlane.xlu1 %935  ;;  %1964 = vmatpush3.bf16.msra.mxu0 %v838_v56  ;;  %1965 = vmatprep.mubr.msk.bf16.mxu0 %vm2293_vm0, %v2292_v63 }
 0x389   :  { %2113 = vrcp.f32 %v936_v54  ;;  %1975 = vmatprep.subr.bf16.mxu0 %v2292_v63 }
 0x38b   :  { %v2112_v57 = vpop.eup %2111 }
 0x38c   :  { %v832_v59 = vmul.f32 %v2112_v57, %v2104_v32 }
 0x38e   :  { %v833_v62 = vpack.c.bf16 %v832_v59, %v832_v59 }
 0x390   :  { %1966 = vmatmul.mubr.msk.bf16.vlgmr.msra.gmra.mrb[20].mxu0 %vm608_vm2, %v833_v62 }
 0x391   :  { %1976 = vmatpush3.bf16.msra.mxu0 %v944_v1  ;;  %1977 = vmatprep.mubr.msk.bf16.mxu0 %vm2293_vm0, %v2292_v63  ;;  %v2058_v63 = vld [vmem:[#allocation9 + $0x38] sm:$0xff]  }
 0x392   :  { %1995 = vmatprep.subr.bf16.mxu1 %v2058_v63  ;;  %1283 = vmatprep.subr.bf16.mxu0 %v2061_v49 }
 0x393   :  { %v2114_v4 = vpop.eup %2113  ;;  %1996 = vmatpush3.bf16.msra.mxu1 %v2058_v63  ;;  %v2079_v63 = vld [vmem:[#allocation10 + $0x64] ss:$8 sps:$4 sm:$0xff]  }
 0x394   :  { %v938_v28 = vmul.f32 %v2114_v4, %v2106_v35  ;;  %v2067_v4 = vld [vmem:[#allocation10 + $0x24] ss:$8 sps:$4 sm:$0xff]  }
 0x396   :  { %v939_v34 = vpack.c.bf16 %v938_v28, %v938_v28  ;;  %v2065_v28 = vld [vmem:[#allocation10 + $0x20] ss:$8 sps:$4 sm:$0xff]  }
 0x398   :  { %1978 = vmatmul.mubr.msk.bf16.vlgmr.msra.gmra.mrb[24].mxu0 %vm608_vm2, %v939_v34  ;;  %v2070_v34 = vld [vmem:[#allocation10 + $0x34] ss:$8 sps:$4 sm:$0xff]  }
 0x399   :  { %1315 = vmatprep.mubr.bf16.mxu0 %v2291_v0  ;;  %1284 = vmatpush1.bf16.msra.mxu0 %v2059_v48 }
 0x39a   :  { %1285 = vmatprep.subr.bf16.mxu0 %v2064_v50 }
 0x39d   :  { %1286 = vmatpush1.bf16.msra.mxu0 %v2062_v51 }
 0x39e   :  { %1287 = vmatprep.subr.bf16.mxu0 %v2067_v4 }
 0x3a1   :  { %1288 = vmatpush1.bf16.msra.mxu0 %v2065_v28 }
 0x3a2   :  { %1289 = vmatprep.subr.bf16.mxu0 %v2070_v34 }
 0x3a5   :  { %1290 = vmatpush1.bf16.msra.mxu0 %v2068_v5 }
 0x3a6   :  { %1291 = vmatprep.subr.bf16.mxu0 %v2073_v7 }
 0x3a9   :  { %1292 = vmatpush1.bf16.msra.mxu0 %v2071_v8 }
 0x3aa   :  { %1293 = vmatprep.subr.bf16.mxu0 %v2076_v9 }
 0x3ad   :  { %1294 = vmatpush1.bf16.msra.mxu0 %v2074_v10 }
 0x3ae   :  { %1295 = vmatprep.subr.bf16.mxu0 %v2079_v63 }
 0x452   :  { %v662_v11 = vpop.f32.mrb[12].mxu0 }
 0x453   :  { %v1943_v12 = vpop.f32.mrb[13].mxu0 }
 0x454   :  { %v665_v13 = vpop.f32.mrb[14].mxu0  ;;  %v2082_v12 = vld [vmem:[#allocation10 + $0x74] ss:$8 sps:$4 sm:$0xff]  }
 0x455   :  { %v1944_v14 = vpop.f32.mrb[15].mxu0  ;;  %v2080_v13 = vld [vmem:[#allocation10 + $0x70] ss:$8 sps:$4 sm:$0xff]  }
 0x45a   :  { %v768_v15 = vpop.f32.mrb[16].mxu0 }
 0x45b   :  { %v986_v16 = vpack.c.bf16 %v768_v15, %v662_v11  ;;  %v1955_v17 = vpop.f32.mrb[17].mxu0  ;;  %v2077_v11 = vld [vmem:[#allocation10 + $0x60] ss:$8 sps:$4 sm:$0xff]  }
 0x45c   :  { %v771_v18 = vpop.f32.mrb[18].mxu0  ;;  %1296 = vmatpush1.bf16.msra.mxu0 %v2077_v11 }
 0x45d   :  { %v1956_v19 = vpop.f32.mrb[19].mxu0  ;;  %1997 = vmatprep.mubr.bf16.mxu1 %v986_v16  ;;  %1297 = vmatprep.subr.bf16.mxu0 %v2082_v12 }
 0x460   :  { %1298 = vmatpush1.bf16.msra.mxu0 %v2080_v13 }
 0x463   :  { %v874_v20 = vpop.f32.mrb[20].mxu0 }
 0x464   :  { %v1967_v21 = vpop.f32.mrb[21].mxu0 }
 0x465   :  { %v877_v22 = vpop.f32.mrb[22].mxu0 }
 0x466   :  { %v1968_v23 = vpop.f32.mrb[23].mxu0 }
 0x46b   :  { %v980_v24 = vpop.f32.mrb[24].mxu0 }
 0x46c   :  { %v987_v25 = vpack.c.bf16 %v980_v24, %v874_v20  ;;  %v1979_v26 = vpop.f32.mrb[25].mxu0 }
 0x46d   :  { %v983_v27 = vpop.f32.mrb[26].mxu0 }
 0x46e   :  { %v1980_v29 = vpop.f32.mrb[27].mxu0  ;;  %1998 = vmatmul.mubr.bf16.vlgmr.msra.gmra.mrb[16].mxu1 %v987_v25  ;;  %v1810_v27 = vld [vmem:[%s2706_s10 + $0x1] ss:$0 sm:$0xff] }
 0x541   :  { %v1999_v32 = vpop.f32.mrb[16].mxu1 }
 0x542   :  { %v1091_v33 = vpop.f32.mrb[17].mxu1  ;;  %v1100_v38 = vadd.f32 %v1999_v32, %v1801_v31 }
 0x543   :  { %v1092_v35 = vadd.f32 %v1801_v31, %v1091_v33  ;;  %v2000_v36 = vpop.f32.mrb[18].mxu1 }
 0x544   :  { %v1094_v37 = vpop.f32.mrb[19].mxu1  ;;  %v1103_v43 = vadd.f32 %v2000_v36, %v1801_v31  ;;  %v1108_v45 = vadd.f32 %v1100_v38, %v2495_v58  ;;  %v1811_v36 = vld [vmem:[%s2706_s10 + $0x2] ss:$0 sm:$0xff] }
 0x545   :  { %v1095_v39 = vadd.f32 %v1801_v31, %v1094_v37  ;;  %v1106_v41 = vadd.f32 %v1092_v35, %v2485_v42 }
 0x546   :  { %v1109_v47 = vadd.f32 %v1103_v43, %v2497_v60 }
 0x547   :  { %1112 = vadd.xlane.f32.xlu0 %v1106_v41  ;;  %v1107_v44 = vadd.f32 %v1095_v39, %v2490_v46 }
 0x549   :  { %1114 = vadd.xlane.f32.xlu1 %v1107_v44 }
 0x54b   :  { %1116 = vadd.xlane.f32.xlu0 %v1108_v45 }
 0x54d   :  { %1118 = vadd.xlane.f32.xlu1 %v1109_v47 }
 0x5d4   :  { %v1113_v42 = vpop.xlane.xlu0 %1112 }
 0x5d5   :  { %v1121_v52 = vmul.f32 0.0078125, %v1113_v42  ;;  %v2083_v42 = vld [vmem:[#allocation12 + $0x40] sm:$0xff]  }
 0x5d6   :  { %v1115_v53 = vpop.xlane.xlu1 %1114  ;;  %1885 = vmatprep.subr.bf16.mxu1 %v2083_v42 }
 0x5d7   :  { %v1125_v40 = vsub.f32 %v1106_v41, %v1121_v52  ;;  %v1122_v46 = vmul.f32 0.0078125, %v1115_v53  ;;  %v2084_v52 = vld [vmem:[#allocation12] sm:$0xff]   ;;  %v2085_v53 = vld [vmem:[#allocation12 + $0x48] sm:$0xff]  }
 0x5d8   :  { %v1117_v54 = vpop.xlane.xlu0 %1116  ;;  %1886 = vmatpush3.bf16.msra.mxu1 %v2084_v52 }
 0x5d9   :  { %v1126_v55 = vsub.f32 %v1107_v44, %v1122_v46  ;;  %v1123_v58 = vmul.f32 0.0078125, %v1117_v54  ;;  %v1129_v56 = vmul.f32 %v1125_v40, %v1125_v40  ;;  %1887 = vmatprep.subr.bf16.mxu1 %v2085_v53  ;;  %v2087_v46 = vld [vmem:[#allocation12 + $0x50] sm:$0xff]  }
 0x5da   :  { %v1119_v30 = vpop.xlane.xlu1 %1118  ;;  %v2088_v54 = vld [vmem:[#allocation12 + $0x10] sm:$0xff]  }
 0x5db   :  { %v1127_v60 = vsub.f32 %v1108_v45, %v1123_v58  ;;  %v1124_v57 = vmul.f32 0.0078125, %v1119_v30  ;;  %1133 = vadd.xlane.f32.xlu0 %v1129_v56  ;;  %v1130_v59 = vmul.f32 %v1126_v55, %v1126_v55  ;;  %v2091_v58 = vld [vmem:[#allocation12 + $0x60] sm:$0xff]   ;;  %v2093_v30 = vld [vmem:[#allocation12 + $0x68] sm:$0xff]  }
 0x5dc   :  { %v2092_v56 = vld [vmem:[#allocation12 + $0x20] sm:$0xff]  }
 0x5dd   :  { %v1128_v61 = vsub.f32 %v1109_v47, %v1124_v57  ;;  %1135 = vadd.xlane.f32.xlu1 %v1130_v59  ;;  %v1131_v62 = vmul.f32 %v1127_v60, %v1127_v60  ;;  %v2095_v57 = vld [vmem:[#allocation12 + $0x70] sm:$0xff]  }
 0x5de   :  { %v2096_v59 = vld [vmem:[#allocation12 + $0x30] sm:$0xff]  }
 0x5df   :  { %1137 = vadd.xlane.f32.xlu0 %v1131_v62  ;;  %v1132_v1 = vmul.f32 %v1128_v61, %v1128_v61  ;;  %v2098_v62 = vld [vmem:[#allocation12 + $0x38] sm:$0xff]  }
 0x5e1   :  { %1139 = vadd.xlane.f32.xlu1 %v1132_v1  ;;  %v1191_v1 = vld [vmem:[%s2704_s8] sm:$0x3] }
 0x5e2   :  { %v1196_v4 = vrot.slane %v1191_v1, %v317_v6  ;;  %v1200_v28 = vrot.slane %v1191_v1, %v321_v3 }
 0x668   :  { %v1134_v14 = vpop.xlane.xlu0 %1133 }
 0x669   :  { %v1141_v15 = vmul.f32 0.0078125, %v1134_v14 }
 0x66a   :  { %v1136_v16 = vpop.xlane.xlu1 %1135 }
 0x66b   :  { %v1145_v17 = vadd.f32 1e-05, %v1141_v15  ;;  %v1142_v18 = vmul.f32 0.0078125, %v1136_v16 }
 0x66c   :  { %v1138_v19 = vpop.xlane.xlu0 %1137 }
 0x66d   :  { %2115 = vrsqrt.f32 %v1145_v17  ;;  %v1146_v20 = vadd.f32 1e-05, %v1142_v18  ;;  %v1143_v21 = vmul.f32 0.0078125, %v1138_v19 }
 0x66e   :  { %v1140_v22 = vpop.xlane.xlu1 %1139 }
 0x66f   :  { %2117 = vrsqrt.f32 %v1146_v20  ;;  %v1147_v23 = vadd.f32 1e-05, %v1143_v21  ;;  %v1144_v24 = vmul.f32 0.0078125, %v1140_v22 }
 0x671   :  { %2119 = vrsqrt.f32 %v1147_v23  ;;  %v1148_v25 = vadd.f32 1e-05, %v1144_v24 }
 0x673   :  { %2121 = vrsqrt.f32 %v1148_v25 }
 0x677   :  { %v2116_v26 = vpop.eup %2115 }
 0x678   :  { %v1153_v29 = vmul.f32 %v2116_v26, %v1125_v40  ;;  %v2086_v40 = vld [vmem:[#allocation12 + $0x8] sm:$0xff]  }
 0x679   :  { %v2118_v31 = vpop.eup %2117  ;;  %1888 = vmatpush3.bf16.msra.mxu1 %v2086_v40 }
 0x67a   :  { %v1154_v32 = vmul.f32 %v2118_v31, %v1126_v55  ;;  %v1161_v33 = vmul.f32 %v1810_v27, %v1153_v29  ;;  %1889 = vmatprep.subr.bf16.mxu1 %v2087_v46  ;;  %v2090_v55 = vld [vmem:[#allocation12 + $0x18] sm:$0xff]  }
 0x67b   :  { %v2120_v35 = vpop.eup %2119 }
 0x67c   :  { %v1162_v37 = vmul.f32 %v1810_v27, %v1154_v32  ;;  %v2594_v39 = vadd.f32 %v1811_v36, %v1161_v33  ;;  %v1155_v43 = vmul.f32 %v2120_v35, %v1127_v60  ;;  %v2094_v60 = vld [vmem:[#allocation12 + $0x28] sm:$0xff]  }
 0x67d   :  { %v2122_v38 = vpop.eup %2121  ;;  %1890 = vmatpush3.bf16.msra.mxu1 %v2088_v54 }
 0x67e   :  { %v2596_v41 = vadd.f32 %v1811_v36, %v1162_v37  ;;  %v1156_v44 = vmul.f32 %v2122_v38, %v1128_v61  ;;  %v1163_v48 = vmul.f32 %v1810_v27, %v1155_v43  ;;  %v2097_v61 = vld [vmem:[#allocation12 + $0x78] sm:$0xff]  }
 0x680   :  { %v1173_v45 = vpack.c.bf16 %v2596_v41, %v2594_v39  ;;  %v1164_v47 = vmul.f32 %v1810_v27, %v1156_v44  ;;  %v2603_v50 = vadd.f32 %v1811_v36, %v1163_v48 }
 0x682   :  { %1316 = vmatmul.mubr.bf16.vlgmr.msra.gmra.mrb[28].mxu0 %v1173_v45  ;;  %v2601_v49 = vadd.f32 %v1811_v36, %v1164_v47 }
 0x683   :  { %1325 = vmatprep.mubr.bf16.mxu0 %v2291_v0  ;;  %v2089_v0 = vld [vmem:[#allocation12 + $0x58] sm:$0xff]  }
 0x684   :  { %v1174_v51 = vpack.c.bf16 %v2601_v49, %v2603_v50  ;;  %1891 = vmatprep.subr.bf16.mxu1 %v2089_v0 }
 0x685   :  { %1892 = vmatpush3.bf16.msra.mxu1 %v2090_v55 }
 0x686   :  { %1893 = vmatprep.subr.bf16.mxu1 %v2091_v58 }
 0x689   :  { %1894 = vmatpush3.bf16.msra.mxu1 %v2092_v56 }
 0x68a   :  { %1326 = vmatmul.mubr.bf16.gmra.mrb[32].mxu0 %v1174_v51  ;;  %1895 = vmatprep.subr.bf16.mxu1 %v2093_v30 }
 0x68d   :  { %1896 = vmatpush3.bf16.msra.mxu1 %v2094_v60 }
 0x68e   :  { %1897 = vmatprep.subr.bf16.mxu1 %v2095_v57 }
 0x691   :  { %1898 = vmatpush3.bf16.msra.mxu1 %v2096_v59 }
 0x692   :  { %1899 = vmatprep.subr.bf16.mxu1 %v2097_v61 }
 0x695   :  { %1900 = vmatpush3.bf16.msra.mxu1 %v2098_v62 }
 0x755   :  { %v1317_v34 = vpop.f32.mrb[28].mxu0 }
 0x756   :  { %v2614_v5 = vadd.f32 %v1317_v34, %v1196_v4  ;;  %v1319_v7 = vpop.f32.mrb[29].mxu0 }
 0x757   :  { %v2616_v8 = vadd.f32 %v1319_v7, %v1200_v28  ;;  %v1321_v9 = vpop.f32.mrb[30].mxu0 }
 0x758   :  { %v1336_v10 = vmul.f32 %v2614_v5, %v2614_v5  ;;  %v2620_v63 = vadd.f32 %v1321_v9, %v1196_v4  ;;  %v1323_v11 = vpop.f32.mrb[31].mxu0 }
 0x759   :  { %v1337_v12 = vmul.f32 %v2616_v8, %v2616_v8  ;;  %v2624_v6 = vadd.f32 %v1323_v11, %v1200_v28 }
 0x75a   :  { %v1344_v2 = vmul.f32 %v1336_v10, %v2614_v5  ;;  %v1338_v3 = vmul.f32 %v2620_v63, %v2620_v63 }
 0x75b   :  { %v1345_v13 = vmul.f32 %v1337_v12, %v2616_v8  ;;  %v1339_v14 = vmul.f32 %v2624_v6, %v2624_v6 }
 0x75c   :  { %v1352_v15 = vmul.f32 0.044715, %v1344_v2  ;;  %v1346_v16 = vmul.f32 %v1338_v3, %v2620_v63 }
 0x75d   :  { %v1353_v17 = vmul.f32 0.044715, %v1345_v13  ;;  %v1347_v18 = vmul.f32 %v1339_v14, %v2624_v6  ;;  %v1327_v19 = vpop.f32.mrb[32].mxu0 }
 0x75e   :  { %v1360_v20 = vadd.f32 %v1352_v15, %v2614_v5  ;;  %v1354_v21 = vmul.f32 0.044715, %v1346_v16  ;;  %v2635_v22 = vadd.f32 %v1327_v19, %v1196_v4  ;;  %v1329_v23 = vpop.f32.mrb[33].mxu0 }
 0x75f   :  { %v1361_v24 = vadd.f32 %v1353_v17, %v2616_v8  ;;  %v1355_v25 = vmul.f32 0.044715, %v1347_v18  ;;  %v2638_v26 = vadd.f32 %v1329_v23, %v1200_v28  ;;  %v1331_v27 = vpop.f32.mrb[34].mxu0 }
 0x760   :  { %v1368_v29 = vmul.f32 0.7978846, %v1360_v20  ;;  %v1362_v31 = vadd.f32 %v1354_v21, %v2620_v63  ;;  %v1340_v32 = vmul.f32 %v2635_v22, %v2635_v22  ;;  %v2643_v33 = vadd.f32 %v1331_v27, %v1196_v4  ;;  %v1333_v35 = vpop.f32.mrb[35].mxu0 }
 0x761   :  { %v1369_v36 = vmul.f32 0.7978846, %v1361_v24  ;;  %v1363_v37 = vadd.f32 %v1355_v25, %v2624_v6  ;;  %v1341_v38 = vmul.f32 %v2638_v26, %v2638_v26  ;;  %v2648_v43 = vadd.f32 %v1333_v35, %v1200_v28 }
 0x762   :  { %2123 = vtanh.f32 %v1368_v29  ;;  %v1370_v44 = vmul.f32 0.7978846, %v1362_v31  ;;  %v1348_v45 = vmul.f32 %v1340_v32, %v2635_v22  ;;  %v1342_v47 = vmul.f32 %v2643_v33, %v2643_v33 }
 0x763   :  { %2125 = vtanh.f32 %v1369_v36  ;;  %v1371_v48 = vmul.f32 0.7978846, %v1363_v37  ;;  %v1349_v51 = vmul.f32 %v1341_v38, %v2638_v26  ;;  %v1343_v42 = vmul.f32 %v2648_v43, %v2648_v43 }
 0x764   :  { %2127 = vtanh.f32 %v1370_v44  ;;  %v1356_v52 = vmul.f32 0.044715, %v1348_v45  ;;  %v1350_v53 = vmul.f32 %v1342_v47, %v2643_v33 }
 0x765   :  { %2129 = vtanh.f32 %v1371_v48  ;;  %v1357_v40 = vmul.f32 0.044715, %v1349_v51  ;;  %v1351_v46 = vmul.f32 %v1343_v42, %v2648_v43 }
 0x766   :  { %v1364_v54 = vadd.f32 %v1356_v52, %v2635_v22  ;;  %v1358_v0 = vmul.f32 0.044715, %v1350_v53 }
 0x767   :  { %v1365_v55 = vadd.f32 %v1357_v40, %v2638_v26  ;;  %v1359_v58 = vmul.f32 0.044715, %v1351_v46 }
 0x768   :  { %v1372_v56 = vmul.f32 0.7978846, %v1364_v54  ;;  %v1366_v30 = vadd.f32 %v1358_v0, %v2643_v33 }
 0x769   :  { %v1373_v60 = vmul.f32 0.7978846, %v1365_v55  ;;  %v1367_v57 = vadd.f32 %v1359_v58, %v2648_v43 }
 0x76a   :  { %2131 = vtanh.f32 %v1372_v56  ;;  %v1374_v59 = vmul.f32 0.7978846, %v1366_v30 }
 0x76b   :  { %2133 = vtanh.f32 %v1373_v60  ;;  %v1375_v61 = vmul.f32 0.7978846, %v1367_v57 }
 0x76c   :  { %v2124_v62 = vpop.eup %2123  ;;  %2135 = vtanh.f32 %v1374_v59 }
 0x76d   :  { %v2126_v1 = vpop.eup %2125  ;;  %v1384_v4 = vadd.f32 1.0, %v2124_v62  ;;  %2137 = vtanh.f32 %v1375_v61 }
 0x76e   :  { %v2128_v28 = vpop.eup %2127  ;;  %v1385_v34 = vadd.f32 1.0, %v2126_v1 }
 0x76f   :  { %v2130_v7 = vpop.eup %2129  ;;  %v1392_v9 = vmul.f32 0.5, %v1384_v4  ;;  %v1386_v10 = vadd.f32 1.0, %v2128_v28 }
 0x770   :  { %v1387_v11 = vadd.f32 1.0, %v2130_v7  ;;  %v1393_v12 = vmul.f32 0.5, %v1385_v34 }
 0x771   :  { %v1394_v2 = vmul.f32 0.5, %v1386_v10  ;;  %v1400_v13 = vmul.f32 %v1392_v9, %v2614_v5 }
 0x772   :  { %v1395_v3 = vmul.f32 0.5, %v1387_v11  ;;  %v1401_v16 = vmul.f32 %v1393_v12, %v2616_v8  ;;  %v1848_v12 = vld [vmem:[%s2706_s10 + $0x7] ss:$0 sm:$0xff] }
 0x773   :  { %v1402_v14 = vmul.f32 %v1394_v2, %v2620_v63 }
 0x774   :  { %v2132_v15 = vpop.eup %2131  ;;  %v1403_v17 = vmul.f32 %v1395_v3, %v2624_v6 }
 0x775   :  { %v2134_v18 = vpop.eup %2133  ;;  %v1408_v19 = vpack.c.bf16 %v1402_v14, %v1400_v13  ;;  %v1388_v20 = vadd.f32 1.0, %v2132_v15 }
 0x776   :  { %v2136_v21 = vpop.eup %2135  ;;  %v1409_v23 = vpack.c.bf16 %v1403_v17, %v1401_v16  ;;  %v1389_v24 = vadd.f32 1.0, %v2134_v18 }
 0x777   :  { %v2138_v25 = vpop.eup %2137  ;;  %v1390_v27 = vadd.f32 1.0, %v2136_v21  ;;  %v1396_v29 = vmul.f32 0.5, %v1388_v20 }
 0x778   :  { %1577 = vmatprep.mubr.bf16.mxu1 %v1409_v23  ;;  %v1391_v31 = vadd.f32 1.0, %v2138_v25  ;;  %v1397_v32 = vmul.f32 0.5, %v1389_v24 }
 0x779   :  { %1578 = vmatmul.mubr.bf16.vlgmr.msra.gmra.mrb[20].mxu1 %v1408_v19  ;;  %v1398_v5 = vmul.f32 0.5, %v1390_v27  ;;  %v1404_v35 = vmul.f32 %v1396_v29, %v2635_v22  ;;  %v1828_v22 = vld [vmem:[%s2706_s10 + $0x3] ss:$0 sm:$0xff]  ;;  %v1845_v29 = vld [vmem:[%s2706_s10 + $0x4] ss:$0 sm:$0xff] }
 0x77a   :  { %v1399_v63 = vmul.f32 0.5, %v1391_v31  ;;  %v1405_v6 = vmul.f32 %v1397_v32, %v2638_v26 }
 0x77b   :  { %v1406_v8 = vmul.f32 %v1398_v5, %v2643_v33 }
 0x77c   :  { %v1407_v36 = vmul.f32 %v1399_v63, %v2648_v43 }
 0x77d   :  { %v1410_v37 = vpack.c.bf16 %v1406_v8, %v1404_v35  ;;  %v1846_v35 = vld [vmem:[%s2706_s10 + $0x5] ss:$0 sm:$0xff] }
 0x77e   :  { %v1411_v38 = vpack.c.bf16 %v1407_v36, %v1405_v6 }
 0x780   :  { %1585 = vmatprep.mubr.bf16.mxu1 %v1411_v38 }
 0x781   :  { %1586 = vmatmul.mubr.bf16.gmra.mrb[24].mxu1 %v1410_v37 }
 0x84c   :  { %v1901_v44 = vpop.f32.mrb[20].mxu1 }
 0x84d   :  { %v1902_v45 = vpop.f32.mrb[21].mxu1 }
 0x84e   :  { %v1903_v47 = vadd.f32 %v1902_v45, %v1901_v44  ;;  %v1904_v48 = vpop.f32.mrb[22].mxu1 }
 0x84f   :  { %v1905_v51 = vpop.f32.mrb[23].mxu1 }
 0x850   :  { %v1906_v42 = vadd.f32 %v1905_v51, %v1904_v48  ;;  %v1580_v33 = vadd.f32 %v1903_v47, %v1828_v22 }
 0x852   :  { %v1583_v52 = vadd.f32 %v1906_v42, %v1828_v22  ;;  %v1594_v58 = vadd.f32 %v1580_v33, %v2594_v39  ;;  %v1847_v33 = vld [vmem:[%s2706_s10 + $0x6] ss:$0 sm:$0xff] }
 0x854   :  { %v1907_v53 = vpop.f32.mrb[24].mxu1  ;;  %v1595_v26 = vadd.f32 %v1583_v52, %v2596_v41 }
 0x855   :  { %v1908_v43 = vpop.f32.mrb[25].mxu1 }
 0x856   :  { %v1909_v40 = vadd.f32 %v1908_v43, %v1907_v53  ;;  %v1910_v46 = vpop.f32.mrb[26].mxu1  ;;  %1602 = vadd.xlane.f32.xlu0 %v1595_v26 }
 0x857   :  { %v1911_v54 = vpop.f32.mrb[27].mxu1 }
 0x858   :  { %v1588_v0 = vadd.f32 %v1909_v40, %v1828_v22  ;;  %v1912_v55 = vadd.f32 %v1911_v54, %v1910_v46  ;;  %v1685_v46 = vld [vmem:[%s2699_s3] sm:$0xf] }
 0x859   :  { %v1690_v54 = vmul.f32 %v1848_v12, %v1685_v46 }
 0x85a   :  { %v1591_v56 = vadd.f32 %v1912_v55, %v1828_v22  ;;  %1600 = vadd.xlane.f32.xlu0 %v1594_v58  ;;  %v1596_v30 = vadd.f32 %v1588_v0, %v2603_v50 }
 0x85c   :  { %1604 = vadd.xlane.f32.xlu1 %v1596_v30  ;;  %v1597_v60 = vadd.f32 %v1591_v56, %v2601_v49 }
 0x860   :  { %1606 = vadd.xlane.f32.xlu1 %v1597_v60 }
 0x8e3   :  { %v1603_v57 = vpop.xlane.xlu0 %1602 }
 0x8e4   :  { %v1609_v59 = vmul.f32 0.0078125, %v1603_v57 }
 0x8e6   :  { %v1613_v41 = vsub.f32 %v1595_v26, %v1609_v59 }
 0x8e7   :  { %v1601_v61 = vpop.xlane.xlu0 %1600 }
 0x8e8   :  { %v1608_v62 = vmul.f32 0.0078125, %v1601_v61  ;;  %v1617_v1 = vmul.f32 %v1613_v41, %v1613_v41 }
 0x8e9   :  { %v1605_v4 = vpop.xlane.xlu1 %1604 }
 0x8ea   :  { %v1612_v28 = vsub.f32 %v1594_v58, %v1608_v62  ;;  %v1610_v34 = vmul.f32 0.0078125, %v1605_v4  ;;  %1622 = vadd.xlane.f32.xlu0 %v1617_v1 }
 0x8ec   :  { %v1614_v7 = vsub.f32 %v1596_v30, %v1610_v34  ;;  %v1616_v39 = vmul.f32 %v1612_v28, %v1612_v28 }
 0x8ed   :  { %v1607_v9 = vpop.xlane.xlu1 %1606 }
 0x8ee   :  { %v1611_v10 = vmul.f32 0.0078125, %v1607_v9  ;;  %1620 = vadd.xlane.f32.xlu0 %v1616_v39  ;;  %v1618_v50 = vmul.f32 %v1614_v7, %v1614_v7 }
 0x8f0   :  { %v1615_v11 = vsub.f32 %v1597_v60, %v1611_v10  ;;  %1624 = vadd.xlane.f32.xlu1 %v1618_v50 }
 0x8f2   :  { %v1619_v49 = vmul.f32 %v1615_v11, %v1615_v11 }
 0x8f4   :  { %1626 = vadd.xlane.f32.xlu1 %v1619_v49 }
 0x905   :  { %1693 = vrot.lane.b32.xlu1 %v1848_v12, %s2294_s30 }
 0x977   :  { %v1623_v2 = vpop.xlane.xlu0 %1622 }
 0x978   :  { %v1629_v3 = vmul.f32 0.0078125, %v1623_v2 }
 0x97a   :  { %v1633_v13 = vadd.f32 1e-05, %v1629_v3 }
 0x97b   :  { %v1621_v14 = vpop.xlane.xlu0 %1620 }
 0x97c   :  { %2139 = vrsqrt.f32 %v1633_v13  ;;  %v1628_v15 = vmul.f32 0.0078125, %v1621_v14 }
 0x97d   :  { %v1625_v16 = vpop.xlane.xlu1 %1624 }
 0x97e   :  { %v1632_v17 = vadd.f32 1e-05, %v1628_v15  ;;  %v1630_v18 = vmul.f32 0.0078125, %v1625_v16 }
 0x980   :  { %2141 = vrsqrt.f32 %v1632_v17  ;;  %v1634_v19 = vadd.f32 1e-05, %v1630_v18 }
 0x981   :  { %v1627_v20 = vpop.xlane.xlu1 %1626 }
 0x982   :  { %2143 = vrsqrt.f32 %v1634_v19  ;;  %v1631_v21 = vmul.f32 0.0078125, %v1627_v20 }
 0x984   :  { %v1635_v23 = vadd.f32 1e-05, %v1631_v21 }
 0x985   :  { %v1694_v55 = vpop.permute.xlu1 %1693 }
 0x986   :  { %v2140_v24 = vpop.eup %2139  ;;  %2145 = vrsqrt.f32 %v1635_v23 }
 0x987   :  { %v1641_v25 = vmul.f32 %v2140_v24, %v1613_v41 }
 0x989   :  { %v1649_v5 = vmul.f32 %v1845_v29, %v1641_v25 }
 0x98a   :  { %v2142_v27 = vpop.eup %2141 }
 0x98b   :  { %v1640_v31 = vmul.f32 %v2142_v27, %v1612_v28  ;;  %v1657_v38 = vadd.f32 %v1846_v35, %v1649_v5 }
 0x98c   :  { %v2144_v32 = vpop.eup %2143 }
 0x98d   :  { %v1642_v63 = vmul.f32 %v2144_v32, %v1614_v7  ;;  %v1648_v8 = vmul.f32 %v1845_v29, %v1640_v31  ;;  %v1661_v42 = vrot.slane %v1657_v38, 7 }
 0x98f   :  { %v1650_v6 = vmul.f32 %v1845_v29, %v1642_v63  ;;  %v1656_v47 = vadd.f32 %v1846_v35, %v1648_v8 }
 0x990   :  { %v2146_v36 = vpop.eup %2145 }
 0x991   :  { %v1643_v37 = vmul.f32 %v2146_v36, %v1615_v11  ;;  %v1658_v44 = vadd.f32 %v1846_v35, %v1650_v6  ;;  %v1670_v52 = vsel %vm1669_vm3, %v1656_v47, %v1661_v42 }
 0x993   :  { %v1651_v45 = vmul.f32 %v1845_v29, %v1643_v37  ;;  %v1664_v48 = vrot.slane %v1658_v44, 6 }
 0x995   :  { %v1659_v51 = vadd.f32 %v1846_v35, %v1651_v45  ;;  %v1672_v53 = vsel %vm1671_vm4, %v1670_v52, %v1664_v48 }
 0x997   :  { %v1667_v22 = vrot.slane %v1659_v51, 5 }
 0x999   :  { %v1674_v26 = vsel %vm1673_vm5, %v1672_v53, %v1667_v22 }
 0x99a   :  { %v1680_v43 = vmul.f32 %v1847_v33, %v1674_v26 }
 0x99c   :  { %v1681_v40 = vsel %vm624_vm1, %v1680_v43, 0.0 }
 0x99d   :  { %1682 = vadd.xlane.f32.xlu0 %v1681_v40 }
 0xa2a   :  { %v1683_v0 = vpop.xlane.xlu0 %1682 }
 0xa2b   :  { %v1691_v58 = vadd.f32 %v1690_v54, %v1683_v0 }
 0xa2d   :  { %v1696_v56 = vadd.f32 %v1694_v55, %v1691_v58 }
 0xa2f   :  { %1698 = vst.msk [vmem:[%s2707_s11] sm:$0xf] %vm1697_vm6, %v1696_v56 }
 0xa30   :  { %1703 = vsyncpa [#allocation6], 1 }
 0xa31   :  { %1704 = vsyncpa [#allocation8], 1 }
 0xa32   :  { %1705 = vsyncpa [#allocation11], 1 }

</bundles_post_ra>
